<compile_context>
chip_gen: v7x
topology: tpu7x:2x2x1
jax: 0.10.0
libtpu: 0.0.40
codegen_flags: <defaults>
</compile_context>

<pallas_src>
import jax
import jax.numpy as jnp
from jax import lax
from jax.experimental import pallas as pl
from jax.experimental.pallas import tpu as pltpu


# ----------------------------------------------------------------------------
# Pallas kernel
# ----------------------------------------------------------------------------
def clas_kernel(x0_ref, keep_ref,
                wih0_ref, whh0_ref, b0_ref,
                wih1_ref, whh1_ref, b1_ref,
                w1_ref, bd1_ref, w2_ref, bd2_ref, w3_ref, bd3_ref,
                out_ref,
                xp_ref, l0_ref):
    f32 = jnp.float32
    bf16 = jnp.bfloat16

    TB, H2 = x0_ref.shape          # (T*BB, 2H): time-major row blocks
    BB = out_ref.shape[0]
    T = TB // BB
    H = H2 // 2
    H4, H6, H8 = 4 * H, 6 * H, 8 * H

    # Packed gate-column layout (each block H lanes, fwd then rev direction):
    #   [ i_f i_r | f_f f_r | o_f o_r | g_f g_r ]
    # -> sigmoid covers columns [0, 6H), tanh covers [6H, 8H).

    def lstm_layer(whh_ref, step_fn, carry):
        whh = whh_ref[...]                              # (2H, 8H) bf16
        h = jnp.zeros((BB, H2), f32)                    # [h_fwd | h_rev]
        c = jnp.zeros((BB, H2), f32)
        for i in range(T):                              # static offsets
            gates = (xp_ref[i * BB:(i + 1) * BB, :].astype(f32)
                     + jnp.dot(h.astype(bf16), whh,
                               preferred_element_type=f32))      # (BB, 8H)
            sg = jax.nn.sigmoid(gates[:, 0:H6])
            g_g = jnp.tanh(gates[:, H6:H8])
            i_g = sg[:, 0:H2]
            f_g = sg[:, H2:H4]
            o_g = sg[:, H4:H6]
            c = f_g * c + i_g * g_g
            h = o_g * jnp.tanh(c)
            carry = step_fn(i, h, carry)
        return carry

    # ------------------------- layer 0 --------------------------------------
    # Hoisted input projection, both directions in one MXU matmul:
    #   x0 row block i = [x(t=i) | x(t=T-1-i)], W_ih0 block-diag per direction.
    xp_ref[...] = (jnp.dot(x0_ref[...], wih0_ref[...],
                           preferred_element_type=f32)
                   + b0_ref[...]).astype(xp_ref.dtype)

    def l0_store(i, h, carry):
        # l0 row block j: cols [0:2H]  = [h0_fwd(j)     | h0_rev(T-1-j)]
        #                 cols [2H:4H] = [h0_fwd(T-1-j) | h0_rev(j)]
        hb = h.astype(l0_ref.dtype)
        l0_ref[i * BB:(i + 1) * BB, 0:H2] = hb
        l0_ref[(T - 1 - i) * BB:(T - i) * BB, H2:H4] = hb
        return carry

    lstm_layer(whh0_ref, l0_store, None)

    # ------------------------- layer 1 --------------------------------------
    # Hoisted input projection on the dual (iteration-order / time-reversed)
    # layer-0 slab; W_ih1 is packed so row block i already holds the combined
    # fwd(t=i) / rev(t=T-1-i) gate inputs.
    xp_ref[...] = (jnp.dot(l0_ref[...], wih1_ref[...],
                           preferred_element_type=f32)
                   + b1_ref[...]).astype(xp_ref.dtype)

    def l1_pool(i, h, accs):
        # Fused pad-mask + time-sum.  keep col0 = keep(t=i), col1 = keep(t=T-1-i).
        acc_f, acc_r = accs
        kf = keep_ref[i * BB:(i + 1) * BB, 0:1]          # (BB, 1)
        kr = keep_ref[i * BB:(i + 1) * BB, 1:2]
        return (acc_f + h[:, 0:H] * kf, acc_r + h[:, H:H2] * kr)

    acc_f, acc_r = lstm_layer(
        whh1_ref, l1_pool,
        (jnp.zeros((BB, H), f32), jnp.zeros((BB, H), f32)))

    inv_t = 1.0 / T                     # torch .mean(1) divides by the full T
    acc_f = acc_f * inv_t
    acc_r = acc_r * inv_t

    # -------- decoder MLP: Linear -> Tanh -> Linear -> Tanh -> Linear(2) -----
    h1 = jnp.tanh(jnp.dot(acc_f, w1_ref[0:H, :], preferred_element_type=f32)
                  + jnp.dot(acc_r, w1_ref[H:H2, :], preferred_element_type=f32)
                  + bd1_ref[...])
    h2 = jnp.tanh(jnp.dot(h1, w2_ref[...], preferred_element_type=f32)
                  + bd2_ref[...])
    out_ref[...] = (jnp.dot(h2, w3_ref[...], preferred_element_type=f32)
                    + bd3_ref[...])


# ----------------------------------------------------------------------------
# Wrapper: weight packing, batch padding, layout plumbing (free XLA work)
# ----------------------------------------------------------------------------
_GATE_SRC = (0, 1, 3, 2)   # PyTorch gate order [i, f, g, o] -> packed [i, f, o, g]


def _gate_blocks(w, H):
    return [w[:, g * H:(g + 1) * H] for g in _GATE_SRC]


def _pack_blockdiag(w_f, w_r, H):
    # Per-direction (Din, 4H) -> (2*Din, 8H); forward gate columns read packed
    # input rows [0:Din], reverse gate columns read rows [Din:2*Din].
    din = w_f.shape[0]
    z = jnp.zeros((din, H), w_f.dtype)
    cols = []
    for bf, br in zip(_gate_blocks(w_f, H), _gate_blocks(w_r, H)):
        cols.append(jnp.concatenate([bf, z], axis=0))    # fwd gate block
        cols.append(jnp.concatenate([z, br], axis=0))    # rev gate block
    return jnp.concatenate(cols, axis=1)


def _pack_ih_layer1(w_f, w_r, H):
    # Layer-1 input slab row layout (per row block i):
    #   [0:H]   = h0_fwd(t=i)       [H:2H]  = h0_rev(t=T-1-i)
    #   [2H:3H] = h0_fwd(t=T-1-i)   [3H:4H] = h0_rev(t=i)
    # w_f / w_r are (2H, 4H): rows [0:H] multiply h0_fwd, rows [H:2H] h0_rev.
    z = jnp.zeros((H, H), w_f.dtype)
    cols = []
    for bf, br in zip(_gate_blocks(w_f, H), _gate_blocks(w_r, H)):
        cols.append(jnp.concatenate([bf[0:H], z, z, bf[H:2 * H]], axis=0))
        cols.append(jnp.concatenate([z, br[H:2 * H], br[0:H], z], axis=0))
    return jnp.concatenate(cols, axis=1)


def _pack_b(b_f, b_r, H):
    cols = []
    for g in _GATE_SRC:
        cols.append(b_f[g * H:(g + 1) * H])
        cols.append(b_r[g * H:(g + 1) * H])
    return jnp.concatenate(cols)[None, :]


def _vmem_tile_bytes(shape, itemsize):
    rows = shape[-2] if len(shape) >= 2 else 1
    cols = shape[-1]
    lead = 1
    for d in shape[:-2]:
        lead *= int(d)
    return lead * (-(-rows // 8) * 8) * (-(-cols // 128) * 128) * itemsize


def clas_forward(tokens, params, padding_idx=1):
    emb_table = params["emb"]
    B, T = tokens.shape
    H = emb_table.shape[1]
    H2 = 2 * H

    # Batch blocking: multiples of 16 rows (bf16 sublane tile) capped at 128
    # rows per grid step; one grid step per batch block ("parallel" axis).
    BB = min(128, -(-B // 16) * 16)
    NB = -(-B // BB)
    BP = NB * BB

    # ---- glue: embedding gather + layout plumbing (wrapper-side XLA) --------
    # TODO(synk): embedding row gather stays in XLA; an in-kernel version needs
    #             a manual DMA gather (data-dependent HBM addressing).
    emb = emb_table[tokens].astype(jnp.float32)                  # (B, T, H)
    emb = jnp.zeros((BP, T, H), jnp.float32).at[:B].set(emb)     # pad batch
    e_t = jnp.transpose(emb, (1, 0, 2))                          # (T, BP, H)
    x0 = jnp.concatenate([e_t, e_t[::-1]], axis=-1)              # [x(t)|x(T-1-t)]
    x0 = (x0.reshape(T, NB, BB, H2).transpose(1, 0, 2, 3)
            .reshape(NB, T * BB, H2).astype(jnp.bfloat16))

    keep = (tokens != padding_idx).astype(jnp.float32)           # 1 - pad_mask
    keep = jnp.zeros((BP, T), jnp.float32).at[:B].set(keep)
    kf = keep.T                                                  # keep(t=i)
    keep2 = jnp.stack([kf, kf[::-1]], axis=-1)                   # (T, BP, 2)
    keep2 = (keep2.reshape(T, NB, BB, 2).transpose(1, 0, 2, 3)
                  .reshape(NB, T * BB, 2))

    # ---- pack per-direction LSTM weights into the fused-gate layout ---------
    bf16 = jnp.bfloat16
    wih0 = _pack_blockdiag(params["wih0"][0], params["wih0"][1], H).astype(bf16)
    whh0 = _pack_blockdiag(params["whh0"][0], params["whh0"][1], H).astype(bf16)
    b0 = _pack_b(params["b0"][0], params["b0"][1], H)
    wih1 = _pack_ih_layer1(params["wih1"][0], params["wih1"][1], H).astype(bf16)
    whh1 = _pack_blockdiag(params["whh1"][0], params["whh1"][1], H).astype(bf16)
    b1 = _pack_b(params["b1"][0], params["b1"][1], H)

    args = (x0, keep2, wih0, whh0, b0, wih1, whh1, b1,
            params["w1"], params["bd1"], params["w2"], params["bd2"],
            params["w3"], params["bd3"])

    batched = lambda shp: pl.BlockSpec((None,) + tuple(shp[1:]),
                                       lambda j: (j, 0, 0))
    full2d = lambda shp: pl.BlockSpec(tuple(shp), lambda j: (0, 0))
    in_specs = ([batched(x0.shape), batched(keep2.shape)]
                + [full2d(a.shape) for a in args[2:]])
    out_specs = pl.BlockSpec((None, BB, 2), lambda j: (j, 0, 0))

    # VMEM budget: double-buffered input blocks + weights + the two scratches.
    est = 2 * _vmem_tile_bytes((T * BB, H2), 2)                   # x0 block
    est += 2 * _vmem_tile_bytes((T * BB, 2), 4)                   # keep block
    est += 2 * sum(_vmem_tile_bytes(a.shape, a.dtype.itemsize) for a in args[2:])
    est += 2 * _vmem_tile_bytes((BB, 2), 4)                       # out block
    est += _vmem_tile_bytes((T * BB, 8 * H), 2)                   # xp scratch
    est += _vmem_tile_bytes((T * BB, 4 * H), 2)                   # l0 scratch
    vmem_limit = int(min(max(est + (8 << 20), 16 << 20), 100 << 20))

    out = pl.pallas_call(
        clas_kernel,
        out_shape=jax.ShapeDtypeStruct((NB, BB, 2), jnp.float32),
        grid=(NB,),
        in_specs=in_specs,
        out_specs=out_specs,
        scratch_shapes=[pltpu.VMEM((T * BB, 8 * H), jnp.bfloat16),   # gate inputs
                        pltpu.VMEM((T * BB, 4 * H), jnp.bfloat16)],  # layer-0 out
        compiler_params=pltpu.CompilerParams(
            dimension_semantics=("parallel",),
            vmem_limit_bytes=vmem_limit),
    )(*args)
    return out.reshape(BP, 2)[:B]


# ----------------------------------------------------------------------------
# Deterministic parameter init (weights stored pre-transposed for x @ W)
# ----------------------------------------------------------------------------
def init_params(key, vocab_size, hidden, padding_idx=1):
    ks = jax.random.split(key, 13)
    s = 0.1
    rn = lambda k, shape: (jax.random.normal(k, shape, jnp.float32) * s)
    emb = rn(ks[0], (vocab_size, hidden))
    emb = emb.at[padding_idx].set(0.0)            # nn.Embedding zeros padding row
    return dict(
        emb=emb,
        wih0=rn(ks[1], (2, hidden, 4 * hidden)),        # per direction (in, 4H)
        whh0=rn(ks[2], (2, hidden, 4 * hidden)),
        b0=rn(ks[3], (2, 4 * hidden)),                  # b_ih + b_hh combined
        wih1=rn(ks[4], (2, 2 * hidden, 4 * hidden)),
        whh1=rn(ks[5], (2, hidden, 4 * hidden)),
        b1=rn(ks[6], (2, 4 * hidden)),
        w1=rn(ks[7], (2 * hidden, hidden)), bd1=rn(ks[8], (1, hidden)),
        w2=rn(ks[9], (hidden, hidden)), bd2=rn(ks[10], (1, hidden)),
        w3=rn(ks[11], (hidden, 2)), bd3=rn(ks[12], (1, 2)),
    )


# ----------------------------------------------------------------------------
# Pure-JAX reference (same math, unpacked weights) for a sanity check
# ----------------------------------------------------------------------------
def reference_forward(tokens, params, padding_idx=1):
    emb_table = params["emb"]
    mask = (tokens == padding_idx).astype(jnp.float32)
    x = emb_table[tokens].astype(jnp.float32)     # (B, T, H)
    B, T, H = x.shape

    def run_dir(xs, wih, whh, b, reverse):
        def step(carry, x_t):
            h, c = carry
            g = x_t @ wih + h @ whh + b
            i_g = jax.nn.sigmoid(g[:, :H])
            f_g = jax.nn.sigmoid(g[:, H:2 * H])
            g_g = jnp.tanh(g[:, 2 * H:3 * H])
            o_g = jax.nn.sigmoid(g[:, 3 * H:])
            c = f_g * c + i_g * g_g
            h = o_g * jnp.tanh(c)
            return (h, c), h
        xs_t = jnp.transpose(xs, (1, 0, 2))
        if reverse:
            xs_t = xs_t[::-1]
        _, hs = lax.scan(step, (jnp.zeros((B, H)), jnp.zeros((B, H))), xs_t)
        if reverse:
            hs = hs[::-1]
        return jnp.transpose(hs, (1, 0, 2))

    l0 = jnp.concatenate(
        [run_dir(x, params["wih0"][0], params["whh0"][0], params["b0"][0], False),
         run_dir(x, params["wih0"][1], params["whh0"][1], params["b0"][1], True)], -1)
    l1 = jnp.concatenate(
        [run_dir(l0, params["wih1"][0], params["whh1"][0], params["b1"][0], False),
         run_dir(l0, params["wih1"][1], params["whh1"][1], params["b1"][1], True)], -1)
    l1 = l1 * (1.0 - mask)[:, :, None]
    pooled = l1.mean(1)
    h1 = jnp.tanh(pooled @ params["w1"] + params["bd1"])
    h2 = jnp.tanh(h1 @ params["w2"] + params["bd2"])
    return h2 @ params["w3"] + params["bd3"]


if __name__ == "__main__":
    VOCAB, HIDDEN, BATCH, SEQ, PAD = 50, 32, 2, 8, 1

    key = jax.random.PRNGKey(0)
    k_tok, k_par = jax.random.split(key)
    tokens = jax.random.randint(k_tok, (BATCH, SEQ), 2, VOCAB, dtype=jnp.int32)
    tokens = tokens.at[0, -3:].set(PAD)           # add some padding positions
    tokens = tokens.at[1, -1:].set(PAD)

    params = init_params(k_par, VOCAB, HIDDEN, padding_idx=PAD)

    logits = clas_forward(tokens, params, padding_idx=PAD)
    jax.block_until_ready(logits)

    ref = reference_forward(tokens, params, padding_idx=PAD)
    assert logits.shape == (BATCH, 2)
    err = float(jnp.max(jnp.abs(logits - ref)))
    assert err < 2e-2, f"mismatch vs pure-JAX reference: {err}"

    print("KERNEL_OK")
</pallas_src>

<mosaic_0001>
module attributes {stable_mosaic.version = 11 : i64} {
  func.func @clas_kernel(%arg0: i32, %arg1: memref<1x128x64xbf16, #tpu.memory_space<vmem>>, %arg2: memref<1x128x2xf32, #tpu.memory_space<vmem>>, %arg3: memref<64x256xbf16, #tpu.memory_space<vmem>>, %arg4: memref<64x256xbf16, #tpu.memory_space<vmem>>, %arg5: memref<1x256xf32, #tpu.memory_space<vmem>>, %arg6: memref<128x256xbf16, #tpu.memory_space<vmem>>, %arg7: memref<64x256xbf16, #tpu.memory_space<vmem>>, %arg8: memref<1x256xf32, #tpu.memory_space<vmem>>, %arg9: memref<64x32xf32, #tpu.memory_space<vmem>>, %arg10: memref<1x32xf32, #tpu.memory_space<vmem>>, %arg11: memref<32x32xf32, #tpu.memory_space<vmem>>, %arg12: memref<1x32xf32, #tpu.memory_space<vmem>>, %arg13: memref<32x2xf32, #tpu.memory_space<vmem>>, %arg14: memref<1x2xf32, #tpu.memory_space<vmem>>, %arg15: memref<1x16x2xf32, #tpu.memory_space<vmem>>, %arg16: memref<128x256xbf16, #tpu.memory_space<vmem>>, %arg17: memref<128x128xbf16, #tpu.memory_space<vmem>>) attributes {dimension_semantics = [#tpu.dimension_semantics<parallel>], iteration_bounds = array<i64: 1>, scalar_prefetch = 0 : i64, scratch_operands = 2 : i64, tpu.core_type = #tpu.core_type<tc>, window_params = [{transform_indices = @transform_0, window_bounds = array<i64: 1, 128, 64>}, {transform_indices = @transform_1, window_bounds = array<i64: 1, 128, 2>}, {pipeline_mode = #tpu.pipeline_mode<synchronous>, transform_indices = @transform_2, window_bounds = array<i64: 64, 256>}, {pipeline_mode = #tpu.pipeline_mode<synchronous>, transform_indices = @transform_3, window_bounds = array<i64: 64, 256>}, {pipeline_mode = #tpu.pipeline_mode<synchronous>, transform_indices = @transform_4, window_bounds = array<i64: 1, 256>}, {pipeline_mode = #tpu.pipeline_mode<synchronous>, transform_indices = @transform_5, window_bounds = array<i64: 128, 256>}, {pipeline_mode = #tpu.pipeline_mode<synchronous>, transform_indices = @transform_6, window_bounds = array<i64: 64, 256>}, {pipeline_mode = #tpu.pipeline_mode<synchronous>, transform_indices = @transform_7, window_bounds = array<i64: 1, 256>}, {pipeline_mode = #tpu.pipeline_mode<synchronous>, transform_indices = @transform_8, window_bounds = array<i64: 64, 32>}, {pipeline_mode = #tpu.pipeline_mode<synchronous>, transform_indices = @transform_9, window_bounds = array<i64: 1, 32>}, {pipeline_mode = #tpu.pipeline_mode<synchronous>, transform_indices = @transform_10, window_bounds = array<i64: 32, 32>}, {pipeline_mode = #tpu.pipeline_mode<synchronous>, transform_indices = @transform_11, window_bounds = array<i64: 1, 32>}, {pipeline_mode = #tpu.pipeline_mode<synchronous>, transform_indices = @transform_12, window_bounds = array<i64: 32, 2>}, {pipeline_mode = #tpu.pipeline_mode<synchronous>, transform_indices = @transform_13, window_bounds = array<i64: 1, 2>}, {transform_indices = @transform_14, window_bounds = array<i64: 1, 16, 2>}]} {
    %c0 = arith.constant 0 : index
    %c0_0 = arith.constant 0 : index
    %c0_1 = arith.constant 0 : index
    %0 = vector.load %arg1[%c0, %c0_0, %c0_1] : memref<1x128x64xbf16, #tpu.memory_space<vmem>>, vector<1x128x64xbf16>
    %1 = vector.shape_cast %0 : vector<1x128x64xbf16> to vector<128x64xbf16>
    %c0_2 = arith.constant 0 : index
    %c0_3 = arith.constant 0 : index
    %2 = vector.load %arg3[%c0_2, %c0_3] : memref<64x256xbf16, #tpu.memory_space<vmem>>, vector<64x256xbf16>
    %cst = arith.constant dense<0.000000e+00> : vector<128x256xf32>
    %3 = tpu.matmul %1, %2, %cst {dimension_numbers = #tpu.dot_dimension_numbers<[1], [0], [0], [1], [0, 0, 1, 1], [], []>} : vector<128x64xbf16>, vector<64x256xbf16>, vector<128x256xf32> -> vector<128x256xf32>
    %c0_4 = arith.constant 0 : index
    %c0_5 = arith.constant 0 : index
    %4 = vector.load %arg5[%c0_4, %c0_5] : memref<1x256xf32, #tpu.memory_space<vmem>>, vector<1x256xf32>
    %5 = vector.broadcast %4 : vector<1x256xf32> to vector<128x256xf32>
    %6 = arith.addf %3, %5 : vector<128x256xf32>
    %7 = arith.truncf %6 : vector<128x256xf32> to vector<128x256xbf16>
    %c0_6 = arith.constant 0 : index
    %c0_7 = arith.constant 0 : index
    %8 = vector.load %arg16[%c0_6, %c0_7] : memref<128x256xbf16, #tpu.memory_space<vmem>>, vector<128x256xbf16>
    tpu.vector_store %arg16[%c0_6, %c0_7], %7 {strides = array<i32>} : memref<128x256xbf16, #tpu.memory_space<vmem>>, vector<128x256xbf16>,
    %c0_8 = arith.constant 0 : index
    %c0_9 = arith.constant 0 : index
    %9 = vector.load %arg4[%c0_8, %c0_9] : memref<64x256xbf16, #tpu.memory_space<vmem>>, vector<64x256xbf16>
    %cst_10 = arith.constant 0.000000e+00 : f32
    %10 = vector.broadcast %cst_10 : f32 to vector<16x64xf32>
    %cst_11 = arith.constant 0.000000e+00 : f32
    %11 = vector.broadcast %cst_11 : f32 to vector<16x64xf32>
    %c0_12 = arith.constant 0 : index
    %c0_13 = arith.constant 0 : index
    %12 = vector.load %arg16[%c0_12, %c0_13] : memref<128x256xbf16, #tpu.memory_space<vmem>>, vector<16x256xbf16>
    %13 = arith.extf %12 : vector<16x256xbf16> to vector<16x256xf32>
    %14 = arith.truncf %10 : vector<16x64xf32> to vector<16x64xbf16>
    %cst_14 = arith.constant dense<0.000000e+00> : vector<16x256xf32>
    %15 = tpu.matmul %14, %9, %cst_14 {dimension_numbers = #tpu.dot_dimension_numbers<[1], [0], [0], [1], [0, 0, 1, 1], [], []>} : vector<16x64xbf16>, vector<64x256xbf16>, vector<16x256xf32> -> vector<16x256xf32>
    %16 = arith.addf %13, %15 : vector<16x256xf32>
    %17 = vector.extract_strided_slice %16 {offsets = [0, 0], sizes = [16, 192], strides = [1, 1]} : vector<16x256xf32> to vector<16x192xf32>
    %18 = arith.negf %17 : vector<16x192xf32>
    %19 = math.exp %18 : vector<16x192xf32>
    %cst_15 = arith.constant 1.000000e+00 : f32
    %20 = vector.broadcast %cst_15 : f32 to vector<16x192xf32>
    %21 = arith.addf %20, %19 : vector<16x192xf32>
    %22 = arith.divf %20, %21 : vector<16x192xf32>
    %23 = vector.extract_strided_slice %16 {offsets = [0, 192], sizes = [16, 64], strides = [1, 1]} : vector<16x256xf32> to vector<16x64xf32>
    %24 = math.tanh %23 : vector<16x64xf32>
    %25 = vector.extract_strided_slice %22 {offsets = [0, 0], sizes = [16, 64], strides = [1, 1]} : vector<16x192xf32> to vector<16x64xf32>
    %26 = vector.extract_strided_slice %22 {offsets = [0, 64], sizes = [16, 64], strides = [1, 1]} : vector<16x192xf32> to vector<16x64xf32>
    %27 = vector.extract_strided_slice %22 {offsets = [0, 128], sizes = [16, 64], strides = [1, 1]} : vector<16x192xf32> to vector<16x64xf32>
    %28 = arith.mulf %26, %11 : vector<16x64xf32>
    %29 = arith.mulf %25, %24 : vector<16x64xf32>
    %30 = arith.addf %28, %29 : vector<16x64xf32>
    %31 = math.tanh %30 : vector<16x64xf32>
    %32 = arith.mulf %27, %31 : vector<16x64xf32>
    %33 = arith.truncf %32 : vector<16x64xf32> to vector<16x64xbf16>
    %c0_16 = arith.constant 0 : index
    %c0_17 = arith.constant 0 : index
    %34 = vector.load %arg17[%c0_16, %c0_17] : memref<128x128xbf16, #tpu.memory_space<vmem>>, vector<16x64xbf16>
    tpu.vector_store %arg17[%c0_16, %c0_17], %33 {strides = array<i32>} : memref<128x128xbf16, #tpu.memory_space<vmem>>, vector<16x64xbf16>,
    %c112 = arith.constant 112 : index
    %c64 = arith.constant 64 : index
    %35 = vector.load %arg17[%c112, %c64] : memref<128x128xbf16, #tpu.memory_space<vmem>>, vector<16x64xbf16>
    tpu.vector_store %arg17[%c112, %c64], %33 {strides = array<i32>} : memref<128x128xbf16, #tpu.memory_space<vmem>>, vector<16x64xbf16>,
    %c16 = arith.constant 16 : index
    %c0_18 = arith.constant 0 : index
    %36 = vector.load %arg16[%c16, %c0_18] : memref<128x256xbf16, #tpu.memory_space<vmem>>, vector<16x256xbf16>
    %37 = arith.extf %36 : vector<16x256xbf16> to vector<16x256xf32>
    %38 = arith.truncf %32 : vector<16x64xf32> to vector<16x64xbf16>
    %cst_19 = arith.constant dense<0.000000e+00> : vector<16x256xf32>
    %39 = tpu.matmul %38, %9, %cst_19 {dimension_numbers = #tpu.dot_dimension_numbers<[1], [0], [0], [1], [0, 0, 1, 1], [], []>} : vector<16x64xbf16>, vector<64x256xbf16>, vector<16x256xf32> -> vector<16x256xf32>
    %40 = arith.addf %37, %39 : vector<16x256xf32>
    %41 = vector.extract_strided_slice %40 {offsets = [0, 0], sizes = [16, 192], strides = [1, 1]} : vector<16x256xf32> to vector<16x192xf32>
    %42 = arith.negf %41 : vector<16x192xf32>
    %43 = math.exp %42 : vector<16x192xf32>
    %cst_20 = arith.constant 1.000000e+00 : f32
    %44 = vector.broadcast %cst_20 : f32 to vector<16x192xf32>
    %45 = arith.addf %44, %43 : vector<16x192xf32>
    %46 = arith.divf %44, %45 : vector<16x192xf32>
    %47 = vector.extract_strided_slice %40 {offsets = [0, 192], sizes = [16, 64], strides = [1, 1]} : vector<16x256xf32> to vector<16x64xf32>
    %48 = math.tanh %47 : vector<16x64xf32>
    %49 = vector.extract_strided_slice %46 {offsets = [0, 0], sizes = [16, 64], strides = [1, 1]} : vector<16x192xf32> to vector<16x64xf32>
    %50 = vector.extract_strided_slice %46 {offsets = [0, 64], sizes = [16, 64], strides = [1, 1]} : vector<16x192xf32> to vector<16x64xf32>
    %51 = vector.extract_strided_slice %46 {offsets = [0, 128], sizes = [16, 64], strides = [1, 1]} : vector<16x192xf32> to vector<16x64xf32>
    %52 = arith.mulf %50, %30 : vector<16x64xf32>
    %53 = arith.mulf %49, %48 : vector<16x64xf32>
    %54 = arith.addf %52, %53 : vector<16x64xf32>
    %55 = math.tanh %54 : vector<16x64xf32>
    %56 = arith.mulf %51, %55 : vector<16x64xf32>
    %57 = arith.truncf %56 : vector<16x64xf32> to vector<16x64xbf16>
    %c16_21 = arith.constant 16 : index
    %c0_22 = arith.constant 0 : index
    %58 = vector.load %arg17[%c16_21, %c0_22] : memref<128x128xbf16, #tpu.memory_space<vmem>>, vector<16x64xbf16>
    tpu.vector_store %arg17[%c16_21, %c0_22], %57 {strides = array<i32>} : memref<128x128xbf16, #tpu.memory_space<vmem>>, vector<16x64xbf16>,
    %c96 = arith.constant 96 : index
    %c64_23 = arith.constant 64 : index
    %59 = vector.load %arg17[%c96, %c64_23] : memref<128x128xbf16, #tpu.memory_space<vmem>>, vector<16x64xbf16>
    tpu.vector_store %arg17[%c96, %c64_23], %57 {strides = array<i32>} : memref<128x128xbf16, #tpu.memory_space<vmem>>, vector<16x64xbf16>,
    %c32 = arith.constant 32 : index
    %c0_24 = arith.constant 0 : index
    %60 = vector.load %arg16[%c32, %c0_24] : memref<128x256xbf16, #tpu.memory_space<vmem>>, vector<16x256xbf16>
    %61 = arith.extf %60 : vector<16x256xbf16> to vector<16x256xf32>
    %62 = arith.truncf %56 : vector<16x64xf32> to vector<16x64xbf16>
    %cst_25 = arith.constant dense<0.000000e+00> : vector<16x256xf32>
    %63 = tpu.matmul %62, %9, %cst_25 {dimension_numbers = #tpu.dot_dimension_numbers<[1], [0], [0], [1], [0, 0, 1, 1], [], []>} : vector<16x64xbf16>, vector<64x256xbf16>, vector<16x256xf32> -> vector<16x256xf32>
    %64 = arith.addf %61, %63 : vector<16x256xf32>
    %65 = vector.extract_strided_slice %64 {offsets = [0, 0], sizes = [16, 192], strides = [1, 1]} : vector<16x256xf32> to vector<16x192xf32>
    %66 = arith.negf %65 : vector<16x192xf32>
    %67 = math.exp %66 : vector<16x192xf32>
    %cst_26 = arith.constant 1.000000e+00 : f32
    %68 = vector.broadcast %cst_26 : f32 to vector<16x192xf32>
    %69 = arith.addf %68, %67 : vector<16x192xf32>
    %70 = arith.divf %68, %69 : vector<16x192xf32>
    %71 = vector.extract_strided_slice %64 {offsets = [0, 192], sizes = [16, 64], strides = [1, 1]} : vector<16x256xf32> to vector<16x64xf32>
    %72 = math.tanh %71 : vector<16x64xf32>
    %73 = vector.extract_strided_slice %70 {offsets = [0, 0], sizes = [16, 64], strides = [1, 1]} : vector<16x192xf32> to vector<16x64xf32>
    %74 = vector.extract_strided_slice %70 {offsets = [0, 64], sizes = [16, 64], strides = [1, 1]} : vector<16x192xf32> to vector<16x64xf32>
    %75 = vector.extract_strided_slice %70 {offsets = [0, 128], sizes = [16, 64], strides = [1, 1]} : vector<16x192xf32> to vector<16x64xf32>
    %76 = arith.mulf %74, %54 : vector<16x64xf32>
    %77 = arith.mulf %73, %72 : vector<16x64xf32>
    %78 = arith.addf %76, %77 : vector<16x64xf32>
    %79 = math.tanh %78 : vector<16x64xf32>
    %80 = arith.mulf %75, %79 : vector<16x64xf32>
    %81 = arith.truncf %80 : vector<16x64xf32> to vector<16x64xbf16>
    %c32_27 = arith.constant 32 : index
    %c0_28 = arith.constant 0 : index
    %82 = vector.load %arg17[%c32_27, %c0_28] : memref<128x128xbf16, #tpu.memory_space<vmem>>, vector<16x64xbf16>
    tpu.vector_store %arg17[%c32_27, %c0_28], %81 {strides = array<i32>} : memref<128x128xbf16, #tpu.memory_space<vmem>>, vector<16x64xbf16>,
    %c80 = arith.constant 80 : index
    %c64_29 = arith.constant 64 : index
    %83 = vector.load %arg17[%c80, %c64_29] : memref<128x128xbf16, #tpu.memory_space<vmem>>, vector<16x64xbf16>
    tpu.vector_store %arg17[%c80, %c64_29], %81 {strides = array<i32>} : memref<128x128xbf16, #tpu.memory_space<vmem>>, vector<16x64xbf16>,
    %c48 = arith.constant 48 : index
    %c0_30 = arith.constant 0 : index
    %84 = vector.load %arg16[%c48, %c0_30] : memref<128x256xbf16, #tpu.memory_space<vmem>>, vector<16x256xbf16>
    %85 = arith.extf %84 : vector<16x256xbf16> to vector<16x256xf32>
    %86 = arith.truncf %80 : vector<16x64xf32> to vector<16x64xbf16>
    %cst_31 = arith.constant dense<0.000000e+00> : vector<16x256xf32>
    %87 = tpu.matmul %86, %9, %cst_31 {dimension_numbers = #tpu.dot_dimension_numbers<[1], [0], [0], [1], [0, 0, 1, 1], [], []>} : vector<16x64xbf16>, vector<64x256xbf16>, vector<16x256xf32> -> vector<16x256xf32>
    %88 = arith.addf %85, %87 : vector<16x256xf32>
    %89 = vector.extract_strided_slice %88 {offsets = [0, 0], sizes = [16, 192], strides = [1, 1]} : vector<16x256xf32> to vector<16x192xf32>
    %90 = arith.negf %89 : vector<16x192xf32>
    %91 = math.exp %90 : vector<16x192xf32>
    %cst_32 = arith.constant 1.000000e+00 : f32
    %92 = vector.broadcast %cst_32 : f32 to vector<16x192xf32>
    %93 = arith.addf %92, %91 : vector<16x192xf32>
    %94 = arith.divf %92, %93 : vector<16x192xf32>
    %95 = vector.extract_strided_slice %88 {offsets = [0, 192], sizes = [16, 64], strides = [1, 1]} : vector<16x256xf32> to vector<16x64xf32>
    %96 = math.tanh %95 : vector<16x64xf32>
    %97 = vector.extract_strided_slice %94 {offsets = [0, 0], sizes = [16, 64], strides = [1, 1]} : vector<16x192xf32> to vector<16x64xf32>
    %98 = vector.extract_strided_slice %94 {offsets = [0, 64], sizes = [16, 64], strides = [1, 1]} : vector<16x192xf32> to vector<16x64xf32>
    %99 = vector.extract_strided_slice %94 {offsets = [0, 128], sizes = [16, 64], strides = [1, 1]} : vector<16x192xf32> to vector<16x64xf32>
    %100 = arith.mulf %98, %78 : vector<16x64xf32>
    %101 = arith.mulf %97, %96 : vector<16x64xf32>
    %102 = arith.addf %100, %101 : vector<16x64xf32>
    %103 = math.tanh %102 : vector<16x64xf32>
    %104 = arith.mulf %99, %103 : vector<16x64xf32>
    %105 = arith.truncf %104 : vector<16x64xf32> to vector<16x64xbf16>
    %c48_33 = arith.constant 48 : index
    %c0_34 = arith.constant 0 : index
    %106 = vector.load %arg17[%c48_33, %c0_34] : memref<128x128xbf16, #tpu.memory_space<vmem>>, vector<16x64xbf16>
    tpu.vector_store %arg17[%c48_33, %c0_34], %105 {strides = array<i32>} : memref<128x128xbf16, #tpu.memory_space<vmem>>, vector<16x64xbf16>,
    %c64_35 = arith.constant 64 : index
    %c64_36 = arith.constant 64 : index
    %107 = vector.load %arg17[%c64_35, %c64_36] : memref<128x128xbf16, #tpu.memory_space<vmem>>, vector<16x64xbf16>
    tpu.vector_store %arg17[%c64_35, %c64_36], %105 {strides = array<i32>} : memref<128x128xbf16, #tpu.memory_space<vmem>>, vector<16x64xbf16>,
    %c64_37 = arith.constant 64 : index
    %c0_38 = arith.constant 0 : index
    %108 = vector.load %arg16[%c64_37, %c0_38] : memref<128x256xbf16, #tpu.memory_space<vmem>>, vector<16x256xbf16>
    %109 = arith.extf %108 : vector<16x256xbf16> to vector<16x256xf32>
    %110 = arith.truncf %104 : vector<16x64xf32> to vector<16x64xbf16>
    %cst_39 = arith.constant dense<0.000000e+00> : vector<16x256xf32>
    %111 = tpu.matmul %110, %9, %cst_39 {dimension_numbers = #tpu.dot_dimension_numbers<[1], [0], [0], [1], [0, 0, 1, 1], [], []>} : vector<16x64xbf16>, vector<64x256xbf16>, vector<16x256xf32> -> vector<16x256xf32>
    %112 = arith.addf %109, %111 : vector<16x256xf32>
    %113 = vector.extract_strided_slice %112 {offsets = [0, 0], sizes = [16, 192], strides = [1, 1]} : vector<16x256xf32> to vector<16x192xf32>
    %114 = arith.negf %113 : vector<16x192xf32>
    %115 = math.exp %114 : vector<16x192xf32>
    %cst_40 = arith.constant 1.000000e+00 : f32
    %116 = vector.broadcast %cst_40 : f32 to vector<16x192xf32>
    %117 = arith.addf %116, %115 : vector<16x192xf32>
    %118 = arith.divf %116, %117 : vector<16x192xf32>
    %119 = vector.extract_strided_slice %112 {offsets = [0, 192], sizes = [16, 64], strides = [1, 1]} : vector<16x256xf32> to vector<16x64xf32>
    %120 = math.tanh %119 : vector<16x64xf32>
    %121 = vector.extract_strided_slice %118 {offsets = [0, 0], sizes = [16, 64], strides = [1, 1]} : vector<16x192xf32> to vector<16x64xf32>
    %122 = vector.extract_strided_slice %118 {offsets = [0, 64], sizes = [16, 64], strides = [1, 1]} : vector<16x192xf32> to vector<16x64xf32>
    %123 = vector.extract_strided_slice %118 {offsets = [0, 128], sizes = [16, 64], strides = [1, 1]} : vector<16x192xf32> to vector<16x64xf32>
    %124 = arith.mulf %122, %102 : vector<16x64xf32>
    %125 = arith.mulf %121, %120 : vector<16x64xf32>
    %126 = arith.addf %124, %125 : vector<16x64xf32>
    %127 = math.tanh %126 : vector<16x64xf32>
    %128 = arith.mulf %123, %127 : vector<16x64xf32>
    %129 = arith.truncf %128 : vector<16x64xf32> to vector<16x64xbf16>
    %c64_41 = arith.constant 64 : index
    %c0_42 = arith.constant 0 : index
    %130 = vector.load %arg17[%c64_41, %c0_42] : memref<128x128xbf16, #tpu.memory_space<vmem>>, vector<16x64xbf16>
    tpu.vector_store %arg17[%c64_41, %c0_42], %129 {strides = array<i32>} : memref<128x128xbf16, #tpu.memory_space<vmem>>, vector<16x64xbf16>,
    %c48_43 = arith.constant 48 : index
    %c64_44 = arith.constant 64 : index
    %131 = vector.load %arg17[%c48_43, %c64_44] : memref<128x128xbf16, #tpu.memory_space<vmem>>, vector<16x64xbf16>
    tpu.vector_store %arg17[%c48_43, %c64_44], %129 {strides = array<i32>} : memref<128x128xbf16, #tpu.memory_space<vmem>>, vector<16x64xbf16>,
    %c80_45 = arith.constant 80 : index
    %c0_46 = arith.constant 0 : index
    %132 = vector.load %arg16[%c80_45, %c0_46] : memref<128x256xbf16, #tpu.memory_space<vmem>>, vector<16x256xbf16>
    %133 = arith.extf %132 : vector<16x256xbf16> to vector<16x256xf32>
    %134 = arith.truncf %128 : vector<16x64xf32> to vector<16x64xbf16>
    %cst_47 = arith.constant dense<0.000000e+00> : vector<16x256xf32>
    %135 = tpu.matmul %134, %9, %cst_47 {dimension_numbers = #tpu.dot_dimension_numbers<[1], [0], [0], [1], [0, 0, 1, 1], [], []>} : vector<16x64xbf16>, vector<64x256xbf16>, vector<16x256xf32> -> vector<16x256xf32>
    %136 = arith.addf %133, %135 : vector<16x256xf32>
    %137 = vector.extract_strided_slice %136 {offsets = [0, 0], sizes = [16, 192], strides = [1, 1]} : vector<16x256xf32> to vector<16x192xf32>
    %138 = arith.negf %137 : vector<16x192xf32>
    %139 = math.exp %138 : vector<16x192xf32>
    %cst_48 = arith.constant 1.000000e+00 : f32
    %140 = vector.broadcast %cst_48 : f32 to vector<16x192xf32>
    %141 = arith.addf %140, %139 : vector<16x192xf32>
    %142 = arith.divf %140, %141 : vector<16x192xf32>
    %143 = vector.extract_strided_slice %136 {offsets = [0, 192], sizes = [16, 64], strides = [1, 1]} : vector<16x256xf32> to vector<16x64xf32>
    %144 = math.tanh %143 : vector<16x64xf32>
    %145 = vector.extract_strided_slice %142 {offsets = [0, 0], sizes = [16, 64], strides = [1, 1]} : vector<16x192xf32> to vector<16x64xf32>
    %146 = vector.extract_strided_slice %142 {offsets = [0, 64], sizes = [16, 64], strides = [1, 1]} : vector<16x192xf32> to vector<16x64xf32>
    %147 = vector.extract_strided_slice %142 {offsets = [0, 128], sizes = [16, 64], strides = [1, 1]} : vector<16x192xf32> to vector<16x64xf32>
    %148 = arith.mulf %146, %126 : vector<16x64xf32>
    %149 = arith.mulf %145, %144 : vector<16x64xf32>
    %150 = arith.addf %148, %149 : vector<16x64xf32>
    %151 = math.tanh %150 : vector<16x64xf32>
    %152 = arith.mulf %147, %151 : vector<16x64xf32>
    %153 = arith.truncf %152 : vector<16x64xf32> to vector<16x64xbf16>
    %c80_49 = arith.constant 80 : index
    %c0_50 = arith.constant 0 : index
    %154 = vector.load %arg17[%c80_49, %c0_50] : memref<128x128xbf16, #tpu.memory_space<vmem>>, vector<16x64xbf16>
    tpu.vector_store %arg17[%c80_49, %c0_50], %153 {strides = array<i32>} : memref<128x128xbf16, #tpu.memory_space<vmem>>, vector<16x64xbf16>,
    %c32_51 = arith.constant 32 : index
    %c64_52 = arith.constant 64 : index
    %155 = vector.load %arg17[%c32_51, %c64_52] : memref<128x128xbf16, #tpu.memory_space<vmem>>, vector<16x64xbf16>
    tpu.vector_store %arg17[%c32_51, %c64_52], %153 {strides = array<i32>} : memref<128x128xbf16, #tpu.memory_space<vmem>>, vector<16x64xbf16>,
    %c96_53 = arith.constant 96 : index
    %c0_54 = arith.constant 0 : index
    %156 = vector.load %arg16[%c96_53, %c0_54] : memref<128x256xbf16, #tpu.memory_space<vmem>>, vector<16x256xbf16>
    %157 = arith.extf %156 : vector<16x256xbf16> to vector<16x256xf32>
    %158 = arith.truncf %152 : vector<16x64xf32> to vector<16x64xbf16>
    %cst_55 = arith.constant dense<0.000000e+00> : vector<16x256xf32>
    %159 = tpu.matmul %158, %9, %cst_55 {dimension_numbers = #tpu.dot_dimension_numbers<[1], [0], [0], [1], [0, 0, 1, 1], [], []>} : vector<16x64xbf16>, vector<64x256xbf16>, vector<16x256xf32> -> vector<16x256xf32>
    %160 = arith.addf %157, %159 : vector<16x256xf32>
    %161 = vector.extract_strided_slice %160 {offsets = [0, 0], sizes = [16, 192], strides = [1, 1]} : vector<16x256xf32> to vector<16x192xf32>
    %162 = arith.negf %161 : vector<16x192xf32>
    %163 = math.exp %162 : vector<16x192xf32>
    %cst_56 = arith.constant 1.000000e+00 : f32
    %164 = vector.broadcast %cst_56 : f32 to vector<16x192xf32>
    %165 = arith.addf %164, %163 : vector<16x192xf32>
    %166 = arith.divf %164, %165 : vector<16x192xf32>
    %167 = vector.extract_strided_slice %160 {offsets = [0, 192], sizes = [16, 64], strides = [1, 1]} : vector<16x256xf32> to vector<16x64xf32>
    %168 = math.tanh %167 : vector<16x64xf32>
    %169 = vector.extract_strided_slice %166 {offsets = [0, 0], sizes = [16, 64], strides = [1, 1]} : vector<16x192xf32> to vector<16x64xf32>
    %170 = vector.extract_strided_slice %166 {offsets = [0, 64], sizes = [16, 64], strides = [1, 1]} : vector<16x192xf32> to vector<16x64xf32>
    %171 = vector.extract_strided_slice %166 {offsets = [0, 128], sizes = [16, 64], strides = [1, 1]} : vector<16x192xf32> to vector<16x64xf32>
    %172 = arith.mulf %170, %150 : vector<16x64xf32>
    %173 = arith.mulf %169, %168 : vector<16x64xf32>
    %174 = arith.addf %172, %173 : vector<16x64xf32>
    %175 = math.tanh %174 : vector<16x64xf32>
    %176 = arith.mulf %171, %175 : vector<16x64xf32>
    %177 = arith.truncf %176 : vector<16x64xf32> to vector<16x64xbf16>
    %c96_57 = arith.constant 96 : index
    %c0_58 = arith.constant 0 : index
    %178 = vector.load %arg17[%c96_57, %c0_58] : memref<128x128xbf16, #tpu.memory_space<vmem>>, vector<16x64xbf16>
    tpu.vector_store %arg17[%c96_57, %c0_58], %177 {strides = array<i32>} : memref<128x128xbf16, #tpu.memory_space<vmem>>, vector<16x64xbf16>,
    %c16_59 = arith.constant 16 : index
    %c64_60 = arith.constant 64 : index
    %179 = vector.load %arg17[%c16_59, %c64_60] : memref<128x128xbf16, #tpu.memory_space<vmem>>, vector<16x64xbf16>
    tpu.vector_store %arg17[%c16_59, %c64_60], %177 {strides = array<i32>} : memref<128x128xbf16, #tpu.memory_space<vmem>>, vector<16x64xbf16>,
    %c112_61 = arith.constant 112 : index
    %c0_62 = arith.constant 0 : index
    %180 = vector.load %arg16[%c112_61, %c0_62] : memref<128x256xbf16, #tpu.memory_space<vmem>>, vector<16x256xbf16>
    %181 = arith.extf %180 : vector<16x256xbf16> to vector<16x256xf32>
    %182 = arith.truncf %176 : vector<16x64xf32> to vector<16x64xbf16>
    %cst_63 = arith.constant dense<0.000000e+00> : vector<16x256xf32>
    %183 = tpu.matmul %182, %9, %cst_63 {dimension_numbers = #tpu.dot_dimension_numbers<[1], [0], [0], [1], [0, 0, 1, 1], [], []>} : vector<16x64xbf16>, vector<64x256xbf16>, vector<16x256xf32> -> vector<16x256xf32>
    %184 = arith.addf %181, %183 : vector<16x256xf32>
    %185 = vector.extract_strided_slice %184 {offsets = [0, 0], sizes = [16, 192], strides = [1, 1]} : vector<16x256xf32> to vector<16x192xf32>
    %186 = arith.negf %185 : vector<16x192xf32>
    %187 = math.exp %186 : vector<16x192xf32>
    %cst_64 = arith.constant 1.000000e+00 : f32
    %188 = vector.broadcast %cst_64 : f32 to vector<16x192xf32>
    %189 = arith.addf %188, %187 : vector<16x192xf32>
    %190 = arith.divf %188, %189 : vector<16x192xf32>
    %191 = vector.extract_strided_slice %184 {offsets = [0, 192], sizes = [16, 64], strides = [1, 1]} : vector<16x256xf32> to vector<16x64xf32>
    %192 = math.tanh %191 : vector<16x64xf32>
    %193 = vector.extract_strided_slice %190 {offsets = [0, 0], sizes = [16, 64], strides = [1, 1]} : vector<16x192xf32> to vector<16x64xf32>
    %194 = vector.extract_strided_slice %190 {offsets = [0, 64], sizes = [16, 64], strides = [1, 1]} : vector<16x192xf32> to vector<16x64xf32>
    %195 = vector.extract_strided_slice %190 {offsets = [0, 128], sizes = [16, 64], strides = [1, 1]} : vector<16x192xf32> to vector<16x64xf32>
    %196 = arith.mulf %194, %174 : vector<16x64xf32>
    %197 = arith.mulf %193, %192 : vector<16x64xf32>
    %198 = arith.addf %196, %197 : vector<16x64xf32>
    %199 = math.tanh %198 : vector<16x64xf32>
    %200 = arith.mulf %195, %199 : vector<16x64xf32>
    %201 = arith.truncf %200 : vector<16x64xf32> to vector<16x64xbf16>
    %c112_65 = arith.constant 112 : index
    %c0_66 = arith.constant 0 : index
    %202 = vector.load %arg17[%c112_65, %c0_66] : memref<128x128xbf16, #tpu.memory_space<vmem>>, vector<16x64xbf16>
    tpu.vector_store %arg17[%c112_65, %c0_66], %201 {strides = array<i32>} : memref<128x128xbf16, #tpu.memory_space<vmem>>, vector<16x64xbf16>,
    %c0_67 = arith.constant 0 : index
    %c64_68 = arith.constant 64 : index
    %203 = vector.load %arg17[%c0_67, %c64_68] : memref<128x128xbf16, #tpu.memory_space<vmem>>, vector<16x64xbf16>
    tpu.vector_store %arg17[%c0_67, %c64_68], %201 {strides = array<i32>} : memref<128x128xbf16, #tpu.memory_space<vmem>>, vector<16x64xbf16>,
    %c0_69 = arith.constant 0 : index
    %c0_70 = arith.constant 0 : index
    %204 = vector.load %arg17[%c0_69, %c0_70] : memref<128x128xbf16, #tpu.memory_space<vmem>>, vector<128x128xbf16>
    %c0_71 = arith.constant 0 : index
    %c0_72 = arith.constant 0 : index
    %205 = vector.load %arg6[%c0_71, %c0_72] : memref<128x256xbf16, #tpu.memory_space<vmem>>, vector<128x256xbf16>
    %cst_73 = arith.constant dense<0.000000e+00> : vector<128x256xf32>
    %206 = tpu.matmul %204, %205, %cst_73 {dimension_numbers = #tpu.dot_dimension_numbers<[1], [0], [0], [1], [0, 0, 1, 1], [], []>} : vector<128x128xbf16>, vector<128x256xbf16>, vector<128x256xf32> -> vector<128x256xf32>
    %c0_74 = arith.constant 0 : index
    %c0_75 = arith.constant 0 : index
    %207 = vector.load %arg8[%c0_74, %c0_75] : memref<1x256xf32, #tpu.memory_space<vmem>>, vector<1x256xf32>
    %208 = vector.broadcast %207 : vector<1x256xf32> to vector<128x256xf32>
    %209 = arith.addf %206, %208 : vector<128x256xf32>
    %210 = arith.truncf %209 : vector<128x256xf32> to vector<128x256xbf16>
    %c0_76 = arith.constant 0 : index
    %c0_77 = arith.constant 0 : index
    %211 = vector.load %arg16[%c0_76, %c0_77] : memref<128x256xbf16, #tpu.memory_space<vmem>>, vector<128x256xbf16>
    tpu.vector_store %arg16[%c0_76, %c0_77], %210 {strides = array<i32>} : memref<128x256xbf16, #tpu.memory_space<vmem>>, vector<128x256xbf16>,
    %cst_78 = arith.constant 0.000000e+00 : f32
    %212 = vector.broadcast %cst_78 : f32 to vector<16x32xf32>
    %cst_79 = arith.constant 0.000000e+00 : f32
    %213 = vector.broadcast %cst_79 : f32 to vector<16x32xf32>
    %c0_80 = arith.constant 0 : index
    %c0_81 = arith.constant 0 : index
    %214 = vector.load %arg7[%c0_80, %c0_81] : memref<64x256xbf16, #tpu.memory_space<vmem>>, vector<64x256xbf16>
    %cst_82 = arith.constant 0.000000e+00 : f32
    %215 = vector.broadcast %cst_82 : f32 to vector<16x64xf32>
    %cst_83 = arith.constant 0.000000e+00 : f32
    %216 = vector.broadcast %cst_83 : f32 to vector<16x64xf32>
    %c0_84 = arith.constant 0 : index
    %c0_85 = arith.constant 0 : index
    %217 = vector.load %arg16[%c0_84, %c0_85] : memref<128x256xbf16, #tpu.memory_space<vmem>>, vector<16x256xbf16>
    %218 = arith.extf %217 : vector<16x256xbf16> to vector<16x256xf32>
    %219 = arith.truncf %215 : vector<16x64xf32> to vector<16x64xbf16>
    %cst_86 = arith.constant dense<0.000000e+00> : vector<16x256xf32>
    %220 = tpu.matmul %219, %214, %cst_86 {dimension_numbers = #tpu.dot_dimension_numbers<[1], [0], [0], [1], [0, 0, 1, 1], [], []>} : vector<16x64xbf16>, vector<64x256xbf16>, vector<16x256xf32> -> vector<16x256xf32>
    %221 = arith.addf %218, %220 : vector<16x256xf32>
    %222 = vector.extract_strided_slice %221 {offsets = [0, 0], sizes = [16, 192], strides = [1, 1]} : vector<16x256xf32> to vector<16x192xf32>
    %223 = arith.negf %222 : vector<16x192xf32>
    %224 = math.exp %223 : vector<16x192xf32>
    %cst_87 = arith.constant 1.000000e+00 : f32
    %225 = vector.broadcast %cst_87 : f32 to vector<16x192xf32>
    %226 = arith.addf %225, %224 : vector<16x192xf32>
    %227 = arith.divf %225, %226 : vector<16x192xf32>
    %228 = vector.extract_strided_slice %221 {offsets = [0, 192], sizes = [16, 64], strides = [1, 1]} : vector<16x256xf32> to vector<16x64xf32>
    %229 = math.tanh %228 : vector<16x64xf32>
    %230 = vector.extract_strided_slice %227 {offsets = [0, 0], sizes = [16, 64], strides = [1, 1]} : vector<16x192xf32> to vector<16x64xf32>
    %231 = vector.extract_strided_slice %227 {offsets = [0, 64], sizes = [16, 64], strides = [1, 1]} : vector<16x192xf32> to vector<16x64xf32>
    %232 = vector.extract_strided_slice %227 {offsets = [0, 128], sizes = [16, 64], strides = [1, 1]} : vector<16x192xf32> to vector<16x64xf32>
    %233 = arith.mulf %231, %216 : vector<16x64xf32>
    %234 = arith.mulf %230, %229 : vector<16x64xf32>
    %235 = arith.addf %233, %234 : vector<16x64xf32>
    %236 = math.tanh %235 : vector<16x64xf32>
    %237 = arith.mulf %232, %236 : vector<16x64xf32>
    %c0_88 = arith.constant 0 : index
    %c0_89 = arith.constant 0 : index
    %c0_90 = arith.constant 0 : index
    %238 = vector.load %arg2[%c0_88, %c0_89, %c0_90] : memref<1x128x2xf32, #tpu.memory_space<vmem>>, vector<1x16x1xf32>
    %239 = vector.shape_cast %238 : vector<1x16x1xf32> to vector<16x1xf32>
    %c0_91 = arith.constant 0 : index
    %c0_92 = arith.constant 0 : index
    %c1 = arith.constant 1 : index
    %240 = vector.load %arg2[%c0_91, %c0_92, %c1] : memref<1x128x2xf32, #tpu.memory_space<vmem>>, vector<1x16x1xf32>
    %241 = vector.shape_cast %240 : vector<1x16x1xf32> to vector<16x1xf32>
    %242 = vector.extract_strided_slice %237 {offsets = [0, 0], sizes = [16, 32], strides = [1, 1]} : vector<16x64xf32> to vector<16x32xf32>
    %243 = vector.broadcast %239 : vector<16x1xf32> to vector<16x32xf32>
    %244 = arith.mulf %242, %243 : vector<16x32xf32>
    %245 = arith.addf %212, %244 : vector<16x32xf32>
    %246 = vector.extract_strided_slice %237 {offsets = [0, 32], sizes = [16, 32], strides = [1, 1]} : vector<16x64xf32> to vector<16x32xf32>
    %247 = vector.broadcast %241 : vector<16x1xf32> to vector<16x32xf32>
    %248 = arith.mulf %246, %247 : vector<16x32xf32>
    %249 = arith.addf %213, %248 : vector<16x32xf32>
    %c16_93 = arith.constant 16 : index
    %c0_94 = arith.constant 0 : index
    %250 = vector.load %arg16[%c16_93, %c0_94] : memref<128x256xbf16, #tpu.memory_space<vmem>>, vector<16x256xbf16>
    %251 = arith.extf %250 : vector<16x256xbf16> to vector<16x256xf32>
    %252 = arith.truncf %237 : vector<16x64xf32> to vector<16x64xbf16>
    %cst_95 = arith.constant dense<0.000000e+00> : vector<16x256xf32>
    %253 = tpu.matmul %252, %214, %cst_95 {dimension_numbers = #tpu.dot_dimension_numbers<[1], [0], [0], [1], [0, 0, 1, 1], [], []>} : vector<16x64xbf16>, vector<64x256xbf16>, vector<16x256xf32> -> vector<16x256xf32>
    %254 = arith.addf %251, %253 : vector<16x256xf32>
    %255 = vector.extract_strided_slice %254 {offsets = [0, 0], sizes = [16, 192], strides = [1, 1]} : vector<16x256xf32> to vector<16x192xf32>
    %256 = arith.negf %255 : vector<16x192xf32>
    %257 = math.exp %256 : vector<16x192xf32>
    %cst_96 = arith.constant 1.000000e+00 : f32
    %258 = vector.broadcast %cst_96 : f32 to vector<16x192xf32>
    %259 = arith.addf %258, %257 : vector<16x192xf32>
    %260 = arith.divf %258, %259 : vector<16x192xf32>
    %261 = vector.extract_strided_slice %254 {offsets = [0, 192], sizes = [16, 64], strides = [1, 1]} : vector<16x256xf32> to vector<16x64xf32>
    %262 = math.tanh %261 : vector<16x64xf32>
    %263 = vector.extract_strided_slice %260 {offsets = [0, 0], sizes = [16, 64], strides = [1, 1]} : vector<16x192xf32> to vector<16x64xf32>
    %264 = vector.extract_strided_slice %260 {offsets = [0, 64], sizes = [16, 64], strides = [1, 1]} : vector<16x192xf32> to vector<16x64xf32>
    %265 = vector.extract_strided_slice %260 {offsets = [0, 128], sizes = [16, 64], strides = [1, 1]} : vector<16x192xf32> to vector<16x64xf32>
    %266 = arith.mulf %264, %235 : vector<16x64xf32>
    %267 = arith.mulf %263, %262 : vector<16x64xf32>
    %268 = arith.addf %266, %267 : vector<16x64xf32>
    %269 = math.tanh %268 : vector<16x64xf32>
    %270 = arith.mulf %265, %269 : vector<16x64xf32>
    %c0_97 = arith.constant 0 : index
    %c16_98 = arith.constant 16 : index
    %c0_99 = arith.constant 0 : index
    %271 = vector.load %arg2[%c0_97, %c16_98, %c0_99] : memref<1x128x2xf32, #tpu.memory_space<vmem>>, vector<1x16x1xf32>
    %272 = vector.shape_cast %271 : vector<1x16x1xf32> to vector<16x1xf32>
    %c0_100 = arith.constant 0 : index
    %c16_101 = arith.constant 16 : index
    %c1_102 = arith.constant 1 : index
    %273 = vector.load %arg2[%c0_100, %c16_101, %c1_102] : memref<1x128x2xf32, #tpu.memory_space<vmem>>, vector<1x16x1xf32>
    %274 = vector.shape_cast %273 : vector<1x16x1xf32> to vector<16x1xf32>
    %275 = vector.extract_strided_slice %270 {offsets = [0, 0], sizes = [16, 32], strides = [1, 1]} : vector<16x64xf32> to vector<16x32xf32>
    %276 = vector.broadcast %272 : vector<16x1xf32> to vector<16x32xf32>
    %277 = arith.mulf %275, %276 : vector<16x32xf32>
    %278 = arith.addf %245, %277 : vector<16x32xf32>
    %279 = vector.extract_strided_slice %270 {offsets = [0, 32], sizes = [16, 32], strides = [1, 1]} : vector<16x64xf32> to vector<16x32xf32>
    %280 = vector.broadcast %274 : vector<16x1xf32> to vector<16x32xf32>
    %281 = arith.mulf %279, %280 : vector<16x32xf32>
    %282 = arith.addf %249, %281 : vector<16x32xf32>
    %c32_103 = arith.constant 32 : index
    %c0_104 = arith.constant 0 : index
    %283 = vector.load %arg16[%c32_103, %c0_104] : memref<128x256xbf16, #tpu.memory_space<vmem>>, vector<16x256xbf16>
    %284 = arith.extf %283 : vector<16x256xbf16> to vector<16x256xf32>
    %285 = arith.truncf %270 : vector<16x64xf32> to vector<16x64xbf16>
    %cst_105 = arith.constant dense<0.000000e+00> : vector<16x256xf32>
    %286 = tpu.matmul %285, %214, %cst_105 {dimension_numbers = #tpu.dot_dimension_numbers<[1], [0], [0], [1], [0, 0, 1, 1], [], []>} : vector<16x64xbf16>, vector<64x256xbf16>, vector<16x256xf32> -> vector<16x256xf32>
    %287 = arith.addf %284, %286 : vector<16x256xf32>
    %288 = vector.extract_strided_slice %287 {offsets = [0, 0], sizes = [16, 192], strides = [1, 1]} : vector<16x256xf32> to vector<16x192xf32>
    %289 = arith.negf %288 : vector<16x192xf32>
    %290 = math.exp %289 : vector<16x192xf32>
    %cst_106 = arith.constant 1.000000e+00 : f32
    %291 = vector.broadcast %cst_106 : f32 to vector<16x192xf32>
    %292 = arith.addf %291, %290 : vector<16x192xf32>
    %293 = arith.divf %291, %292 : vector<16x192xf32>
    %294 = vector.extract_strided_slice %287 {offsets = [0, 192], sizes = [16, 64], strides = [1, 1]} : vector<16x256xf32> to vector<16x64xf32>
    %295 = math.tanh %294 : vector<16x64xf32>
    %296 = vector.extract_strided_slice %293 {offsets = [0, 0], sizes = [16, 64], strides = [1, 1]} : vector<16x192xf32> to vector<16x64xf32>
    %297 = vector.extract_strided_slice %293 {offsets = [0, 64], sizes = [16, 64], strides = [1, 1]} : vector<16x192xf32> to vector<16x64xf32>
    %298 = vector.extract_strided_slice %293 {offsets = [0, 128], sizes = [16, 64], strides = [1, 1]} : vector<16x192xf32> to vector<16x64xf32>
    %299 = arith.mulf %297, %268 : vector<16x64xf32>
    %300 = arith.mulf %296, %295 : vector<16x64xf32>
    %301 = arith.addf %299, %300 : vector<16x64xf32>
    %302 = math.tanh %301 : vector<16x64xf32>
    %303 = arith.mulf %298, %302 : vector<16x64xf32>
    %c0_107 = arith.constant 0 : index
    %c32_108 = arith.constant 32 : index
    %c0_109 = arith.constant 0 : index
    %304 = vector.load %arg2[%c0_107, %c32_108, %c0_109] : memref<1x128x2xf32, #tpu.memory_space<vmem>>, vector<1x16x1xf32>
    %305 = vector.shape_cast %304 : vector<1x16x1xf32> to vector<16x1xf32>
    %c0_110 = arith.constant 0 : index
    %c32_111 = arith.constant 32 : index
    %c1_112 = arith.constant 1 : index
    %306 = vector.load %arg2[%c0_110, %c32_111, %c1_112] : memref<1x128x2xf32, #tpu.memory_space<vmem>>, vector<1x16x1xf32>
    %307 = vector.shape_cast %306 : vector<1x16x1xf32> to vector<16x1xf32>
    %308 = vector.extract_strided_slice %303 {offsets = [0, 0], sizes = [16, 32], strides = [1, 1]} : vector<16x64xf32> to vector<16x32xf32>
    %309 = vector.broadcast %305 : vector<16x1xf32> to vector<16x32xf32>
    %310 = arith.mulf %308, %309 : vector<16x32xf32>
    %311 = arith.addf %278, %310 : vector<16x32xf32>
    %312 = vector.extract_strided_slice %303 {offsets = [0, 32], sizes = [16, 32], strides = [1, 1]} : vector<16x64xf32> to vector<16x32xf32>
    %313 = vector.broadcast %307 : vector<16x1xf32> to vector<16x32xf32>
    %314 = arith.mulf %312, %313 : vector<16x32xf32>
    %315 = arith.addf %282, %314 : vector<16x32xf32>
    %c48_113 = arith.constant 48 : index
    %c0_114 = arith.constant 0 : index
    %316 = vector.load %arg16[%c48_113, %c0_114] : memref<128x256xbf16, #tpu.memory_space<vmem>>, vector<16x256xbf16>
    %317 = arith.extf %316 : vector<16x256xbf16> to vector<16x256xf32>
    %318 = arith.truncf %303 : vector<16x64xf32> to vector<16x64xbf16>
    %cst_115 = arith.constant dense<0.000000e+00> : vector<16x256xf32>
    %319 = tpu.matmul %318, %214, %cst_115 {dimension_numbers = #tpu.dot_dimension_numbers<[1], [0], [0], [1], [0, 0, 1, 1], [], []>} : vector<16x64xbf16>, vector<64x256xbf16>, vector<16x256xf32> -> vector<16x256xf32>
    %320 = arith.addf %317, %319 : vector<16x256xf32>
    %321 = vector.extract_strided_slice %320 {offsets = [0, 0], sizes = [16, 192], strides = [1, 1]} : vector<16x256xf32> to vector<16x192xf32>
    %322 = arith.negf %321 : vector<16x192xf32>
    %323 = math.exp %322 : vector<16x192xf32>
    %cst_116 = arith.constant 1.000000e+00 : f32
    %324 = vector.broadcast %cst_116 : f32 to vector<16x192xf32>
    %325 = arith.addf %324, %323 : vector<16x192xf32>
    %326 = arith.divf %324, %325 : vector<16x192xf32>
    %327 = vector.extract_strided_slice %320 {offsets = [0, 192], sizes = [16, 64], strides = [1, 1]} : vector<16x256xf32> to vector<16x64xf32>
    %328 = math.tanh %327 : vector<16x64xf32>
    %329 = vector.extract_strided_slice %326 {offsets = [0, 0], sizes = [16, 64], strides = [1, 1]} : vector<16x192xf32> to vector<16x64xf32>
    %330 = vector.extract_strided_slice %326 {offsets = [0, 64], sizes = [16, 64], strides = [1, 1]} : vector<16x192xf32> to vector<16x64xf32>
    %331 = vector.extract_strided_slice %326 {offsets = [0, 128], sizes = [16, 64], strides = [1, 1]} : vector<16x192xf32> to vector<16x64xf32>
    %332 = arith.mulf %330, %301 : vector<16x64xf32>
    %333 = arith.mulf %329, %328 : vector<16x64xf32>
    %334 = arith.addf %332, %333 : vector<16x64xf32>
    %335 = math.tanh %334 : vector<16x64xf32>
    %336 = arith.mulf %331, %335 : vector<16x64xf32>
    %c0_117 = arith.constant 0 : index
    %c48_118 = arith.constant 48 : index
    %c0_119 = arith.constant 0 : index
    %337 = vector.load %arg2[%c0_117, %c48_118, %c0_119] : memref<1x128x2xf32, #tpu.memory_space<vmem>>, vector<1x16x1xf32>
    %338 = vector.shape_cast %337 : vector<1x16x1xf32> to vector<16x1xf32>
    %c0_120 = arith.constant 0 : index
    %c48_121 = arith.constant 48 : index
    %c1_122 = arith.constant 1 : index
    %339 = vector.load %arg2[%c0_120, %c48_121, %c1_122] : memref<1x128x2xf32, #tpu.memory_space<vmem>>, vector<1x16x1xf32>
    %340 = vector.shape_cast %339 : vector<1x16x1xf32> to vector<16x1xf32>
    %341 = vector.extract_strided_slice %336 {offsets = [0, 0], sizes = [16, 32], strides = [1, 1]} : vector<16x64xf32> to vector<16x32xf32>
    %342 = vector.broadcast %338 : vector<16x1xf32> to vector<16x32xf32>
    %343 = arith.mulf %341, %342 : vector<16x32xf32>
    %344 = arith.addf %311, %343 : vector<16x32xf32>
    %345 = vector.extract_strided_slice %336 {offsets = [0, 32], sizes = [16, 32], strides = [1, 1]} : vector<16x64xf32> to vector<16x32xf32>
    %346 = vector.broadcast %340 : vector<16x1xf32> to vector<16x32xf32>
    %347 = arith.mulf %345, %346 : vector<16x32xf32>
    %348 = arith.addf %315, %347 : vector<16x32xf32>
    %c64_123 = arith.constant 64 : index
    %c0_124 = arith.constant 0 : index
    %349 = vector.load %arg16[%c64_123, %c0_124] : memref<128x256xbf16, #tpu.memory_space<vmem>>, vector<16x256xbf16>
    %350 = arith.extf %349 : vector<16x256xbf16> to vector<16x256xf32>
    %351 = arith.truncf %336 : vector<16x64xf32> to vector<16x64xbf16>
    %cst_125 = arith.constant dense<0.000000e+00> : vector<16x256xf32>
    %352 = tpu.matmul %351, %214, %cst_125 {dimension_numbers = #tpu.dot_dimension_numbers<[1], [0], [0], [1], [0, 0, 1, 1], [], []>} : vector<16x64xbf16>, vector<64x256xbf16>, vector<16x256xf32> -> vector<16x256xf32>
    %353 = arith.addf %350, %352 : vector<16x256xf32>
    %354 = vector.extract_strided_slice %353 {offsets = [0, 0], sizes = [16, 192], strides = [1, 1]} : vector<16x256xf32> to vector<16x192xf32>
    %355 = arith.negf %354 : vector<16x192xf32>
    %356 = math.exp %355 : vector<16x192xf32>
    %cst_126 = arith.constant 1.000000e+00 : f32
    %357 = vector.broadcast %cst_126 : f32 to vector<16x192xf32>
    %358 = arith.addf %357, %356 : vector<16x192xf32>
    %359 = arith.divf %357, %358 : vector<16x192xf32>
    %360 = vector.extract_strided_slice %353 {offsets = [0, 192], sizes = [16, 64], strides = [1, 1]} : vector<16x256xf32> to vector<16x64xf32>
    %361 = math.tanh %360 : vector<16x64xf32>
    %362 = vector.extract_strided_slice %359 {offsets = [0, 0], sizes = [16, 64], strides = [1, 1]} : vector<16x192xf32> to vector<16x64xf32>
    %363 = vector.extract_strided_slice %359 {offsets = [0, 64], sizes = [16, 64], strides = [1, 1]} : vector<16x192xf32> to vector<16x64xf32>
    %364 = vector.extract_strided_slice %359 {offsets = [0, 128], sizes = [16, 64], strides = [1, 1]} : vector<16x192xf32> to vector<16x64xf32>
    %365 = arith.mulf %363, %334 : vector<16x64xf32>
    %366 = arith.mulf %362, %361 : vector<16x64xf32>
    %367 = arith.addf %365, %366 : vector<16x64xf32>
    %368 = math.tanh %367 : vector<16x64xf32>
    %369 = arith.mulf %364, %368 : vector<16x64xf32>
    %c0_127 = arith.constant 0 : index
    %c64_128 = arith.constant 64 : index
    %c0_129 = arith.constant 0 : index
    %370 = vector.load %arg2[%c0_127, %c64_128, %c0_129] : memref<1x128x2xf32, #tpu.memory_space<vmem>>, vector<1x16x1xf32>
    %371 = vector.shape_cast %370 : vector<1x16x1xf32> to vector<16x1xf32>
    %c0_130 = arith.constant 0 : index
    %c64_131 = arith.constant 64 : index
    %c1_132 = arith.constant 1 : index
    %372 = vector.load %arg2[%c0_130, %c64_131, %c1_132] : memref<1x128x2xf32, #tpu.memory_space<vmem>>, vector<1x16x1xf32>
    %373 = vector.shape_cast %372 : vector<1x16x1xf32> to vector<16x1xf32>
    %374 = vector.extract_strided_slice %369 {offsets = [0, 0], sizes = [16, 32], strides = [1, 1]} : vector<16x64xf32> to vector<16x32xf32>
    %375 = vector.broadcast %371 : vector<16x1xf32> to vector<16x32xf32>
    %376 = arith.mulf %374, %375 : vector<16x32xf32>
    %377 = arith.addf %344, %376 : vector<16x32xf32>
    %378 = vector.extract_strided_slice %369 {offsets = [0, 32], sizes = [16, 32], strides = [1, 1]} : vector<16x64xf32> to vector<16x32xf32>
    %379 = vector.broadcast %373 : vector<16x1xf32> to vector<16x32xf32>
    %380 = arith.mulf %378, %379 : vector<16x32xf32>
    %381 = arith.addf %348, %380 : vector<16x32xf32>
    %c80_133 = arith.constant 80 : index
    %c0_134 = arith.constant 0 : index
    %382 = vector.load %arg16[%c80_133, %c0_134] : memref<128x256xbf16, #tpu.memory_space<vmem>>, vector<16x256xbf16>
    %383 = arith.extf %382 : vector<16x256xbf16> to vector<16x256xf32>
    %384 = arith.truncf %369 : vector<16x64xf32> to vector<16x64xbf16>
    %cst_135 = arith.constant dense<0.000000e+00> : vector<16x256xf32>
    %385 = tpu.matmul %384, %214, %cst_135 {dimension_numbers = #tpu.dot_dimension_numbers<[1], [0], [0], [1], [0, 0, 1, 1], [], []>} : vector<16x64xbf16>, vector<64x256xbf16>, vector<16x256xf32> -> vector<16x256xf32>
    %386 = arith.addf %383, %385 : vector<16x256xf32>
    %387 = vector.extract_strided_slice %386 {offsets = [0, 0], sizes = [16, 192], strides = [1, 1]} : vector<16x256xf32> to vector<16x192xf32>
    %388 = arith.negf %387 : vector<16x192xf32>
    %389 = math.exp %388 : vector<16x192xf32>
    %cst_136 = arith.constant 1.000000e+00 : f32
    %390 = vector.broadcast %cst_136 : f32 to vector<16x192xf32>
    %391 = arith.addf %390, %389 : vector<16x192xf32>
    %392 = arith.divf %390, %391 : vector<16x192xf32>
    %393 = vector.extract_strided_slice %386 {offsets = [0, 192], sizes = [16, 64], strides = [1, 1]} : vector<16x256xf32> to vector<16x64xf32>
    %394 = math.tanh %393 : vector<16x64xf32>
    %395 = vector.extract_strided_slice %392 {offsets = [0, 0], sizes = [16, 64], strides = [1, 1]} : vector<16x192xf32> to vector<16x64xf32>
    %396 = vector.extract_strided_slice %392 {offsets = [0, 64], sizes = [16, 64], strides = [1, 1]} : vector<16x192xf32> to vector<16x64xf32>
    %397 = vector.extract_strided_slice %392 {offsets = [0, 128], sizes = [16, 64], strides = [1, 1]} : vector<16x192xf32> to vector<16x64xf32>
    %398 = arith.mulf %396, %367 : vector<16x64xf32>
    %399 = arith.mulf %395, %394 : vector<16x64xf32>
    %400 = arith.addf %398, %399 : vector<16x64xf32>
    %401 = math.tanh %400 : vector<16x64xf32>
    %402 = arith.mulf %397, %401 : vector<16x64xf32>
    %c0_137 = arith.constant 0 : index
    %c80_138 = arith.constant 80 : index
    %c0_139 = arith.constant 0 : index
    %403 = vector.load %arg2[%c0_137, %c80_138, %c0_139] : memref<1x128x2xf32, #tpu.memory_space<vmem>>, vector<1x16x1xf32>
    %404 = vector.shape_cast %403 : vector<1x16x1xf32> to vector<16x1xf32>
    %c0_140 = arith.constant 0 : index
    %c80_141 = arith.constant 80 : index
    %c1_142 = arith.constant 1 : index
    %405 = vector.load %arg2[%c0_140, %c80_141, %c1_142] : memref<1x128x2xf32, #tpu.memory_space<vmem>>, vector<1x16x1xf32>
    %406 = vector.shape_cast %405 : vector<1x16x1xf32> to vector<16x1xf32>
    %407 = vector.extract_strided_slice %402 {offsets = [0, 0], sizes = [16, 32], strides = [1, 1]} : vector<16x64xf32> to vector<16x32xf32>
    %408 = vector.broadcast %404 : vector<16x1xf32> to vector<16x32xf32>
    %409 = arith.mulf %407, %408 : vector<16x32xf32>
    %410 = arith.addf %377, %409 : vector<16x32xf32>
    %411 = vector.extract_strided_slice %402 {offsets = [0, 32], sizes = [16, 32], strides = [1, 1]} : vector<16x64xf32> to vector<16x32xf32>
    %412 = vector.broadcast %406 : vector<16x1xf32> to vector<16x32xf32>
    %413 = arith.mulf %411, %412 : vector<16x32xf32>
    %414 = arith.addf %381, %413 : vector<16x32xf32>
    %c96_143 = arith.constant 96 : index
    %c0_144 = arith.constant 0 : index
    %415 = vector.load %arg16[%c96_143, %c0_144] : memref<128x256xbf16, #tpu.memory_space<vmem>>, vector<16x256xbf16>
    %416 = arith.extf %415 : vector<16x256xbf16> to vector<16x256xf32>
    %417 = arith.truncf %402 : vector<16x64xf32> to vector<16x64xbf16>
    %cst_145 = arith.constant dense<0.000000e+00> : vector<16x256xf32>
    %418 = tpu.matmul %417, %214, %cst_145 {dimension_numbers = #tpu.dot_dimension_numbers<[1], [0], [0], [1], [0, 0, 1, 1], [], []>} : vector<16x64xbf16>, vector<64x256xbf16>, vector<16x256xf32> -> vector<16x256xf32>
    %419 = arith.addf %416, %418 : vector<16x256xf32>
    %420 = vector.extract_strided_slice %419 {offsets = [0, 0], sizes = [16, 192], strides = [1, 1]} : vector<16x256xf32> to vector<16x192xf32>
    %421 = arith.negf %420 : vector<16x192xf32>
    %422 = math.exp %421 : vector<16x192xf32>
    %cst_146 = arith.constant 1.000000e+00 : f32
    %423 = vector.broadcast %cst_146 : f32 to vector<16x192xf32>
    %424 = arith.addf %423, %422 : vector<16x192xf32>
    %425 = arith.divf %423, %424 : vector<16x192xf32>
    %426 = vector.extract_strided_slice %419 {offsets = [0, 192], sizes = [16, 64], strides = [1, 1]} : vector<16x256xf32> to vector<16x64xf32>
    %427 = math.tanh %426 : vector<16x64xf32>
    %428 = vector.extract_strided_slice %425 {offsets = [0, 0], sizes = [16, 64], strides = [1, 1]} : vector<16x192xf32> to vector<16x64xf32>
    %429 = vector.extract_strided_slice %425 {offsets = [0, 64], sizes = [16, 64], strides = [1, 1]} : vector<16x192xf32> to vector<16x64xf32>
    %430 = vector.extract_strided_slice %425 {offsets = [0, 128], sizes = [16, 64], strides = [1, 1]} : vector<16x192xf32> to vector<16x64xf32>
    %431 = arith.mulf %429, %400 : vector<16x64xf32>
    %432 = arith.mulf %428, %427 : vector<16x64xf32>
    %433 = arith.addf %431, %432 : vector<16x64xf32>
    %434 = math.tanh %433 : vector<16x64xf32>
    %435 = arith.mulf %430, %434 : vector<16x64xf32>
    %c0_147 = arith.constant 0 : index
    %c96_148 = arith.constant 96 : index
    %c0_149 = arith.constant 0 : index
    %436 = vector.load %arg2[%c0_147, %c96_148, %c0_149] : memref<1x128x2xf32, #tpu.memory_space<vmem>>, vector<1x16x1xf32>
    %437 = vector.shape_cast %436 : vector<1x16x1xf32> to vector<16x1xf32>
    %c0_150 = arith.constant 0 : index
    %c96_151 = arith.constant 96 : index
    %c1_152 = arith.constant 1 : index
    %438 = vector.load %arg2[%c0_150, %c96_151, %c1_152] : memref<1x128x2xf32, #tpu.memory_space<vmem>>, vector<1x16x1xf32>
    %439 = vector.shape_cast %438 : vector<1x16x1xf32> to vector<16x1xf32>
    %440 = vector.extract_strided_slice %435 {offsets = [0, 0], sizes = [16, 32], strides = [1, 1]} : vector<16x64xf32> to vector<16x32xf32>
    %441 = vector.broadcast %437 : vector<16x1xf32> to vector<16x32xf32>
    %442 = arith.mulf %440, %441 : vector<16x32xf32>
    %443 = arith.addf %410, %442 : vector<16x32xf32>
    %444 = vector.extract_strided_slice %435 {offsets = [0, 32], sizes = [16, 32], strides = [1, 1]} : vector<16x64xf32> to vector<16x32xf32>
    %445 = vector.broadcast %439 : vector<16x1xf32> to vector<16x32xf32>
    %446 = arith.mulf %444, %445 : vector<16x32xf32>
    %447 = arith.addf %414, %446 : vector<16x32xf32>
    %c112_153 = arith.constant 112 : index
    %c0_154 = arith.constant 0 : index
    %448 = vector.load %arg16[%c112_153, %c0_154] : memref<128x256xbf16, #tpu.memory_space<vmem>>, vector<16x256xbf16>
    %449 = arith.extf %448 : vector<16x256xbf16> to vector<16x256xf32>
    %450 = arith.truncf %435 : vector<16x64xf32> to vector<16x64xbf16>
    %cst_155 = arith.constant dense<0.000000e+00> : vector<16x256xf32>
    %451 = tpu.matmul %450, %214, %cst_155 {dimension_numbers = #tpu.dot_dimension_numbers<[1], [0], [0], [1], [0, 0, 1, 1], [], []>} : vector<16x64xbf16>, vector<64x256xbf16>, vector<16x256xf32> -> vector<16x256xf32>
    %452 = arith.addf %449, %451 : vector<16x256xf32>
    %453 = vector.extract_strided_slice %452 {offsets = [0, 0], sizes = [16, 192], strides = [1, 1]} : vector<16x256xf32> to vector<16x192xf32>
    %454 = arith.negf %453 : vector<16x192xf32>
    %455 = math.exp %454 : vector<16x192xf32>
    %cst_156 = arith.constant 1.000000e+00 : f32
    %456 = vector.broadcast %cst_156 : f32 to vector<16x192xf32>
    %457 = arith.addf %456, %455 : vector<16x192xf32>
    %458 = arith.divf %456, %457 : vector<16x192xf32>
    %459 = vector.extract_strided_slice %452 {offsets = [0, 192], sizes = [16, 64], strides = [1, 1]} : vector<16x256xf32> to vector<16x64xf32>
    %460 = math.tanh %459 : vector<16x64xf32>
    %461 = vector.extract_strided_slice %458 {offsets = [0, 0], sizes = [16, 64], strides = [1, 1]} : vector<16x192xf32> to vector<16x64xf32>
    %462 = vector.extract_strided_slice %458 {offsets = [0, 64], sizes = [16, 64], strides = [1, 1]} : vector<16x192xf32> to vector<16x64xf32>
    %463 = vector.extract_strided_slice %458 {offsets = [0, 128], sizes = [16, 64], strides = [1, 1]} : vector<16x192xf32> to vector<16x64xf32>
    %464 = arith.mulf %462, %433 : vector<16x64xf32>
    %465 = arith.mulf %461, %460 : vector<16x64xf32>
    %466 = arith.addf %464, %465 : vector<16x64xf32>
    %467 = math.tanh %466 : vector<16x64xf32>
    %468 = arith.mulf %463, %467 : vector<16x64xf32>
    %c0_157 = arith.constant 0 : index
    %c112_158 = arith.constant 112 : index
    %c0_159 = arith.constant 0 : index
    %469 = vector.load %arg2[%c0_157, %c112_158, %c0_159] : memref<1x128x2xf32, #tpu.memory_space<vmem>>, vector<1x16x1xf32>
    %470 = vector.shape_cast %469 : vector<1x16x1xf32> to vector<16x1xf32>
    %c0_160 = arith.constant 0 : index
    %c112_161 = arith.constant 112 : index
    %c1_162 = arith.constant 1 : index
    %471 = vector.load %arg2[%c0_160, %c112_161, %c1_162] : memref<1x128x2xf32, #tpu.memory_space<vmem>>, vector<1x16x1xf32>
    %472 = vector.shape_cast %471 : vector<1x16x1xf32> to vector<16x1xf32>
    %473 = vector.extract_strided_slice %468 {offsets = [0, 0], sizes = [16, 32], strides = [1, 1]} : vector<16x64xf32> to vector<16x32xf32>
    %474 = vector.broadcast %470 : vector<16x1xf32> to vector<16x32xf32>
    %475 = arith.mulf %473, %474 : vector<16x32xf32>
    %476 = arith.addf %443, %475 : vector<16x32xf32>
    %477 = vector.extract_strided_slice %468 {offsets = [0, 32], sizes = [16, 32], strides = [1, 1]} : vector<16x64xf32> to vector<16x32xf32>
    %478 = vector.broadcast %472 : vector<16x1xf32> to vector<16x32xf32>
    %479 = arith.mulf %477, %478 : vector<16x32xf32>
    %480 = arith.addf %447, %479 : vector<16x32xf32>
    %cst_163 = arith.constant 1.250000e-01 : f32
    %481 = vector.broadcast %cst_163 : f32 to vector<16x32xf32>
    %482 = arith.mulf %476, %481 : vector<16x32xf32>
    %cst_164 = arith.constant 1.250000e-01 : f32
    %483 = vector.broadcast %cst_164 : f32 to vector<16x32xf32>
    %484 = arith.mulf %480, %483 : vector<16x32xf32>
    %c0_165 = arith.constant 0 : index
    %c0_166 = arith.constant 0 : index
    %485 = vector.load %arg9[%c0_165, %c0_166] : memref<64x32xf32, #tpu.memory_space<vmem>>, vector<32x32xf32>
    %cst_167 = arith.constant dense<0.000000e+00> : vector<16x32xf32>
    %486 = tpu.matmul %482, %485, %cst_167 {dimension_numbers = #tpu.dot_dimension_numbers<[1], [0], [0], [1], [0, 0, 1, 1], [], []>} : vector<16x32xf32>, vector<32x32xf32>, vector<16x32xf32> -> vector<16x32xf32>
    %c32_168 = arith.constant 32 : index
    %c0_169 = arith.constant 0 : index
    %487 = vector.load %arg9[%c32_168, %c0_169] : memref<64x32xf32, #tpu.memory_space<vmem>>, vector<32x32xf32>
    %cst_170 = arith.constant dense<0.000000e+00> : vector<16x32xf32>
    %488 = tpu.matmul %484, %487, %cst_170 {dimension_numbers = #tpu.dot_dimension_numbers<[1], [0], [0], [1], [0, 0, 1, 1], [], []>} : vector<16x32xf32>, vector<32x32xf32>, vector<16x32xf32> -> vector<16x32xf32>
    %489 = arith.addf %486, %488 : vector<16x32xf32>
    %c0_171 = arith.constant 0 : index
    %c0_172 = arith.constant 0 : index
    %490 = vector.load %arg10[%c0_171, %c0_172] : memref<1x32xf32, #tpu.memory_space<vmem>>, vector<1x32xf32>
    %491 = vector.broadcast %490 : vector<1x32xf32> to vector<16x32xf32>
    %492 = arith.addf %489, %491 : vector<16x32xf32>
    %493 = math.tanh %492 : vector<16x32xf32>
    %c0_173 = arith.constant 0 : index
    %c0_174 = arith.constant 0 : index
    %494 = vector.load %arg11[%c0_173, %c0_174] : memref<32x32xf32, #tpu.memory_space<vmem>>, vector<32x32xf32>
    %cst_175 = arith.constant dense<0.000000e+00> : vector<16x32xf32>
    %495 = tpu.matmul %493, %494, %cst_175 {dimension_numbers = #tpu.dot_dimension_numbers<[1], [0], [0], [1], [0, 0, 1, 1], [], []>} : vector<16x32xf32>, vector<32x32xf32>, vector<16x32xf32> -> vector<16x32xf32>
    %c0_176 = arith.constant 0 : index
    %c0_177 = arith.constant 0 : index
    %496 = vector.load %arg12[%c0_176, %c0_177] : memref<1x32xf32, #tpu.memory_space<vmem>>, vector<1x32xf32>
    %497 = vector.broadcast %496 : vector<1x32xf32> to vector<16x32xf32>
    %498 = arith.addf %495, %497 : vector<16x32xf32>
    %499 = math.tanh %498 : vector<16x32xf32>
    %c0_178 = arith.constant 0 : index
    %c0_179 = arith.constant 0 : index
    %500 = vector.load %arg13[%c0_178, %c0_179] : memref<32x2xf32, #tpu.memory_space<vmem>>, vector<32x2xf32>
    %cst_180 = arith.constant dense<0.000000e+00> : vector<16x2xf32>
    %501 = tpu.matmul %499, %500, %cst_180 {dimension_numbers = #tpu.dot_dimension_numbers<[1], [0], [0], [1], [0, 0, 1, 1], [], []>} : vector<16x32xf32>, vector<32x2xf32>, vector<16x2xf32> -> vector<16x2xf32>
    %c0_181 = arith.constant 0 : index
    %c0_182 = arith.constant 0 : index
    %502 = vector.load %arg14[%c0_181, %c0_182] : memref<1x2xf32, #tpu.memory_space<vmem>>, vector<1x2xf32>
    %503 = vector.broadcast %502 : vector<1x2xf32> to vector<16x2xf32>
    %504 = arith.addf %501, %503 : vector<16x2xf32>
    %c0_183 = arith.constant 0 : index
    %c0_184 = arith.constant 0 : index
    %c0_185 = arith.constant 0 : index
    %505 = vector.load %arg15[%c0_183, %c0_184, %c0_185] : memref<1x16x2xf32, #tpu.memory_space<vmem>>, vector<1x16x2xf32>
    %506 = vector.shape_cast %505 : vector<1x16x2xf32> to vector<16x2xf32>
    %507 = vector.shape_cast %504 : vector<16x2xf32> to vector<1x16x2xf32>
    tpu.vector_store %arg15[%c0_183, %c0_184, %c0_185], %507 {strides = array<i32>} : memref<1x16x2xf32, #tpu.memory_space<vmem>>, vector<1x16x2xf32>,
    return
  }
  func.func @transform_0(%arg0: i32) -> (i32, i32, i32) {
    %c0_i32 = arith.constant 0 : i32
    %c0_i32_0 = arith.constant 0 : i32
    %c0_i32_1 = arith.constant 0 : i32
    return %arg0, %c0_i32, %c0_i32_0 : i32, i32, i32
  }
  func.func @transform_1(%arg0: i32) -> (i32, i32, i32) {
    %c0_i32 = arith.constant 0 : i32
    %c0_i32_0 = arith.constant 0 : i32
    %c0_i32_1 = arith.constant 0 : i32
    return %arg0, %c0_i32, %c0_i32_0 : i32, i32, i32
  }
  func.func @transform_2(%arg0: i32) -> (i32, i32) {
    %c0_i32 = arith.constant 0 : i32
    %c0_i32_0 = arith.constant 0 : i32
    %c0_i32_1 = arith.constant 0 : i32
    return %c0_i32, %c0_i32_0 : i32, i32
  }
  func.func @transform_3(%arg0: i32) -> (i32, i32) {
    %c0_i32 = arith.constant 0 : i32
    %c0_i32_0 = arith.constant 0 : i32
    %c0_i32_1 = arith.constant 0 : i32
    return %c0_i32, %c0_i32_0 : i32, i32
  }
  func.func @transform_4(%arg0: i32) -> (i32, i32) {
    %c0_i32 = arith.constant 0 : i32
    %c0_i32_0 = arith.constant 0 : i32
    %c0_i32_1 = arith.constant 0 : i32
    return %c0_i32, %c0_i32_0 : i32, i32
  }
  func.func @transform_5(%arg0: i32) -> (i32, i32) {
    %c0_i32 = arith.constant 0 : i32
    %c0_i32_0 = arith.constant 0 : i32
    %c0_i32_1 = arith.constant 0 : i32
    return %c0_i32, %c0_i32_0 : i32, i32
  }
  func.func @transform_6(%arg0: i32) -> (i32, i32) {
    %c0_i32 = arith.constant 0 : i32
    %c0_i32_0 = arith.constant 0 : i32
    %c0_i32_1 = arith.constant 0 : i32
    return %c0_i32, %c0_i32_0 : i32, i32
  }
  func.func @transform_7(%arg0: i32) -> (i32, i32) {
    %c0_i32 = arith.constant 0 : i32
    %c0_i32_0 = arith.constant 0 : i32
    %c0_i32_1 = arith.constant 0 : i32
    return %c0_i32, %c0_i32_0 : i32, i32
  }
  func.func @transform_8(%arg0: i32) -> (i32, i32) {
    %c0_i32 = arith.constant 0 : i32
    %c0_i32_0 = arith.constant 0 : i32
    %c0_i32_1 = arith.constant 0 : i32
    return %c0_i32, %c0_i32_0 : i32, i32
  }
  func.func @transform_9(%arg0: i32) -> (i32, i32) {
    %c0_i32 = arith.constant 0 : i32
    %c0_i32_0 = arith.constant 0 : i32
    %c0_i32_1 = arith.constant 0 : i32
    return %c0_i32, %c0_i32_0 : i32, i32
  }
  func.func @transform_10(%arg0: i32) -> (i32, i32) {
    %c0_i32 = arith.constant 0 : i32
    %c0_i32_0 = arith.constant 0 : i32
    %c0_i32_1 = arith.constant 0 : i32
    return %c0_i32, %c0_i32_0 : i32, i32
  }
  func.func @transform_11(%arg0: i32) -> (i32, i32) {
    %c0_i32 = arith.constant 0 : i32
    %c0_i32_0 = arith.constant 0 : i32
    %c0_i32_1 = arith.constant 0 : i32
    return %c0_i32, %c0_i32_0 : i32, i32
  }
  func.func @transform_12(%arg0: i32) -> (i32, i32) {
    %c0_i32 = arith.constant 0 : i32
    %c0_i32_0 = arith.constant 0 : i32
    %c0_i32_1 = arith.constant 0 : i32
    return %c0_i32, %c0_i32_0 : i32, i32
  }
  func.func @transform_13(%arg0: i32) -> (i32, i32) {
    %c0_i32 = arith.constant 0 : i32
    %c0_i32_0 = arith.constant 0 : i32
    %c0_i32_1 = arith.constant 0 : i32
    return %c0_i32, %c0_i32_0 : i32, i32
  }
  func.func @transform_14(%arg0: i32) -> (i32, i32, i32) {
    %c0_i32 = arith.constant 0 : i32
    %c0_i32_0 = arith.constant 0 : i32
    %c0_i32_1 = arith.constant 0 : i32
    return %arg0, %c0_i32, %c0_i32_0 : i32, i32, i32
  }
}

</mosaic_0001>

<bundles_post_ra>
// kernel: tpu_custom_call.1
= control target key start
LH: loop header
LB: loop body
LE: loop exit
PB: predicated region body
PF: predicated region fallthrough
CT: control target
= control target key end

     0   :  { %19 = vsyncpa [#allocation5], 0  ;;  %s5223_s0 = inlined_call_operand.vmem [shape: bf16[1,128,64], index: 0, kind: input, shape index: {}]   ;;  %s5224_s1 = inlined_call_operand.vmem [shape: f32[1,128,2], index: 1, kind: input, shape index: {}]   ;;  %s5225_s2 = inlined_call_operand.vmem [shape: bf16[64,256], index: 2, kind: input, shape index: {}]   ;;  %s5226_s3 = inlined_call_operand.vmem [shape: bf16[64,256], index: 3, kind: input, shape index: {}]   ;;  %s5227_s4 = inlined_call_operand.hbm [shape: f32[1,256], index: 4, kind: input, shape index: {}]   ;;  %s5228_s5 = inlined_call_operand.vmem [shape: bf16[128,256], index: 5, kind: input, shape index: {}]   ;;  %s5229_s6 = inlined_call_operand.vmem [shape: bf16[64,256], index: 6, kind: input, shape index: {}]   ;;  %s5230_s7 = inlined_call_operand.hbm [shape: f32[1,256], index: 7, kind: input, shape index: {}]   ;;  %s5231_s8 = inlined_call_operand.vmem [shape: f32[64,32], index: 8, kind: input, shape index: {}]   ;;  %s5232_s9 = inlined_call_operand.hbm [shape: f32[1,32], index: 9, kind: input, shape index: {}]   ;;  %s5233_s10 = inlined_call_operand.hbm [shape: f32[32,32], index: 10, kind: input, shape index: {}]   ;;  %s5234_s11 = inlined_call_operand.vmem [shape: f32[1,32], index: 11, kind: input, shape index: {}]   ;;  %s5235_s12 = inlined_call_operand.vmem [shape: f32[32,2], index: 12, kind: input, shape index: {}]   ;;  %s5236_s13 = inlined_call_operand.vmem [shape: f32[1,2], index: 13, kind: input, shape index: {}]   ;;  %s5237_s14 = inlined_call_operand.vmem [shape: f32[1,16,2], index: 14, kind: output, shape index: {}]  }
   0x1   :  { %20 = vsyncpa [#allocation7], 0 }
   0x2   :  { %21 = vsyncpa [#allocation10], 0  ;;  %s4094_s29 = smov [#allocation6]   ;;  %s4095_s15 = smov [#allocation4]  }
   0x3   :  { %s50_s30 = sshll.u32 %s4094_s29, 4  ;;  %s36_s16 = sshll.u32 %s4095_s15, 4  ;;  %s51_s30 = int_to_ptr.vmem [resolvable:$true] %s50_s30  ;;  %s37_s16 = int_to_ptr.vmem [resolvable:$true] %s36_s16 }
   0x4   :  { %s4000_s19 = scalar_lea.hbm %s5230_s7, 32 }
   0x5   :  { %p4001_p0 = scmp.ne.s32.totalorder %s5230_s7, %s4000_s19  ;;  %p4004_p1 = scmp.lt.u32.totalorder %s4000_s19, %s5230_s7 }
   0x7   :  { %p4006_p2 = pnand %p4004_p1, %p4001_p0 }
   0x9   :  { %4009 = shalt.err (!%p4006_p2)
}
   0xa   :  { %s4010_s24 = scalar_lea.vmem %s51_s30, 32  ;;  %p4015_p4 = scmp.lt.s32.totalorder %s51_s30, %s51_s30 }
   0xb   :  { %p4011_p3 = scmp.ne.s32.totalorder %s51_s30, %s4010_s24  ;;  %p4016_p5 = scmp.lt.s32.totalorder %s4010_s24, %s4010_s24 }
   0xd   :  { %p4017_p6 = por %p4016_p5, %p4015_p4 }
   0xf   :  { %p4018_p7 = pnand %p4017_p6, %p4011_p3 }
  0x11   :  { %4021 = shalt.err (!%p4018_p7)
}
  0x12   :  { %53 = dma.hbm_to_vmem [thread:$0]  %s5230_s7, 32, %s51_s30, [#allocation7]  }
  0x13   :  { %s4022_s29 = scalar_lea.hbm %s5227_s4, 32 }
  0x14   :  { %p4023_p8 = scmp.ne.s32.totalorder %s5227_s4, %s4022_s29  ;;  %p4026_p9 = scmp.lt.u32.totalorder %s4022_s29, %s5227_s4 }
  0x16   :  { %p4028_p10 = pnand %p4026_p9, %p4023_p8 }
  0x18   :  { %4031 = shalt.err (!%p4028_p10)
}
  0x19   :  { %s4032_s20 = scalar_lea.vmem %s37_s16, 32  ;;  %p4037_p12 = scmp.lt.s32.totalorder %s37_s16, %s37_s16 }
  0x1a   :  { %p4033_p11 = scmp.ne.s32.totalorder %s37_s16, %s4032_s20  ;;  %p4038_p13 = scmp.lt.s32.totalorder %s4032_s20, %s4032_s20 }
  0x1c   :  { %p4039_p0 = por %p4038_p13, %p4037_p12 }
  0x1e   :  { %p4040_p1 = pnand %p4039_p0, %p4033_p11 }
  0x20   :  { %4043 = shalt.err (!%p4040_p1)
}
  0x21   :  { %39 = dma.hbm_to_vmem [thread:$0]  %s5227_s4, 32, %s37_s16, [#allocation5]  }
  0x22   :  { %s4096_s21 = smov [#allocation8]   ;;  %s4097_s23 = smov [#allocation9]  }
  0x23   :  { %s62_s22 = sshll.u32 %s4096_s21, 4  ;;  %s71_s24 = sshll.u32 %s4097_s23, 4  ;;  %s63_s22 = int_to_ptr.vmem [resolvable:$true] %s62_s22  ;;  %s4203_s24 = int_to_ptr.vmem [resolvable:$true] %s71_s24 }
  0x24   :  { %s4044_s27 = scalar_lea.hbm %s5232_s9, 16 }
  0x25   :  { %p4045_p2 = scmp.ne.s32.totalorder %s5232_s9, %s4044_s27  ;;  %p4048_p3 = scmp.lt.u32.totalorder %s4044_s27, %s5232_s9 }
  0x27   :  { %p4050_p4 = pnand %p4048_p3, %p4045_p2 }
  0x29   :  { %4053 = shalt.err (!%p4050_p4)
}
  0x2a   :  { %s4054_s4 = scalar_lea.vmem %s63_s22, 16  ;;  %s4058_s16 = scalar_lea.vmem %s63_s22, 32 }
  0x2b   :  { %p4055_p5 = scmp.ne.s32.totalorder %s63_s22, %s4054_s4  ;;  %p4059_p6 = scmp.lt.s32.totalorder %s63_s22, %s63_s22 }
  0x2c   :  { %p4060_p7 = scmp.lt.s32.totalorder %s4058_s16, %s4054_s4 }
  0x2e   :  { %p4061_p8 = por %p4060_p7, %p4059_p6 }
  0x30   :  { %p4062_p9 = pnand %p4061_p8, %p4055_p5 }
  0x32   :  { %4065 = shalt.err (!%p4062_p9)
}
  0x33   :  { %65 = dma.hbm_to_vmem [thread:$0]  %s5232_s9, 16, %s63_s22, [#allocation7]  }
  0x34   :  { %s4066_s30 = scalar_lea.hbm %s5233_s10, 512 }
  0x35   :  { %p4067_p10 = scmp.ne.s32.totalorder %s5233_s10, %s4066_s30  ;;  %p4070_p11 = scmp.lt.u32.totalorder %s4066_s30, %s5233_s10 }
  0x37   :  { %p4072_p12 = pnand %p4070_p11, %p4067_p10 }
  0x39   :  { %4075 = shalt.err (!%p4072_p12)
}
  0x3a   :  { %s4076_s27 = scalar_lea.vmem %s4203_s24, 512  ;;  %p4081_p0 = scmp.lt.s32.totalorder %s4203_s24, %s4203_s24 }
  0x3b   :  { %p4077_p13 = scmp.ne.s32.totalorder %s4203_s24, %s4076_s27  ;;  %p4082_p1 = scmp.lt.s32.totalorder %s4076_s27, %s4076_s27 }
  0x3d   :  { %p4083_p2 = por %p4082_p1, %p4081_p0 }
  0x3f   :  { %p4084_p3 = pnand %p4083_p2, %p4077_p13 }
  0x41   :  { %4087 = shalt.err (!%p4084_p3)
}
  0x42   :  { %s4098_s9 = smov 128   ;;  %s4099_s22 = smov 8  }
  0x43   :  { %77 = dma.hbm_to_vmem [thread:$0]  %s5233_s10, 512, %s4203_s24, [#allocation10], %s4098_s9, %s4098_s9, %s4099_s22  }
  0x44   :  { %4088 = dma.done.wait [#allocation5], 32  }
  0x45   :  { %4089 = vsyncadd [#allocation5], 4294967264 }
  0x46   :  { %4090 = dma.done.wait [#allocation7], 48  }
  0x47   :  { %4091 = vsyncadd [#allocation7], 4294967248 }
  0x48   :  { %4092 = dma.done.wait [#allocation10], 512  }
  0x49   :  { %4093 = vsyncadd [#allocation10], 4294966784  ;;  %v4100_v0 = vmov 0   ;;  %v3529_v1 = vld [vmem:[%s5225_s2 + $0x4] ss:$8 sps:$4 sm:$0xff]   ;;  %vm213_vm0 = vcmask 523264   ;;  %v123_v18 = vlaneseq }
  0x4a   :  { %270 = vmatprep.mubr.bf16.mxu0 %v4100_v0  ;;  %472 = vmatprep.mubr.bf16.mxu1 %v4100_v0  ;;  %v3531_v2 = vld [vmem:[%s5225_s2] ss:$8 sps:$4 sm:$0xff]   ;;  %v3532_v3 = vld [vmem:[%s5225_s2 + $0x14] ss:$8 sps:$4 sm:$0xff]   ;;  %v3534_v4 = vld [vmem:[%s5225_s2 + $0x10] ss:$8 sps:$4 sm:$0xff]  }
  0x4b   :  { %238 = vmatprep.subr.bf16.mxu0 %v3529_v1  ;;  %v4251_v5 = vld [vmem:[%s5226_s3 + $0x4] ss:$8 sps:$4 sm:$0xff]   ;;  %v4256_v6 = vld [vmem:[%s5226_s3] ss:$8 sps:$4 sm:$0xff]   ;;  %v4266_v8 = vld [vmem:[%s5226_s3 + $0x14] ss:$8 sps:$4 sm:$0xff]  }
  0x4c   :  { %239 = vmatpush1.bf16.msra.mxu0 %v3531_v2  ;;  %v3538_v7 = vld [vmem:[%s5225_s2 + $0x24] ss:$8 sps:$4 sm:$0xff]   ;;  %440 = vmatprep.subr.bf16.mxu1 %v4251_v5  ;;  %v4271_v9 = vld [vmem:[%s5226_s3 + $0x10] ss:$8 sps:$4 sm:$0xff]   ;;  %v3540_v10 = vld [vmem:[%s5225_s2 + $0x20] ss:$8 sps:$4 sm:$0xff]  }
  0x4d   :  { %240 = vmatprep.subr.bf16.mxu0 %v3532_v3  ;;  %441 = vmatpush1.bf16.msra.mxu1 %v4256_v6  ;;  %v3544_v11 = vld [vmem:[%s5225_s2 + $0x34] ss:$8 sps:$4 sm:$0xff]   ;;  %v4283_v12 = vld [vmem:[%s5226_s3 + $0x24] ss:$8 sps:$4 sm:$0xff]   ;;  %v4289_v13 = vld [vmem:[%s5226_s3 + $0x20] ss:$8 sps:$4 sm:$0xff]  }
  0x4e   :  { %442 = vmatprep.subr.bf16.mxu1 %v4266_v8  ;;  %v3546_v14 = vld [vmem:[%s5225_s2 + $0x30] ss:$8 sps:$4 sm:$0xff]   ;;  %v4298_v15 = vld [vmem:[%s5226_s3 + $0x34] ss:$8 sps:$4 sm:$0xff]   ;;  %v3550_v16 = vld [vmem:[%s5223_s0] sm:$0xff]   ;;  %v4333_v19 = vshrl.u32 %v123_v18, 7 }
  0x4f   :  { %v4306_v17 = vld [vmem:[%s5226_s3 + $0x30] ss:$8 sps:$4 sm:$0xff]   ;;  %v121_v21 = vld [vmem:[#allocation4] sm:$0x3]  ;;  %s4101_s2 = smov 64   ;;  %v3554_v61 = vld [vmem:[%s5223_s0 + $0x8] sm:$0xff]  }
  0x50   :  { %241 = vmatpush1.bf16.msra.mxu0 %v3534_v4  ;;  %v125_v20 = vsub.s32 0, %v4333_v19  ;;  %v129_v22 = vsub.s32 1, %v4333_v19  ;;  %vm553_vm1 = vcmask 1048064   ;;  %s4103_s20 = smov 96   ;;  %vm2899_vm2 = vcmask 261120  }
  0x51   :  { %242 = vmatprep.subr.bf16.mxu0 %v3538_v7  ;;  %443 = vmatpush1.bf16.msra.mxu1 %v4271_v9  ;;  %vm3257_vm3 = vcmask 15360  }
  0x52   :  { %444 = vmatprep.subr.bf16.mxu1 %v4283_v12  ;;  %v4339_v23 = vrot.slane %v121_v21, %v125_v20  ;;  %v4343_v25 = vrot.slane %v121_v21, %v129_v22 }
  0x54   :  { %243 = vmatpush1.bf16.msra.mxu0 %v3540_v10 }
  0x55   :  { %244 = vmatprep.subr.bf16.mxu0 %v3544_v11  ;;  %445 = vmatpush1.bf16.msra.mxu1 %v4289_v13 }
  0x56   :  { %446 = vmatprep.subr.bf16.mxu1 %v4298_v15 }
  0x58   :  { %245 = vmatpush1.bf16.msra.mxu0 %v3546_v14 }
  0x59   :  { %933 = vmatprep.subr.bf16.mxu0 %v4251_v5  ;;  %447 = vmatpush1.bf16.msra.mxu1 %v4306_v17 }
  0x5a   :  { %564 = vmatprep.subr.bf16.mxu1 %v4251_v5 }
  0x5b   :  { %3283 = vmatmul.mubr.msk.bf16.vlgmr.msra.gmra.mrb[0].mxu0 %vm213_vm0, %v3550_v16 }
  0x5c   :  { %280 = vmatprep.mubr.bf16.mxu0 %v4100_v0  ;;  %934 = vmatpush1.bf16.msra.mxu0 %v4256_v6 }
  0x5d   :  { %473 = vmatmul.mubr.bf16.vlgmr.msra.gmra.mrb[0].mxu1 %v4100_v0  ;;  %935 = vmatprep.subr.bf16.mxu0 %v4266_v8 }
  0x5e   :  { %565 = vmatpush1.bf16.msra.mxu1 %v4256_v6  ;;  %596 = vmatprep.mubr.bf16.mxu1 %v4100_v0 }
  0x5f   :  { %566 = vmatprep.subr.bf16.mxu1 %v4266_v8 }
  0x60   :  { %936 = vmatpush1.bf16.msra.mxu0 %v4271_v9 }
  0x61   :  { %937 = vmatprep.subr.bf16.mxu0 %v4283_v12 }
  0x62   :  { %567 = vmatpush1.bf16.msra.mxu1 %v4271_v9 }
  0x63   :  { %568 = vmatprep.subr.bf16.mxu1 %v4283_v12  ;;  %3284 = vmatmul.mubr.msk.bf16.gmra.mrb[4].mxu0 %vm213_vm0, %v3554_v61 }
  0x64   :  { %938 = vmatpush1.bf16.msra.mxu0 %v4289_v13  ;;  %290 = vmatprep.mubr.bf16.mxu0 %v4100_v0 }
  0x65   :  { %939 = vmatprep.subr.bf16.mxu0 %v4298_v15 }
  0x66   :  { %569 = vmatpush1.bf16.msra.mxu1 %v4289_v13 }
  0x67   :  { %570 = vmatprep.subr.bf16.mxu1 %v4298_v15 }
  0x68   :  { %940 = vmatpush1.bf16.msra.mxu0 %v4306_v17 }
  0x69   :  { %1179 = vmatprep.subr.bf16.mxu0 %v4251_v5 }
  0x6a   :  { %571 = vmatpush1.bf16.msra.mxu1 %v4306_v17 }
  0x6b   :  { %687 = vmatprep.subr.bf16.mxu1 %v4251_v5 }
 0x12e   :  { %v272_v24 = vpop.f32.mrb[0].mxu0 }
 0x12f   :  { %v274_v26 = vpop.f32.mrb[1].mxu0  ;;  %v273_v28 = vadd.f32 %v272_v24, %v4339_v23 }
 0x130   :  { %v276_v27 = vpop.f32.mrb[2].mxu0  ;;  %v474_v31 = vpop.f32.mrb[0].mxu1  ;;  %v275_v32 = vadd.f32 %v274_v26, %v4343_v25 }
 0x131   :  { %v277_v29 = vadd.f32 %v276_v27, %v4339_v23  ;;  %v278_v30 = vpop.f32.mrb[3].mxu0  ;;  %v476_v34 = vpop.f32.mrb[1].mxu1 }
 0x132   :  { %v279_v33 = vadd.f32 %v278_v30, %v4343_v25  ;;  %v478_v36 = vpop.f32.mrb[2].mxu1 }
 0x133   :  { %v351_v35 = vpack.c.bf16 %v277_v29, %v273_v28  ;;  %v480_v38 = vpop.f32.mrb[3].mxu1 }
 0x134   :  { %v352_v37 = vpack.c.bf16 %v279_v33, %v275_v32 }
 0x135   :  { %v393_v39 = vunpack.c.l.bf16 %v351_v35  ;;  %v395_v40 = vunpack.c.h.bf16 %v351_v35 }
 0x136   :  { %v394_v41 = vunpack.c.l.bf16 %v352_v37  ;;  %v396_v42 = vunpack.c.h.bf16 %v352_v37  ;;  %v282_v16 = vpop.f32.mrb[4].mxu0 }
 0x137   :  { %v483_v43 = vadd.f32 %v474_v31, %v393_v39  ;;  %v485_v44 = vadd.f32 %v478_v36, %v395_v40  ;;  %v283_v18 = vadd.f32 %v282_v16, %v4339_v23  ;;  %v284_v21 = vpop.f32.mrb[5].mxu0 }
 0x138   :  { %v484_v45 = vadd.f32 %v476_v34, %v394_v41  ;;  %v486_v46 = vadd.f32 %v480_v38, %v396_v42  ;;  %v285_v24 = vadd.f32 %v284_v21, %v4343_v25  ;;  %v286_v26 = vpop.f32.mrb[6].mxu0 }
 0x139   :  { %v3299_v49 = vmul.f32 -1.442695, %v483_v43  ;;  %v3301_v50 = vmul.f32 -1.442695, %v485_v44  ;;  %v287_v27 = vadd.f32 %v286_v26, %v4339_v23  ;;  %v288_v28 = vpop.f32.mrb[7].mxu0 }
 0x13a   :  { %3596 = vtanh.f32 %v484_v45  ;;  %v3300_v11 = vmul.f32 -1.442695, %v484_v45  ;;  %v3302_v14 = vmul.f32 -1.442695, %v486_v46  ;;  %v289_v29 = vadd.f32 %v288_v28, %v4343_v25 }
 0x13b   :  { %3598 = vtanh.f32 %v486_v46  ;;  %v353_v30 = vpack.c.bf16 %v287_v27, %v283_v18 }
 0x13c   :  { %3600 = vpow2.f32 %v3299_v49  ;;  %v354_v31 = vpack.c.bf16 %v289_v29, %v285_v24 }
 0x13d   :  { %3602 = vpow2.f32 %v3301_v50  ;;  %v557_v43 = vunpack.c.l.bf16 %v353_v30 }
 0x13e   :  { %v558_v44 = vunpack.c.l.bf16 %v354_v31 }
 0x144   :  { %v3597_v47 = vpop.eup %3596 }
 0x145   :  { %517 = vrot.lane.b32.xlu0 %v3597_v47, %s4101_s2  ;;  %v3599_v48 = vpop.eup %3598 }
 0x146   :  { %v3601_v51 = vpop.eup %3600 }
 0x147   :  { %v499_v52 = vadd.f32 1.0, %v3601_v51  ;;  %v3603_v53 = vpop.eup %3602  ;;  %v560_v51 = vunpack.c.h.bf16 %v354_v31 }
 0x148   :  { %v501_v54 = vadd.f32 1.0, %v3603_v53 }
 0x149   :  { %519 = vrot.lane.b32.xlu0 %v3599_v48, %s4101_s2  ;;  %3604 = vrcp.f32 %v499_v52  ;;  %v559_v48 = vunpack.c.h.bf16 %v353_v30 }
 0x14a   :  { %3606 = vrcp.f32 %v501_v54 }
 0x153   :  { %v3605_v55 = vpop.eup %3604 }
 0x154   :  { %v3607_v58 = vpop.eup %3606  ;;  %v513_v62 = vmul.f32 0.0, %v3605_v55 }
 0x155   :  { %v514_v2 = vmul.f32 0.0, %v3607_v58 }
 0x1b7   :  { %v518_v56 = vpop.permute.xlu0 %517 }
 0x1b8   :  { %v523_v57 = vmul.f32 %v3605_v55, %v518_v56 }
 0x1ba   :  { %527 = vrot.lane.b32.xlu1 %v523_v57, %s4101_s2 }
 0x1bb   :  { %v520_v59 = vpop.permute.xlu0 %519 }
 0x1bc   :  { %v524_v60 = vmul.f32 %v3607_v58, %v520_v59 }
 0x1be   :  { %529 = vrot.lane.b32.xlu1 %v524_v60, %s4101_s2 }
 0x22c   :  { %v528_v63 = vpop.permute.xlu1 %527 }
 0x22d   :  { %v4358_v1 = vadd.f32 %v528_v63, %v513_v62 }
 0x22f   :  { %3608 = vtanh.f32 %v4358_v1 }
 0x230   :  { %v530_v3 = vpop.permute.xlu1 %529 }
 0x231   :  { %v4361_v4 = vadd.f32 %v530_v3, %v514_v2 }
 0x233   :  { %3610 = vtanh.f32 %v4361_v4 }
 0x234   :  { %3612 = vpow2.f32 %v3300_v11 }
 0x235   :  { %3614 = vpow2.f32 %v3302_v14  ;;  %v3555_v14 = vld [vmem:[%s5223_s0 + $0x10] sm:$0xff]  }
 0x236   :  { %3285 = vmatmul.mubr.msk.bf16.gmra.mrb[8].mxu0 %vm213_vm0, %v3555_v14 }
 0x237   :  { %300 = vmatprep.mubr.bf16.mxu0 %v4100_v0 }
 0x239   :  { %v3609_v7 = vpop.eup %3608 }
 0x23a   :  { %539 = vrot.lane.b32.xlu0 %v3609_v7, %s4101_s2 }
 0x23d   :  { %v3611_v10 = vpop.eup %3610 }
 0x23e   :  { %541 = vrot.lane.b32.xlu1 %v3611_v10, %s4101_s2  ;;  %v3613_v32 = vpop.eup %3612 }
 0x23f   :  { %v3615_v33 = vpop.eup %3614  ;;  %v500_v34 = vadd.f32 1.0, %v3613_v32 }
 0x240   :  { %v502_v35 = vadd.f32 1.0, %v3615_v33 }
 0x241   :  { %3616 = vrcp.f32 %v500_v34 }
 0x242   :  { %3618 = vrcp.f32 %v502_v35 }
 0x24b   :  { %v3617_v37 = vpop.eup %3616 }
 0x24c   :  { %v3619_v38 = vpop.eup %3618 }
 0x2ac   :  { %v540_v36 = vpop.permute.xlu0 %539 }
 0x2ad   :  { %v545_v40 = vmul.f32 %v3617_v37, %v540_v36 }
 0x2b0   :  { %v542_v39 = vpop.permute.xlu1 %541 }
 0x2b1   :  { %v546_v41 = vmul.f32 %v3619_v38, %v542_v39 }
 0x2b3   :  { %v4370_v42 = vpack.c.bf16 %v546_v41, %v545_v40 }
 0x2b5   :  { %548 = vst.msk [vmem:[#allocation3] sm:$0xff] %vm213_vm0, %v4370_v42  ;;  %3303 = vmatmul.mubr.msk.bf16.vlgmr.msra.gmra.mrb[4].mxu1 %vm213_vm0, %v4370_v42 }
 0x2b6   :  { %688 = vmatpush1.bf16.msra.mxu1 %v4256_v6  ;;  %719 = vmatprep.mubr.bf16.mxu1 %v4100_v0 }
 0x2b7   :  { %689 = vmatprep.subr.bf16.mxu1 %v4266_v8 }
 0x2ba   :  { %690 = vmatpush1.bf16.msra.mxu1 %v4271_v9 }
 0x2bb   :  { %691 = vmatprep.subr.bf16.mxu1 %v4283_v12 }
 0x2be   :  { %692 = vmatpush1.bf16.msra.mxu1 %v4289_v13 }
 0x2bf   :  { %693 = vmatprep.subr.bf16.mxu1 %v4298_v15 }
 0x2c2   :  { %694 = vmatpush1.bf16.msra.mxu1 %v4306_v17 }
 0x2c3   :  { %810 = vmatprep.subr.bf16.mxu1 %v4251_v5 }
 0x309   :  { %v292_v31 = vpop.f32.mrb[8].mxu0 }
 0x30a   :  { %v293_v32 = vadd.f32 %v292_v31, %v4339_v23  ;;  %v294_v33 = vpop.f32.mrb[9].mxu0  ;;  %v3556_v31 = vld [vmem:[%s5223_s0 + $0x18] sm:$0xff]  }
 0x30b   :  { %v296_v34 = vpop.f32.mrb[10].mxu0  ;;  %3286 = vmatmul.mubr.msk.bf16.gmra.mrb[12].mxu0 %vm213_vm0, %v3556_v31 }
 0x30c   :  { %v297_v35 = vadd.f32 %v296_v34, %v4339_v23  ;;  %v298_v36 = vpop.f32.mrb[11].mxu0  ;;  %310 = vmatprep.mubr.bf16.mxu0 %v4100_v0 }
 0x30d   :  { %v299_v37 = vadd.f32 %v298_v36, %v4343_v25 }
 0x30e   :  { %v355_v38 = vpack.c.bf16 %v297_v35, %v293_v32 }
 0x388   :  { %v598_v45 = vpop.f32.mrb[4].mxu1 }
 0x389   :  { %v607_v46 = vadd.f32 %v598_v45, %v557_v43  ;;  %v600_v47 = vpop.f32.mrb[5].mxu1 }
 0x38a   :  { %v608_v49 = vadd.f32 %v600_v47, %v558_v44  ;;  %v602_v50 = vpop.f32.mrb[6].mxu1 }
 0x38b   :  { %v609_v52 = vadd.f32 %v602_v50, %v559_v48  ;;  %v604_v53 = vpop.f32.mrb[7].mxu1  ;;  %v3304_v57 = vmul.f32 -1.442695, %v607_v46 }
 0x38c   :  { %3620 = vtanh.f32 %v608_v49  ;;  %v610_v54 = vadd.f32 %v604_v53, %v560_v51  ;;  %v3305_v30 = vmul.f32 -1.442695, %v608_v49 }
 0x38d   :  { %v3306_v58 = vmul.f32 -1.442695, %v609_v52  ;;  %v680_v52 = vunpack.c.l.bf16 %v355_v38 }
 0x38e   :  { %3622 = vtanh.f32 %v610_v54 }
 0x38f   :  { %3624 = vpow2.f32 %v3304_v57  ;;  %v682_v57 = vunpack.c.h.bf16 %v355_v38 }
 0x390   :  { %3626 = vpow2.f32 %v3306_v58 }
 0x396   :  { %v3621_v55 = vpop.eup %3620 }
 0x397   :  { %641 = vrot.lane.b32.xlu0 %v3621_v55, %s4101_s2 }
 0x398   :  { %v3623_v56 = vpop.eup %3622 }
 0x399   :  { %643 = vrot.lane.b32.xlu1 %v3623_v56, %s4101_s2  ;;  %v3625_v59 = vpop.eup %3624 }
 0x39a   :  { %v623_v60 = vadd.f32 1.0, %v3625_v59  ;;  %v3627_v61 = vpop.eup %3626 }
 0x39b   :  { %v625_v62 = vadd.f32 1.0, %v3627_v61 }
 0x39c   :  { %3628 = vrcp.f32 %v623_v60 }
 0x39d   :  { %3630 = vrcp.f32 %v625_v62 }
 0x3a6   :  { %v3629_v63 = vpop.eup %3628 }
 0x3a7   :  { %v3631_v7 = vpop.eup %3630  ;;  %v637_v16 = vmul.f32 %v3629_v63, %v4358_v1  ;;  %v3307_v1 = vmul.f32 -1.442695, %v610_v54 }
 0x3a8   :  { %v638_v24 = vmul.f32 %v3631_v7, %v4361_v4  ;;  %v295_v4 = vadd.f32 %v294_v33, %v4343_v25 }
 0x3aa   :  { %v356_v39 = vpack.c.bf16 %v299_v37, %v295_v4 }
 0x3ac   :  { %v681_v53 = vunpack.c.l.bf16 %v356_v39  ;;  %v683_v60 = vunpack.c.h.bf16 %v356_v39 }
 0x409   :  { %v642_v2 = vpop.permute.xlu0 %641 }
 0x40a   :  { %v647_v3 = vmul.f32 %v3629_v63, %v642_v2 }
 0x40b   :  { %v644_v10 = vpop.permute.xlu1 %643 }
 0x40c   :  { %651 = vrot.lane.b32.xlu0 %v647_v3, %s4101_s2  ;;  %v648_v11 = vmul.f32 %v3631_v7, %v644_v10 }
 0x40e   :  { %653 = vrot.lane.b32.xlu1 %v648_v11, %s4101_s2 }
 0x47e   :  { %v652_v18 = vpop.permute.xlu0 %651 }
 0x47f   :  { %v4395_v21 = vadd.f32 %v652_v18, %v637_v16 }
 0x480   :  { %v654_v26 = vpop.permute.xlu1 %653 }
 0x481   :  { %3632 = vtanh.f32 %v4395_v21  ;;  %v4399_v27 = vadd.f32 %v654_v26, %v638_v24 }
 0x483   :  { %3634 = vtanh.f32 %v4399_v27 }
 0x484   :  { %3636 = vpow2.f32 %v3305_v30 }
 0x485   :  { %3638 = vpow2.f32 %v3307_v1 }
 0x48b   :  { %v3633_v28 = vpop.eup %3632 }
 0x48c   :  { %663 = vrot.lane.b32.xlu0 %v3633_v28, %s4101_s2 }
 0x48d   :  { %v3635_v29 = vpop.eup %3634 }
 0x48e   :  { %665 = vrot.lane.b32.xlu1 %v3635_v29, %s4101_s2  ;;  %v3637_v40 = vpop.eup %3636 }
 0x48f   :  { %v3639_v41 = vpop.eup %3638  ;;  %v624_v43 = vadd.f32 1.0, %v3637_v40  ;;  %v302_v40 = vpop.f32.mrb[12].mxu0 }
 0x490   :  { %v626_v44 = vadd.f32 1.0, %v3639_v41  ;;  %v303_v41 = vadd.f32 %v302_v40, %v4339_v23  ;;  %v3557_v40 = vld [vmem:[%s5223_s0 + $0x20] sm:$0xff]  }
 0x491   :  { %3640 = vrcp.f32 %v624_v43  ;;  %v304_v43 = vpop.f32.mrb[13].mxu0  ;;  %3287 = vmatmul.mubr.msk.bf16.gmra.mrb[16].mxu0 %vm213_vm0, %v3557_v40 }
 0x492   :  { %3642 = vrcp.f32 %v626_v44  ;;  %v306_v44 = vpop.f32.mrb[14].mxu0  ;;  %320 = vmatprep.mubr.bf16.mxu0 %v4100_v0 }
 0x49b   :  { %v3641_v46 = vpop.eup %3640 }
 0x49c   :  { %v3643_v47 = vpop.eup %3642 }
 0x4fe   :  { %v664_v45 = vpop.permute.xlu0 %663 }
 0x4ff   :  { %v669_v49 = vmul.f32 %v3641_v46, %v664_v45  ;;  %v307_v45 = vadd.f32 %v306_v44, %v4339_v23  ;;  %v308_v46 = vpop.f32.mrb[15].mxu0 }
 0x500   :  { %v666_v48 = vpop.permute.xlu1 %665 }
 0x501   :  { %v670_v50 = vmul.f32 %v3643_v47, %v666_v48  ;;  %v309_v47 = vadd.f32 %v308_v46, %v4343_v25  ;;  %v357_v48 = vpack.c.bf16 %v307_v45, %v303_v41  ;;  %v3558_v41 = vld [vmem:[%s5223_s0 + $0x28] sm:$0xff]  }
 0x502   :  { %3288 = vmatmul.mubr.msk.bf16.gmra.mrb[20].mxu0 %vm213_vm0, %v3558_v41 }
 0x503   :  { %v4408_v51 = vpack.c.bf16 %v670_v50, %v669_v49  ;;  %330 = vmatprep.mubr.bf16.mxu0 %v4100_v0 }
 0x505   :  { %672 = vst.msk [vmem:[#allocation3 + $0x8] sm:$0xff] %vm213_vm0, %v4408_v51  ;;  %3308 = vmatmul.mubr.msk.bf16.vlgmr.msra.gmra.mrb[8].mxu1 %vm213_vm0, %v4408_v51 }
 0x506   :  { %811 = vmatpush1.bf16.msra.mxu1 %v4256_v6  ;;  %842 = vmatprep.mubr.bf16.mxu1 %v4100_v0 }
 0x507   :  { %812 = vmatprep.subr.bf16.mxu1 %v4266_v8 }
 0x50a   :  { %813 = vmatpush1.bf16.msra.mxu1 %v4271_v9 }
 0x50b   :  { %814 = vmatprep.subr.bf16.mxu1 %v4283_v12 }
 0x50e   :  { %815 = vmatpush1.bf16.msra.mxu1 %v4289_v13 }
 0x50f   :  { %816 = vmatprep.subr.bf16.mxu1 %v4298_v15 }
 0x512   :  { %817 = vmatpush1.bf16.msra.mxu1 %v4306_v17 }
 0x513   :  { %1056 = vmatprep.subr.bf16.mxu1 %v4251_v5 }
 0x5d8   :  { %v721_v54 = vpop.f32.mrb[8].mxu1 }
 0x5d9   :  { %v730_v55 = vadd.f32 %v721_v54, %v680_v52  ;;  %v723_v56 = vpop.f32.mrb[9].mxu1 }
 0x5da   :  { %v731_v58 = vadd.f32 %v723_v56, %v681_v53  ;;  %v725_v59 = vpop.f32.mrb[10].mxu1 }
 0x5db   :  { %v732_v61 = vadd.f32 %v725_v59, %v682_v57  ;;  %v727_v62 = vpop.f32.mrb[11].mxu1  ;;  %v3309_v7 = vmul.f32 -1.442695, %v730_v55 }
 0x5dc   :  { %3644 = vtanh.f32 %v731_v58  ;;  %v733_v63 = vadd.f32 %v727_v62, %v683_v60  ;;  %v3310_v39 = vmul.f32 -1.442695, %v731_v58  ;;  %v803_v62 = vunpack.c.l.bf16 %v357_v48 }
 0x5dd   :  { %v3311_v10 = vmul.f32 -1.442695, %v732_v61 }
 0x5de   :  { %3646 = vtanh.f32 %v733_v63 }
 0x5df   :  { %3648 = vpow2.f32 %v3309_v7 }
 0x5e0   :  { %3650 = vpow2.f32 %v3311_v10  ;;  %v805_v10 = vunpack.c.h.bf16 %v357_v48 }
 0x5e6   :  { %v3645_v2 = vpop.eup %3644 }
 0x5e7   :  { %764 = vrot.lane.b32.xlu0 %v3645_v2, %s4101_s2 }
 0x5e8   :  { %v3647_v3 = vpop.eup %3646 }
 0x5e9   :  { %766 = vrot.lane.b32.xlu1 %v3647_v3, %s4101_s2  ;;  %v3649_v11 = vpop.eup %3648 }
 0x5ea   :  { %v746_v14 = vadd.f32 1.0, %v3649_v11  ;;  %v3651_v16 = vpop.eup %3650 }
 0x5eb   :  { %v748_v18 = vadd.f32 1.0, %v3651_v16 }
 0x5ec   :  { %3652 = vrcp.f32 %v746_v14 }
 0x5ed   :  { %3654 = vrcp.f32 %v748_v18 }
 0x5f6   :  { %v3653_v24 = vpop.eup %3652 }
 0x5f7   :  { %v3655_v29 = vpop.eup %3654  ;;  %v760_v32 = vmul.f32 %v3653_v24, %v4395_v21  ;;  %v3312_v21 = vmul.f32 -1.442695, %v733_v63 }
 0x5f8   :  { %v761_v34 = vmul.f32 %v3655_v29, %v4399_v27  ;;  %v305_v27 = vadd.f32 %v304_v43, %v4343_v25  ;;  %v3559_v43 = vld [vmem:[%s5223_s0 + $0x30] sm:$0xff]  }
 0x5f9   :  { %3289 = vmatmul.mubr.msk.bf16.gmra.mrb[24].mxu0 %vm213_vm0, %v3559_v43 }
 0x5fa   :  { %v358_v49 = vpack.c.bf16 %v309_v47, %v305_v27  ;;  %340 = vmatprep.mubr.bf16.mxu0 %v4100_v0  ;;  %v3560_v27 = vld [vmem:[%s5223_s0 + $0x38] sm:$0xff]  }
 0x5fc   :  { %v804_v63 = vunpack.c.l.bf16 %v358_v49  ;;  %v806_v16 = vunpack.c.h.bf16 %v358_v49 }
 0x601   :  { %3290 = vmatmul.mubr.msk.bf16.gmra.mrb[28].mxu0 %vm213_vm0, %v3560_v27 }
 0x602   :  { %965 = vmatprep.mubr.bf16.mxu0 %v4100_v0 }
 0x659   :  { %v765_v26 = vpop.permute.xlu0 %764 }
 0x65a   :  { %v770_v28 = vmul.f32 %v3653_v24, %v765_v26 }
 0x65b   :  { %v767_v30 = vpop.permute.xlu1 %766 }
 0x65c   :  { %774 = vrot.lane.b32.xlu0 %v770_v28, %s4101_s2  ;;  %v771_v1 = vmul.f32 %v3655_v29, %v767_v30 }
 0x65e   :  { %776 = vrot.lane.b32.xlu1 %v771_v1, %s4101_s2 }
 0x6ce   :  { %v775_v33 = vpop.permute.xlu0 %774 }
 0x6cf   :  { %v4433_v4 = vadd.f32 %v775_v33, %v760_v32 }
 0x6d0   :  { %v777_v35 = vpop.permute.xlu1 %776 }
 0x6d1   :  { %3656 = vtanh.f32 %v4433_v4  ;;  %v4437_v36 = vadd.f32 %v777_v35, %v761_v34 }
 0x6d3   :  { %3658 = vtanh.f32 %v4437_v36 }
 0x6d4   :  { %3660 = vpow2.f32 %v3310_v39 }
 0x6d5   :  { %3662 = vpow2.f32 %v3312_v21 }
 0x6db   :  { %v3657_v37 = vpop.eup %3656 }
 0x6dc   :  { %786 = vrot.lane.b32.xlu0 %v3657_v37, %s4101_s2 }
 0x6dd   :  { %v3659_v38 = vpop.eup %3658 }
 0x6de   :  { %788 = vrot.lane.b32.xlu1 %v3659_v38, %s4101_s2  ;;  %v3661_v50 = vpop.eup %3660 }
 0x6df   :  { %v3663_v52 = vpop.eup %3662  ;;  %v747_v53 = vadd.f32 1.0, %v3661_v50 }
 0x6e0   :  { %v749_v54 = vadd.f32 1.0, %v3663_v52 }
 0x6e1   :  { %3664 = vrcp.f32 %v747_v53 }
 0x6e2   :  { %3666 = vrcp.f32 %v749_v54  ;;  %v312_v54 = vpop.f32.mrb[16].mxu0 }
 0x6eb   :  { %v3665_v56 = vpop.eup %3664 }
 0x6ec   :  { %v3667_v57 = vpop.eup %3666 }
 0x74e   :  { %v787_v55 = vpop.permute.xlu0 %786 }
 0x74f   :  { %v792_v59 = vmul.f32 %v3665_v56, %v787_v55  ;;  %v313_v55 = vadd.f32 %v312_v54, %v4339_v23  ;;  %v314_v56 = vpop.f32.mrb[17].mxu0 }
 0x750   :  { %v789_v58 = vpop.permute.xlu1 %788 }
 0x751   :  { %v793_v60 = vmul.f32 %v3667_v57, %v789_v58  ;;  %v316_v57 = vpop.f32.mrb[18].mxu0 }
 0x752   :  { %v317_v58 = vadd.f32 %v316_v57, %v4339_v23 }
 0x753   :  { %v4446_v61 = vpack.c.bf16 %v793_v60, %v792_v59  ;;  %v318_v59 = vpop.f32.mrb[19].mxu0 }
 0x754   :  { %v319_v60 = vadd.f32 %v318_v59, %v4343_v25 }
 0x755   :  { %795 = vst.msk [vmem:[#allocation3 + $0x10] sm:$0xff] %vm213_vm0, %v4446_v61  ;;  %3313 = vmatmul.mubr.msk.bf16.vlgmr.msra.gmra.mrb[12].mxu1 %vm213_vm0, %v4446_v61 }
 0x756   :  { %1057 = vmatpush1.bf16.msra.mxu1 %v4256_v6  ;;  %1088 = vmatprep.mubr.bf16.mxu1 %v4100_v0 }
 0x757   :  { %1058 = vmatprep.subr.bf16.mxu1 %v4266_v8 }
 0x75a   :  { %1059 = vmatpush1.bf16.msra.mxu1 %v4271_v9 }
 0x75b   :  { %1060 = vmatprep.subr.bf16.mxu1 %v4283_v12 }
 0x75e   :  { %1061 = vmatpush1.bf16.msra.mxu1 %v4289_v13 }
 0x75f   :  { %1062 = vmatprep.subr.bf16.mxu1 %v4298_v15 }
 0x762   :  { %1063 = vmatpush1.bf16.msra.mxu1 %v4306_v17 }
 0x763   :  { %1302 = vmatprep.subr.bf16.mxu1 %v4251_v5 }
 0x828   :  { %v844_v2 = vpop.f32.mrb[12].mxu1 }
 0x829   :  { %v853_v3 = vadd.f32 %v844_v2, %v803_v62  ;;  %v846_v7 = vpop.f32.mrb[13].mxu1  ;;  %v4499_v62 = vpack.c.bf16 %v317_v58, %v313_v55  ;;  %v322_v2 = vpop.f32.mrb[20].mxu0 }
 0x82a   :  { %v854_v11 = vadd.f32 %v846_v7, %v804_v63  ;;  %v848_v14 = vpop.f32.mrb[14].mxu1  ;;  %v324_v7 = vpop.f32.mrb[21].mxu0 }
 0x82b   :  { %v855_v18 = vadd.f32 %v848_v14, %v805_v10  ;;  %v850_v24 = vpop.f32.mrb[15].mxu1  ;;  %v3314_v5 = vmul.f32 -1.442695, %v853_v3  ;;  %v323_v3 = vadd.f32 %v322_v2, %v4339_v23  ;;  %v325_v10 = vadd.f32 %v324_v7, %v4343_v25 }
 0x82c   :  { %3668 = vtanh.f32 %v854_v11  ;;  %v856_v26 = vadd.f32 %v850_v24, %v806_v16  ;;  %v3315_v53 = vmul.f32 -1.442695, %v854_v11  ;;  %v326_v11 = vpop.f32.mrb[22].mxu0 }
 0x82d   :  { %v3316_v30 = vmul.f32 -1.442695, %v855_v18  ;;  %v327_v16 = vadd.f32 %v326_v11, %v4339_v23  ;;  %v328_v18 = vpop.f32.mrb[23].mxu0 }
 0x82e   :  { %3670 = vtanh.f32 %v856_v26 }
 0x82f   :  { %3672 = vpow2.f32 %v3314_v5 }
 0x830   :  { %3674 = vpow2.f32 %v3316_v30 }
 0x836   :  { %v3669_v28 = vpop.eup %3668 }
 0x837   :  { %887 = vrot.lane.b32.xlu0 %v3669_v28, %s4101_s2  ;;  %v4507_v28 = vpack.c.bf16 %v327_v16, %v323_v3 }
 0x838   :  { %v3671_v29 = vpop.eup %3670 }
 0x839   :  { %889 = vrot.lane.b32.xlu1 %v3671_v29, %s4101_s2  ;;  %v3673_v1 = vpop.eup %3672 }
 0x83a   :  { %v869_v31 = vadd.f32 1.0, %v3673_v1  ;;  %v3675_v32 = vpop.eup %3674  ;;  %v332_v1 = vpop.f32.mrb[24].mxu0 }
 0x83b   :  { %v871_v33 = vadd.f32 1.0, %v3675_v32  ;;  %v334_v32 = vpop.f32.mrb[25].mxu0 }
 0x83c   :  { %3676 = vrcp.f32 %v869_v31  ;;  %v333_v31 = vadd.f32 %v332_v1, %v4339_v23 }
 0x83d   :  { %3678 = vrcp.f32 %v871_v33  ;;  %v335_v33 = vadd.f32 %v334_v32, %v4343_v25 }
 0x846   :  { %v3677_v34 = vpop.eup %3676 }
 0x847   :  { %v3679_v38 = vpop.eup %3678  ;;  %v883_v44 = vmul.f32 %v3677_v34, %v4433_v4  ;;  %v3317_v4 = vmul.f32 -1.442695, %v856_v26  ;;  %v329_v26 = vadd.f32 %v328_v18, %v4343_v25 }
 0x848   :  { %v884_v47 = vmul.f32 %v3679_v38, %v4437_v36  ;;  %v315_v36 = vadd.f32 %v314_v56, %v4343_v25 }
 0x849   :  { %v4509_v5 = vpack.c.bf16 %v329_v26, %v325_v10 }
 0x84a   :  { %v4501_v63 = vpack.c.bf16 %v319_v60, %v315_v36  ;;  %v928_v60 = vunpack.c.h.bf16 %v4499_v62 }
 0x84c   :  { %v927_v58 = vunpack.c.l.bf16 %v4501_v63 }
 0x8a9   :  { %v888_v35 = vpop.permute.xlu0 %887 }
 0x8aa   :  { %v893_v37 = vmul.f32 %v3677_v34, %v888_v35  ;;  %v336_v34 = vpop.f32.mrb[26].mxu0 }
 0x8ab   :  { %v890_v39 = vpop.permute.xlu1 %889  ;;  %v337_v35 = vadd.f32 %v336_v34, %v4339_v23 }
 0x8ac   :  { %897 = vrot.lane.b32.xlu0 %v893_v37, %s4101_s2  ;;  %v894_v21 = vmul.f32 %v3679_v38, %v890_v39  ;;  %v338_v37 = vpop.f32.mrb[27].mxu0 }
 0x8ad   :  { %v339_v38 = vadd.f32 %v338_v37, %v4343_v25  ;;  %v4515_v39 = vpack.c.bf16 %v337_v35, %v333_v31  ;;  %v342_v40 = vpop.f32.mrb[28].mxu0 }
 0x8ae   :  { %899 = vrot.lane.b32.xlu1 %v894_v21, %s4101_s2  ;;  %v343_v41 = vadd.f32 %v342_v40, %v4339_v23  ;;  %v344_v43 = vpop.f32.mrb[29].mxu0 }
 0x8af   :  { %v4517_v21 = vpack.c.bf16 %v339_v38, %v335_v33  ;;  %v345_v27 = vadd.f32 %v344_v43, %v4343_v25 }
 0x91e   :  { %v898_v45 = vpop.permute.xlu0 %897 }
 0x91f   :  { %v4486_v46 = vadd.f32 %v898_v45, %v883_v44  ;;  %v346_v44 = vpop.f32.mrb[30].mxu0 }
 0x920   :  { %v900_v48 = vpop.permute.xlu1 %899 }
 0x921   :  { %3680 = vtanh.f32 %v4486_v46  ;;  %v4490_v49 = vadd.f32 %v900_v48, %v884_v47  ;;  %v347_v47 = vadd.f32 %v346_v44, %v4339_v23  ;;  %v348_v48 = vpop.f32.mrb[31].mxu0  ;;  %v926_v23 = vunpack.c.l.bf16 %v4499_v62 }
 0x923   :  { %3682 = vtanh.f32 %v4490_v49  ;;  %v4523_v54 = vpack.c.bf16 %v347_v47, %v343_v41 }
 0x924   :  { %3684 = vpow2.f32 %v3315_v53 }
 0x925   :  { %3686 = vpow2.f32 %v3317_v4 }
 0x92b   :  { %v3681_v50 = vpop.eup %3680 }
 0x92c   :  { %909 = vrot.lane.b32.xlu0 %v3681_v50, %s4101_s2 }
 0x92d   :  { %v3683_v52 = vpop.eup %3682 }
 0x92e   :  { %911 = vrot.lane.b32.xlu1 %v3683_v52, %s4101_s2  ;;  %v3685_v14 = vpop.eup %3684  ;;  %v349_v52 = vadd.f32 %v348_v48, %v4343_v25 }
 0x92f   :  { %v3687_v24 = vpop.eup %3686  ;;  %v870_v29 = vadd.f32 1.0, %v3685_v14 }
 0x930   :  { %v872_v30 = vadd.f32 1.0, %v3687_v24  ;;  %v4525_v36 = vpack.c.bf16 %v349_v52, %v345_v27 }
 0x931   :  { %3688 = vrcp.f32 %v870_v29 }
 0x932   :  { %3690 = vrcp.f32 %v872_v30 }
 0x93b   :  { %v3689_v50 = vpop.eup %3688 }
 0x93c   :  { %v3691_v53 = vpop.eup %3690 }
 0x99e   :  { %v910_v45 = vpop.permute.xlu0 %909 }
 0x99f   :  { %v915_v55 = vmul.f32 %v3689_v50, %v910_v45 }
 0x9a0   :  { %v912_v4 = vpop.permute.xlu1 %911 }
 0x9a1   :  { %v916_v56 = vmul.f32 %v3691_v53, %v912_v4  ;;  %v3988_v4 = vld [vmem:[%s5226_s3] ss:$8 sps:$4 sm:$0xff]  }
 0x9a3   :  { %v4527_v57 = vpack.c.bf16 %v916_v56, %v915_v55  ;;  %v3989_v55 = vld [vmem:[%s5226_s3 + $0x14] ss:$8 sps:$4 sm:$0xff]   ;;  %v3990_v56 = vld [vmem:[%s5226_s3 + $0x10] ss:$8 sps:$4 sm:$0xff]  }
 0x9a5   :  { %918 = vst.msk [vmem:[#allocation3 + $0x18] sm:$0xff] %vm213_vm0, %v4527_v57  ;;  %3318 = vmatmul.mubr.msk.bf16.vlgmr.msra.gmra.mrb[32].mxu0 %vm213_vm0, %v4527_v57 }
 0x9a6   :  { %1180 = vmatpush1.bf16.msra.mxu0 %v4256_v6  ;;  %1211 = vmatprep.mubr.bf16.mxu0 %v4100_v0 }
 0x9a7   :  { %1181 = vmatprep.subr.bf16.mxu0 %v4266_v8 }
 0x9aa   :  { %1182 = vmatpush1.bf16.msra.mxu0 %v4271_v9  ;;  %v929_v9 = vunpack.c.h.bf16 %v4501_v63 }
 0x9ab   :  { %1183 = vmatprep.subr.bf16.mxu0 %v4283_v12 }
 0x9ae   :  { %1184 = vmatpush1.bf16.msra.mxu0 %v4289_v13 }
 0x9af   :  { %1185 = vmatprep.subr.bf16.mxu0 %v4298_v15 }
 0x9b2   :  { %1186 = vmatpush1.bf16.msra.mxu0 %v4306_v17 }
 0xa78   :  { %v967_v25 = vpop.f32.mrb[32].mxu0 }
 0xa79   :  { %v976_v6 = vadd.f32 %v967_v25, %v926_v23  ;;  %v969_v59 = vpop.f32.mrb[33].mxu0  ;;  %v3991_v23 = vld [vmem:[%s5226_s3 + $0x24] ss:$8 sps:$4 sm:$0xff]   ;;  %v3992_v25 = vld [vmem:[%s5226_s3 + $0x20] ss:$8 sps:$4 sm:$0xff]  }
 0xa7a   :  { %v977_v8 = vadd.f32 %v969_v59, %v927_v58  ;;  %v971_v2 = vpop.f32.mrb[34].mxu0  ;;  %v3993_v58 = vld [vmem:[%s5226_s3 + $0x34] ss:$8 sps:$4 sm:$0xff]   ;;  %v1049_v59 = vunpack.c.l.bf16 %v4507_v28 }
 0xa7b   :  { %v978_v12 = vadd.f32 %v971_v2, %v928_v60  ;;  %v973_v3 = vpop.f32.mrb[35].mxu0  ;;  %v3319_v7 = vmul.f32 -1.442695, %v976_v6  ;;  %v3994_v6 = vld [vmem:[%s5226_s3 + $0x30] ss:$8 sps:$4 sm:$0xff]  }
 0xa7c   :  { %3692 = vtanh.f32 %v977_v8  ;;  %v979_v13 = vadd.f32 %v973_v3, %v929_v9  ;;  %v3320_v40 = vmul.f32 -1.442695, %v977_v8  ;;  %v1050_v8 = vunpack.c.l.bf16 %v4509_v5 }
 0xa7d   :  { %v3321_v10 = vmul.f32 -1.442695, %v978_v12  ;;  %v1051_v12 = vunpack.c.h.bf16 %v4507_v28 }
 0xa7e   :  { %3694 = vtanh.f32 %v979_v13 }
 0xa7f   :  { %3696 = vpow2.f32 %v3319_v7 }
 0xa80   :  { %3698 = vpow2.f32 %v3321_v10 }
 0xa86   :  { %v3693_v15 = vpop.eup %3692 }
 0xa87   :  { %1010 = vrot.lane.b32.xlu0 %v3693_v15, %s4101_s2  ;;  %v1052_v15 = vunpack.c.h.bf16 %v4509_v5 }
 0xa88   :  { %v3695_v17 = vpop.eup %3694 }
 0xa89   :  { %1012 = vrot.lane.b32.xlu1 %v3695_v17, %s4101_s2  ;;  %v3697_v62 = vpop.eup %3696 }
 0xa8a   :  { %v992_v11 = vadd.f32 1.0, %v3697_v62  ;;  %v3699_v14 = vpop.eup %3698 }
 0xa8b   :  { %v994_v63 = vadd.f32 1.0, %v3699_v14 }
 0xa8c   :  { %3700 = vrcp.f32 %v992_v11 }
 0xa8d   :  { %3702 = vrcp.f32 %v994_v63 }
 0xa96   :  { %v3701_v16 = vpop.eup %3700 }
 0xa97   :  { %v3703_v26 = vpop.eup %3702  ;;  %v1006_v1 = vmul.f32 %v3701_v16, %v4486_v46  ;;  %v3322_v46 = vmul.f32 -1.442695, %v979_v13 }
 0xa98   :  { %v1007_v33 = vmul.f32 %v3703_v26, %v4490_v49 }
 0xaf9   :  { %v1011_v18 = vpop.permute.xlu0 %1010 }
 0xafa   :  { %v1016_v24 = vmul.f32 %v3701_v16, %v1011_v18 }
 0xafb   :  { %v1013_v29 = vpop.permute.xlu1 %1012 }
 0xafc   :  { %1020 = vrot.lane.b32.xlu0 %v1016_v24, %s4101_s2  ;;  %v1017_v30 = vmul.f32 %v3703_v26, %v1013_v29 }
 0xafe   :  { %1022 = vrot.lane.b32.xlu1 %v1017_v30, %s4101_s2 }
 0xb6e   :  { %v1021_v31 = vpop.permute.xlu0 %1020 }
 0xb6f   :  { %v4550_v32 = vadd.f32 %v1021_v31, %v1006_v1 }
 0xb70   :  { %v1023_v34 = vpop.permute.xlu1 %1022 }
 0xb71   :  { %3704 = vtanh.f32 %v4550_v32  ;;  %v4554_v35 = vadd.f32 %v1023_v34, %v1007_v33 }
 0xb73   :  { %3706 = vtanh.f32 %v4554_v35 }
 0xb74   :  { %3708 = vpow2.f32 %v3320_v40 }
 0xb75   :  { %3710 = vpow2.f32 %v3322_v46 }
 0xb7b   :  { %v3705_v37 = vpop.eup %3704 }
 0xb7c   :  { %1032 = vrot.lane.b32.xlu0 %v3705_v37, %s4101_s2 }
 0xb7d   :  { %v3707_v38 = vpop.eup %3706 }
 0xb7e   :  { %1034 = vrot.lane.b32.xlu1 %v3707_v38, %s4101_s2  ;;  %v3709_v41 = vpop.eup %3708 }
 0xb7f   :  { %v3711_v43 = vpop.eup %3710  ;;  %v993_v27 = vadd.f32 1.0, %v3709_v41 }
 0xb80   :  { %v995_v44 = vadd.f32 1.0, %v3711_v43 }
 0xb81   :  { %3712 = vrcp.f32 %v993_v27 }
 0xb82   :  { %3714 = vrcp.f32 %v995_v44 }
 0xb8b   :  { %v3713_v45 = vpop.eup %3712 }
 0xb8c   :  { %v3715_v47 = vpop.eup %3714 }
 0xbee   :  { %v1033_v49 = vpop.permute.xlu0 %1032 }
 0xbef   :  { %v1038_v50 = vmul.f32 %v3713_v45, %v1033_v49 }
 0xbf0   :  { %v1035_v48 = vpop.permute.xlu1 %1034 }
 0xbf1   :  { %v1039_v52 = vmul.f32 %v3715_v47, %v1035_v48 }
 0xbf3   :  { %v4559_v53 = vpack.c.bf16 %v1039_v52, %v1038_v50 }
 0xbf5   :  { %3323 = vmatmul.mubr.msk.bf16.vlgmr.msra.gmra.mrb[16].mxu1 %vm213_vm0, %v4559_v53 }
 0xbf6   :  { %1303 = vmatpush1.bf16.msra.mxu1 %v3988_v4  ;;  %1334 = vmatprep.mubr.bf16.mxu1 %v4100_v0 }
 0xbf7   :  { %1304 = vmatprep.subr.bf16.mxu1 %v3989_v55 }
 0xbfa   :  { %1305 = vmatpush1.bf16.msra.mxu1 %v3990_v56 }
 0xbfb   :  { %1306 = vmatprep.subr.bf16.mxu1 %v3991_v23  ;;  %v1172_v23 = vunpack.c.l.bf16 %v4515_v39 }
 0xbfe   :  { %1307 = vmatpush1.bf16.msra.mxu1 %v3992_v25 }
 0xbff   :  { %1308 = vmatprep.subr.bf16.mxu1 %v3993_v58  ;;  %v1173_v58 = vunpack.c.l.bf16 %v4517_v21 }
 0xc02   :  { %1309 = vmatpush1.bf16.msra.mxu1 %v3994_v6 }
 0xcc8   :  { %v1090_v60 = vpop.f32.mrb[16].mxu1 }
 0xcc9   :  { %v1099_v2 = vadd.f32 %v1090_v60, %v1049_v59  ;;  %v1092_v9 = vpop.f32.mrb[17].mxu1  ;;  %v1174_v60 = vunpack.c.h.bf16 %v4515_v39 }
 0xcca   :  { %v1100_v3 = vadd.f32 %v1092_v9, %v1050_v8  ;;  %v1094_v13 = vpop.f32.mrb[18].mxu1  ;;  %v1175_v9 = vunpack.c.h.bf16 %v4517_v21 }
 0xccb   :  { %v1101_v17 = vadd.f32 %v1094_v13, %v1051_v12  ;;  %v1096_v7 = vpop.f32.mrb[19].mxu1  ;;  %v3324_v14 = vmul.f32 -1.442695, %v1099_v2 }
 0xccc   :  { %3716 = vtanh.f32 %v1100_v3  ;;  %v1102_v10 = vadd.f32 %v1096_v7, %v1052_v15  ;;  %v3325_v27 = vmul.f32 -1.442695, %v1100_v3 }
 0xccd   :  { %v3326_v63 = vmul.f32 -1.442695, %v1101_v17 }
 0xcce   :  { %3718 = vtanh.f32 %v1102_v10 }
 0xccf   :  { %3720 = vpow2.f32 %v3324_v14 }
 0xcd0   :  { %3722 = vpow2.f32 %v3326_v63 }
 0xcd6   :  { %v3717_v62 = vpop.eup %3716 }
 0xcd7   :  { %1133 = vrot.lane.b32.xlu0 %v3717_v62, %s4101_s2 }
 0xcd8   :  { %v3719_v11 = vpop.eup %3718 }
 0xcd9   :  { %1135 = vrot.lane.b32.xlu1 %v3719_v11, %s4101_s2  ;;  %v3721_v28 = vpop.eup %3720 }
 0xcda   :  { %v1115_v16 = vadd.f32 1.0, %v3721_v28  ;;  %v3723_v18 = vpop.eup %3722 }
 0xcdb   :  { %v1117_v5 = vadd.f32 1.0, %v3723_v18 }
 0xcdc   :  { %3724 = vrcp.f32 %v1115_v16 }
 0xcdd   :  { %3726 = vrcp.f32 %v1117_v5 }
 0xce6   :  { %v3725_v24 = vpop.eup %3724 }
 0xce7   :  { %v3727_v30 = vpop.eup %3726  ;;  %v1129_v33 = vmul.f32 %v3725_v24, %v4550_v32  ;;  %v3327_v32 = vmul.f32 -1.442695, %v1102_v10 }
 0xce8   :  { %v1130_v38 = vmul.f32 %v3727_v30, %v4554_v35 }
 0xd49   :  { %v1134_v26 = vpop.permute.xlu0 %1133 }
 0xd4a   :  { %v1139_v29 = vmul.f32 %v3725_v24, %v1134_v26 }
 0xd4b   :  { %v1136_v1 = vpop.permute.xlu1 %1135 }
 0xd4c   :  { %1143 = vrot.lane.b32.xlu0 %v1139_v29, %s4101_s2  ;;  %v1140_v31 = vmul.f32 %v3727_v30, %v1136_v1 }
 0xd4e   :  { %1145 = vrot.lane.b32.xlu1 %v1140_v31, %s4101_s2 }
 0xdbe   :  { %v1144_v34 = vpop.permute.xlu0 %1143 }
 0xdbf   :  { %v4594_v37 = vadd.f32 %v1144_v34, %v1129_v33 }
 0xdc0   :  { %v1146_v40 = vpop.permute.xlu1 %1145 }
 0xdc1   :  { %3728 = vtanh.f32 %v4594_v37  ;;  %v4598_v46 = vadd.f32 %v1146_v40, %v1130_v38 }
 0xdc3   :  { %3730 = vtanh.f32 %v4598_v46 }
 0xdc4   :  { %3732 = vpow2.f32 %v3325_v27 }
 0xdc5   :  { %3734 = vpow2.f32 %v3327_v32 }
 0xdcb   :  { %v3729_v41 = vpop.eup %3728 }
 0xdcc   :  { %1155 = vrot.lane.b32.xlu0 %v3729_v41, %s4101_s2 }
 0xdcd   :  { %v3731_v43 = vpop.eup %3730 }
 0xdce   :  { %1157 = vrot.lane.b32.xlu1 %v3731_v43, %s4101_s2  ;;  %v3733_v44 = vpop.eup %3732 }
 0xdcf   :  { %v3735_v49 = vpop.eup %3734  ;;  %v1116_v45 = vadd.f32 1.0, %v3733_v44 }
 0xdd0   :  { %v1118_v47 = vadd.f32 1.0, %v3735_v49 }
 0xdd1   :  { %3736 = vrcp.f32 %v1116_v45 }
 0xdd2   :  { %3738 = vrcp.f32 %v1118_v47 }
 0xddb   :  { %v3737_v48 = vpop.eup %3736 }
 0xddc   :  { %v3739_v50 = vpop.eup %3738 }
 0xe3e   :  { %v1156_v35 = vpop.permute.xlu0 %1155 }
 0xe3f   :  { %v1161_v4 = vmul.f32 %v3737_v48, %v1156_v35  ;;  %v1295_v48 = vunpack.c.l.bf16 %v4523_v54 }
 0xe40   :  { %v1158_v52 = vpop.permute.xlu1 %1157 }
 0xe41   :  { %v1162_v55 = vmul.f32 %v3739_v50, %v1158_v52  ;;  %v1296_v52 = vunpack.c.l.bf16 %v4525_v36 }
 0xe43   :  { %v4603_v56 = vpack.c.bf16 %v1162_v55, %v1161_v4 }
 0xe45   :  { %3328 = vmatmul.mubr.msk.bf16.vlgmr.msra.gmra.mrb[36].mxu0 %vm213_vm0, %v4603_v56 }
 0xe46   :  { %1564 = vmatprep.mubr.bf16.mxu0 %v4100_v0 }
 0xf18   :  { %v1213_v25 = vpop.f32.mrb[36].mxu0 }
 0xf19   :  { %v1222_v6 = vadd.f32 %v1213_v25, %v1172_v23  ;;  %v1215_v59 = vpop.f32.mrb[37].mxu0  ;;  %v1297_v23 = vunpack.c.h.bf16 %v4523_v54 }
 0xf1a   :  { %v1223_v8 = vadd.f32 %v1215_v59, %v1173_v58  ;;  %v1217_v2 = vpop.f32.mrb[38].mxu0 }
 0xf1b   :  { %v1224_v12 = vadd.f32 %v1217_v2, %v1174_v60  ;;  %v1219_v3 = vpop.f32.mrb[39].mxu0  ;;  %v3329_v7 = vmul.f32 -1.442695, %v1222_v6  ;;  %v1298_v6 = vunpack.c.h.bf16 %v4525_v36 }
 0xf1c   :  { %3740 = vtanh.f32 %v1223_v8  ;;  %v1225_v13 = vadd.f32 %v1219_v3, %v1175_v9  ;;  %v3330_v38 = vmul.f32 -1.442695, %v1223_v8 }
 0xf1d   :  { %v3331_v10 = vmul.f32 -1.442695, %v1224_v12 }
 0xf1e   :  { %3742 = vtanh.f32 %v1225_v13 }
 0xf1f   :  { %3744 = vpow2.f32 %v3329_v7 }
 0xf20   :  { %3746 = vpow2.f32 %v3331_v10 }
 0xf26   :  { %v3741_v15 = vpop.eup %3740 }
 0xf27   :  { %1256 = vrot.lane.b32.xlu0 %v3741_v15, %s4101_s2 }
 0xf28   :  { %v3743_v17 = vpop.eup %3742 }
 0xf29   :  { %1258 = vrot.lane.b32.xlu1 %v3743_v17, %s4101_s2  ;;  %v3745_v39 = vpop.eup %3744 }
 0xf2a   :  { %v1238_v62 = vadd.f32 1.0, %v3745_v39  ;;  %v3747_v11 = vpop.eup %3746 }
 0xf2b   :  { %v1240_v21 = vadd.f32 1.0, %v3747_v11 }
 0xf2c   :  { %3748 = vrcp.f32 %v1238_v62 }
 0xf2d   :  { %3750 = vrcp.f32 %v1240_v21 }
 0xf36   :  { %v3749_v14 = vpop.eup %3748 }
 0xf37   :  { %v3751_v16 = vpop.eup %3750  ;;  %v1252_v24 = vmul.f32 %v3749_v14, %v4594_v37  ;;  %v3332_v37 = vmul.f32 -1.442695, %v1225_v13 }
 0xf38   :  { %v1253_v30 = vmul.f32 %v3751_v16, %v4598_v46 }
 0xf99   :  { %v1257_v63 = vpop.permute.xlu0 %1256 }
 0xf9a   :  { %v1262_v28 = vmul.f32 %v3749_v14, %v1257_v63 }
 0xf9b   :  { %v1259_v18 = vpop.permute.xlu1 %1258 }
 0xf9c   :  { %1266 = vrot.lane.b32.xlu0 %v1262_v28, %s4101_s2  ;;  %v1263_v5 = vmul.f32 %v3751_v16, %v1259_v18 }
 0xf9e   :  { %1268 = vrot.lane.b32.xlu1 %v1263_v5, %s4101_s2  ;;  %v3561_v5 = vld [vmem:[%s5228_s5] ss:$8 sps:$4 sm:$0xff]  }
0x100e   :  { %v1267_v26 = vpop.permute.xlu0 %1266 }
0x100f   :  { %v4617_v29 = vadd.f32 %v1267_v26, %v1252_v24  ;;  %v3563_v24 = vld [vmem:[%s5228_s5 + $0x4] ss:$8 sps:$4 sm:$0xff]   ;;  %v3566_v26 = vld [vmem:[%s5228_s5 + $0x14] ss:$8 sps:$4 sm:$0xff]  }
0x1010   :  { %v1269_v1 = vpop.permute.xlu1 %1268  ;;  %1532 = vmatprep.subr.bf16.mxu0 %v3563_v24 }
0x1011   :  { %3752 = vtanh.f32 %v4617_v29  ;;  %v4621_v31 = vadd.f32 %v1269_v1, %v1253_v30  ;;  %1533 = vmatpush1.bf16.msra.mxu0 %v3561_v5  ;;  %v3564_v30 = vld [vmem:[%s5228_s5 + $0x10] ss:$8 sps:$4 sm:$0xff]   ;;  %v4662_v1 = vld [vmem:[%s5229_s6 + $0x4] ss:$8 sps:$4 sm:$0xff]  }
0x1012   :  { %1534 = vmatprep.subr.bf16.mxu0 %v3566_v26  ;;  %1731 = vmatprep.subr.bf16.mxu1 %v4662_v1 }
0x1013   :  { %3754 = vtanh.f32 %v4621_v31 }
0x1014   :  { %3756 = vpow2.f32 %v3330_v38  ;;  %v3567_v38 = vld [vmem:[%s5228_s5 + $0x20] ss:$8 sps:$4 sm:$0xff]  }
0x1015   :  { %3758 = vpow2.f32 %v3332_v37  ;;  %1535 = vmatpush1.bf16.msra.mxu0 %v3564_v30 }
0x101b   :  { %v3753_v33 = vpop.eup %3752 }
0x101c   :  { %1278 = vrot.lane.b32.xlu0 %v3753_v33, %s4101_s2  ;;  %v4671_v33 = vld [vmem:[%s5229_s6] ss:$8 sps:$4 sm:$0xff]  }
0x101d   :  { %v3755_v34 = vpop.eup %3754 }
0x101e   :  { %1280 = vrot.lane.b32.xlu1 %v3755_v34, %s4101_s2  ;;  %v3757_v40 = vpop.eup %3756  ;;  %v4677_v34 = vld [vmem:[%s5229_s6 + $0x14] ss:$8 sps:$4 sm:$0xff]  }
0x101f   :  { %v3759_v41 = vpop.eup %3758  ;;  %v1239_v43 = vadd.f32 1.0, %v3757_v40  ;;  %v3572_v40 = vld [vmem:[%s5228_s5 + $0x34] ss:$8 sps:$4 sm:$0xff]  }
0x1020   :  { %v1241_v27 = vadd.f32 1.0, %v3759_v41  ;;  %v3570_v41 = vld [vmem:[%s5228_s5 + $0x30] ss:$8 sps:$4 sm:$0xff]  }
0x1021   :  { %3760 = vrcp.f32 %v1239_v43  ;;  %v3575_v43 = vld [vmem:[%s5228_s5 + $0x44] ss:$8 sps:$4 sm:$0xff]  }
0x1022   :  { %3762 = vrcp.f32 %v1241_v27  ;;  %v3573_v27 = vld [vmem:[%s5228_s5 + $0x40] ss:$8 sps:$4 sm:$0xff]  }
0x102b   :  { %v3761_v32 = vpop.eup %3760 }
0x102c   :  { %v3763_v44 = vpop.eup %3762 }
0x108e   :  { %v1279_v46 = vpop.permute.xlu0 %1278 }
0x108f   :  { %v1284_v45 = vmul.f32 %v3761_v32, %v1279_v46  ;;  %v3580_v46 = vld [vmem:[%s5228_s5 + $0x54] ss:$8 sps:$4 sm:$0xff]   ;;  %v3578_v32 = vld [vmem:[%s5228_s5 + $0x50] ss:$8 sps:$4 sm:$0xff]  }
0x1090   :  { %v1281_v49 = vpop.permute.xlu1 %1280 }
0x1091   :  { %v1285_v47 = vmul.f32 %v3763_v44, %v1281_v49 }
0x1093   :  { %v4626_v35 = vpack.c.bf16 %v1285_v47, %v1284_v45 }
0x1095   :  { %3333 = vmatmul.mubr.msk.bf16.vlgmr.msra.gmra.mrb[20].mxu1 %vm213_vm0, %v4626_v35 }
0x1096   :  { %1763 = vmatprep.mubr.bf16.mxu1 %v4100_v0  ;;  %1732 = vmatpush1.bf16.msra.mxu1 %v4671_v33 }
0x1097   :  { %1733 = vmatprep.subr.bf16.mxu1 %v4677_v34 }
0x1168   :  { %v1336_v50 = vpop.f32.mrb[20].mxu1 }
0x1169   :  { %v1345_v4 = vadd.f32 %v1336_v50, %v1295_v48  ;;  %v1338_v55 = vpop.f32.mrb[21].mxu1 }
0x116a   :  { %v4634_v25 = vadd.f32 %v1338_v55, %v1296_v52  ;;  %v1340_v58 = vpop.f32.mrb[22].mxu1  ;;  %v1679_v52 = vld [vmem:[%s5229_s6 + $0x10] sm:$0xff]  ;;  %v3586_v55 = vld [vmem:[%s5228_s5 + $0x64] ss:$8 sps:$4 sm:$0xff]  }
0x116b   :  { %v1347_v59 = vadd.f32 %v1340_v58, %v1297_v23  ;;  %v1342_v60 = vpop.f32.mrb[23].mxu1  ;;  %v3334_v54 = vmul.f32 -1.442695, %v1345_v4  ;;  %v1680_v4 = vld [vmem:[%s5229_s6 + $0x18] sm:$0xff]  ;;  %v4723_v58 = vld [vmem:[%s5229_s6 + $0x24] ss:$8 sps:$4 sm:$0xff]  }
0x116c   :  { %3764 = vtanh.f32 %v4634_v25  ;;  %v4638_v8 = vadd.f32 %v1342_v60, %v1298_v6  ;;  %v3335_v44 = vmul.f32 -1.442695, %v4634_v25  ;;  %v4714_v23 = vcombine.low %v1679_v52, %v1680_v4  ;;  %v3584_v25 = vld [vmem:[%s5228_s5 + $0x60] ss:$8 sps:$4 sm:$0xff]   ;;  %v3591_v6 = vld [vmem:[%s5228_s5 + $0x74] ss:$8 sps:$4 sm:$0xff]  }
0x116d   :  { %v3336_v12 = vmul.f32 -1.442695, %v1347_v59  ;;  %v3589_v59 = vld [vmem:[%s5228_s5 + $0x70] ss:$8 sps:$4 sm:$0xff]   ;;  %v4734_v60 = vld [vmem:[%s5229_s6 + $0x20] ss:$8 sps:$4 sm:$0xff]  }
0x116e   :  { %3766 = vtanh.f32 %v4638_v8  ;;  %v3337_v49 = vmul.f32 -1.442695, %v4638_v8  ;;  %1734 = vmatpush1.bf16.msra.mxu1 %v4714_v23  ;;  %v4739_v8 = vld [vmem:[%s5229_s6 + $0x34] ss:$8 sps:$4 sm:$0xff]  }
0x116f   :  { %3768 = vpow2.f32 %v3334_v54  ;;  %1735 = vmatprep.subr.bf16.mxu1 %v4723_v58 }
0x1170   :  { %3770 = vpow2.f32 %v3336_v12 }
0x1172   :  { %1736 = vmatpush1.bf16.msra.mxu1 %v4734_v60 }
0x1173   :  { %1737 = vmatprep.subr.bf16.mxu1 %v4739_v8 }
0x1176   :  { %v3765_v2 = vpop.eup %3764 }
0x1177   :  { %1379 = vrot.lane.b32.xlu0 %v3765_v2, %s4101_s2 }
0x1178   :  { %v3767_v9 = vpop.eup %3766 }
0x1179   :  { %1381 = vrot.lane.b32.xlu1 %v3767_v9, %s4101_s2  ;;  %v3769_v3 = vpop.eup %3768  ;;  %v4747_v9 = vld [vmem:[%s5229_s6 + $0x30] ss:$8 sps:$4 sm:$0xff]  }
0x117a   :  { %v1361_v36 = vadd.f32 1.0, %v3769_v3  ;;  %v3771_v13 = vpop.eup %3770  ;;  %1738 = vmatpush1.bf16.msra.mxu1 %v4747_v9 }
0x117b   :  { %v1363_v15 = vadd.f32 1.0, %v3771_v13  ;;  %1876 = vmatprep.subr.bf16.mxu1 %v4662_v1 }
0x117c   :  { %3772 = vrcp.f32 %v1361_v36 }
0x117d   :  { %3774 = vrcp.f32 %v1363_v15  ;;  %1764 = vmatmul.mubr.bf16.vlgmr.msra.gmra.mrb[24].mxu1 %v4100_v0 }
0x117e   :  { %1877 = vmatpush1.bf16.msra.mxu1 %v4671_v33  ;;  %1908 = vmatprep.mubr.bf16.mxu1 %v4100_v0 }
0x117f   :  { %1878 = vmatprep.subr.bf16.mxu1 %v4677_v34 }
0x1182   :  { %1879 = vmatpush1.bf16.msra.mxu1 %v4714_v23 }
0x1183   :  { %1880 = vmatprep.subr.bf16.mxu1 %v4723_v58 }
0x1186   :  { %v3773_v17 = vpop.eup %3772  ;;  %1881 = vmatpush1.bf16.msra.mxu1 %v4734_v60 }
0x1187   :  { %v3775_v39 = vpop.eup %3774  ;;  %v1375_v21 = vmul.f32 %v3773_v17, %v4617_v29  ;;  %1882 = vmatprep.subr.bf16.mxu1 %v4739_v8 }
0x1188   :  { %v1376_v28 = vmul.f32 %v3775_v39, %v4621_v31  ;;  %v3569_v31 = vld [vmem:[%s5228_s5 + $0x24] ss:$8 sps:$4 sm:$0xff]  }
0x1189   :  { %1536 = vmatprep.subr.bf16.mxu0 %v3569_v31 }
0x118a   :  { %1537 = vmatpush1.bf16.msra.mxu0 %v3567_v38  ;;  %1883 = vmatpush1.bf16.msra.mxu1 %v4747_v9 }
0x118b   :  { %1538 = vmatprep.subr.bf16.mxu0 %v3572_v40  ;;  %2021 = vmatprep.subr.bf16.mxu1 %v4662_v1 }
0x118e   :  { %1539 = vmatpush1.bf16.msra.mxu0 %v3570_v41 }
0x118f   :  { %1540 = vmatprep.subr.bf16.mxu0 %v3575_v43 }
0x1192   :  { %1541 = vmatpush1.bf16.msra.mxu0 %v3573_v27 }
0x1193   :  { %1542 = vmatprep.subr.bf16.mxu0 %v3580_v46 }
0x1196   :  { %1543 = vmatpush1.bf16.msra.mxu0 %v3578_v32 }
0x1197   :  { %1544 = vmatprep.subr.bf16.mxu0 %v3586_v55 }
0x119a   :  { %1545 = vmatpush1.bf16.msra.mxu0 %v3584_v25 }
0x119b   :  { %1546 = vmatprep.subr.bf16.mxu0 %v3591_v6 }
0x119e   :  { %1547 = vmatpush1.bf16.msra.mxu0 %v3589_v59 }
0x119f   :  { %2456 = vmatprep.subr.bf16.mxu0 %v4662_v1 }
0x11e9   :  { %v1380_v7 = vpop.permute.xlu0 %1379 }
0x11ea   :  { %v1385_v10 = vmul.f32 %v3773_v17, %v1380_v7 }
0x11eb   :  { %v1382_v62 = vpop.permute.xlu1 %1381 }
0x11ec   :  { %1389 = vrot.lane.b32.xlu0 %v1385_v10, %s4101_s2  ;;  %v1386_v11 = vmul.f32 %v3775_v39, %v1382_v62 }
0x11ee   :  { %1391 = vrot.lane.b32.xlu1 %v1386_v11, %s4101_s2 }
0x1250   :  { %v1765_v10 = vpop.f32.mrb[24].mxu1 }
0x1251   :  { %v1767_v39 = vpop.f32.mrb[25].mxu1 }
0x1252   :  { %v1769_v62 = vpop.f32.mrb[26].mxu1 }
0x1253   :  { %v1771_v11 = vpop.f32.mrb[27].mxu1 }
0x125e   :  { %v1390_v14 = vpop.permute.xlu0 %1389 }
0x125f   :  { %v1395_v63 = vadd.f32 %v1390_v14, %v1375_v21  ;;  %v1440_v21 = vld [vmem:[#allocation6] sm:$0x3] }
0x1260   :  { %v1392_v16 = vpop.permute.xlu1 %1391  ;;  %v4778_v14 = vrot.slane %v1440_v21, %v125_v20 }
0x1261   :  { %3776 = vtanh.f32 %v1395_v63  ;;  %v1396_v18 = vadd.f32 %v1392_v16, %v1376_v28  ;;  %v4782_v28 = vrot.slane %v1440_v21, %v129_v22 }
0x1263   :  { %3778 = vtanh.f32 %v1396_v18 }
0x1264   :  { %3780 = vpow2.f32 %v3335_v44 }
0x1265   :  { %3782 = vpow2.f32 %v3337_v49 }
0x126b   :  { %v3777_v29 = vpop.eup %3776 }
0x126c   :  { %1401 = vrot.lane.b32.xlu0 %v3777_v29, %s4101_s2 }
0x126d   :  { %v3779_v37 = vpop.eup %3778 }
0x126e   :  { %1403 = vrot.lane.b32.xlu1 %v3779_v37, %s4101_s2  ;;  %v3781_v45 = vpop.eup %3780 }
0x126f   :  { %v3783_v47 = vpop.eup %3782  ;;  %v1362_v48 = vadd.f32 1.0, %v3781_v45 }
0x1270   :  { %v1364_v50 = vadd.f32 1.0, %v3783_v47 }
0x1271   :  { %3784 = vrcp.f32 %v1362_v48 }
0x1272   :  { %3786 = vrcp.f32 %v1364_v50 }
0x127b   :  { %v3785_v54 = vpop.eup %3784 }
0x127c   :  { %v3787_v12 = vpop.eup %3786 }
0x12de   :  { %v1402_v2 = vpop.permute.xlu0 %1401 }
0x12df   :  { %v1407_v36 = vmul.f32 %v3785_v54, %v1402_v2 }
0x12e0   :  { %v1404_v3 = vpop.permute.xlu1 %1403 }
0x12e1   :  { %v1408_v13 = vmul.f32 %v3787_v12, %v1404_v3 }
0x12e3   :  { %v4752_v15 = vpack.c.bf16 %v1408_v13, %v1407_v36 }
0x12e5   :  { %1412 = vrot.lane.b32.xlu0 %v4752_v15, %s4101_s2 }
0x1357   :  { %v1413_v17 = vpop.permute.xlu0 %1412 }
0x1358   :  { %1415 = vst.msk [vmem:[#allocation3] sm:$0xff] %vm553_vm1, %v1413_v17 }
0x135f   :  { %v1416_v7 = vld [vmem:[#allocation3] sm:$0xff] }
0x1360   :  { %1565 = vmatmul.mubr.bf16.vlgmr.msra.gmra.mrb[40].mxu0 %v1416_v7 }
0x1361   :  { %1574 = vmatprep.mubr.bf16.mxu0 %v4100_v0  ;;  %2457 = vmatpush1.bf16.msra.mxu0 %v4671_v33 }
0x1362   :  { %2458 = vmatprep.subr.bf16.mxu0 %v4677_v34 }
0x1365   :  { %2459 = vmatpush1.bf16.msra.mxu0 %v4714_v23 }
0x1366   :  { %2460 = vmatprep.subr.bf16.mxu0 %v4723_v58 }
0x1369   :  { %2461 = vmatpush1.bf16.msra.mxu0 %v4734_v60 }
0x136a   :  { %2462 = vmatprep.subr.bf16.mxu0 %v4739_v8 }
0x136d   :  { %2463 = vmatpush1.bf16.msra.mxu0 %v4747_v9 }
0x136e   :  { %2746 = vmatprep.subr.bf16.mxu0 %v4662_v1 }
0x1433   :  { %v1566_v63 = vpop.f32.mrb[40].mxu0 }
0x1434   :  { %v1568_v16 = vpop.f32.mrb[41].mxu0  ;;  %v1567_v5 = vadd.f32 %v1566_v63, %v4778_v14 }
0x1435   :  { %v1570_v18 = vpop.f32.mrb[42].mxu0  ;;  %v1569_v29 = vadd.f32 %v1568_v16, %v4782_v28 }
0x1436   :  { %v1571_v24 = vadd.f32 %v1570_v18, %v4778_v14  ;;  %v1572_v26 = vpop.f32.mrb[43].mxu0 }
0x1437   :  { %v1573_v30 = vadd.f32 %v1572_v26, %v4782_v28 }
0x1438   :  { %v1645_v31 = vpack.c.bf16 %v1571_v24, %v1567_v5 }
0x1439   :  { %v1646_v38 = vpack.c.bf16 %v1573_v30, %v1569_v29 }
0x143a   :  { %v1687_v20 = vunpack.c.l.bf16 %v1645_v31  ;;  %v1689_v37 = vunpack.c.h.bf16 %v1645_v31 }
0x143b   :  { %v1688_v40 = vunpack.c.l.bf16 %v1646_v38  ;;  %v1690_v41 = vunpack.c.h.bf16 %v1646_v38 }
0x143c   :  { %v1774_v19 = vadd.f32 %v1765_v10, %v1687_v20  ;;  %v1776_v22 = vadd.f32 %v1769_v62, %v1689_v37 }
0x143d   :  { %v1775_v43 = vadd.f32 %v1767_v39, %v1688_v40  ;;  %v1777_v27 = vadd.f32 %v1771_v11, %v1690_v41 }
0x143e   :  { %v3362_v44 = vmul.f32 -1.442695, %v1774_v19  ;;  %v3364_v49 = vmul.f32 -1.442695, %v1776_v22 }
0x143f   :  { %3788 = vtanh.f32 %v1775_v43  ;;  %v3363_v62 = vmul.f32 -1.442695, %v1775_v43  ;;  %v3365_v11 = vmul.f32 -1.442695, %v1777_v27 }
0x1440   :  { %3790 = vtanh.f32 %v1777_v27 }
0x1441   :  { %3792 = vpow2.f32 %v3362_v44 }
0x1442   :  { %3794 = vpow2.f32 %v3364_v49 }
0x1449   :  { %v3789_v46 = vpop.eup %3788 }
0x144a   :  { %1808 = vrot.lane.b32.xlu1 %v3789_v46, %s4101_s2  ;;  %v3791_v32 = vpop.eup %3790 }
0x144b   :  { %1810 = vrot.lane.b32.xlu0 %v3791_v32, %s4101_s2  ;;  %v3793_v45 = vpop.eup %3792 }
0x144c   :  { %v1790_v47 = vadd.f32 1.0, %v3793_v45  ;;  %v3795_v48 = vpop.eup %3794 }
0x144d   :  { %v1792_v50 = vadd.f32 1.0, %v3795_v48 }
0x144e   :  { %3796 = vrcp.f32 %v1790_v47 }
0x144f   :  { %3798 = vrcp.f32 %v1792_v50 }
0x1458   :  { %v3797_v52 = vpop.eup %3796 }
0x1459   :  { %v3799_v25 = vpop.eup %3798  ;;  %v1804_v2 = vmul.f32 0.0, %v3797_v52 }
0x145a   :  { %v1805_v3 = vmul.f32 0.0, %v3799_v25 }
0x14bc   :  { %v1809_v4 = vpop.permute.xlu1 %1808 }
0x14bd   :  { %v1814_v55 = vmul.f32 %v3797_v52, %v1809_v4  ;;  %v1811_v6 = vpop.permute.xlu0 %1810 }
0x14be   :  { %v1815_v59 = vmul.f32 %v3799_v25, %v1811_v6 }
0x14bf   :  { %1818 = vrot.lane.b32.xlu1 %v1814_v55, %s4101_s2 }
0x14c0   :  { %1820 = vrot.lane.b32.xlu0 %v1815_v59, %s4101_s2 }
0x14c3   :  { %1289 = vrot.lane.b32.xlu1 %v4626_v35, %s4101_s2 }
0x1531   :  { %v1819_v54 = vpop.permute.xlu1 %1818 }
0x1532   :  { %v4794_v12 = vadd.f32 %v1819_v54, %v1804_v2  ;;  %v1821_v13 = vpop.permute.xlu0 %1820 }
0x1533   :  { %v4798_v17 = vadd.f32 %v1821_v13, %v1805_v3 }
0x1534   :  { %3800 = vtanh.f32 %v4794_v12 }
0x1535   :  { %v1290_v36 = vpop.permute.xlu1 %1289  ;;  %3802 = vtanh.f32 %v4798_v17 }
0x1536   :  { %1292 = vst.msk [vmem:[#allocation3 + $0x8] sm:$0xff] %vm553_vm1, %v1290_v36  ;;  %3804 = vpow2.f32 %v3363_v62 }
0x1537   :  { %3806 = vpow2.f32 %v3365_v11 }
0x153d   :  { %v1417_v7 = vld [vmem:[#allocation3 + $0x8] sm:$0xff] }
0x153e   :  { %v3801_v10 = vpop.eup %3800  ;;  %1575 = vmatmul.mubr.bf16.gmra.mrb[44].mxu0 %v1417_v7 }
0x153f   :  { %1830 = vrot.lane.b32.xlu0 %v3801_v10, %s4101_s2  ;;  %1584 = vmatprep.mubr.bf16.mxu0 %v4100_v0  ;;  %v3803_v39 = vpop.eup %3802 }
0x1540   :  { %1832 = vrot.lane.b32.xlu1 %v3803_v39, %s4101_s2  ;;  %v3805_v21 = vpop.eup %3804 }
0x1541   :  { %v3807_v63 = vpop.eup %3806  ;;  %v1791_v16 = vadd.f32 1.0, %v3805_v21 }
0x1542   :  { %v1793_v18 = vadd.f32 1.0, %v3807_v63 }
0x1543   :  { %3808 = vrcp.f32 %v1791_v16 }
0x1544   :  { %3810 = vrcp.f32 %v1793_v18 }
0x154d   :  { %v3809_v24 = vpop.eup %3808 }
0x154e   :  { %v3811_v29 = vpop.eup %3810 }
0x15b1   :  { %v1831_v5 = vpop.permute.xlu0 %1830 }
0x15b2   :  { %v4804_v26 = vmul.f32 %v3809_v24, %v1831_v5  ;;  %v1833_v30 = vpop.permute.xlu1 %1832 }
0x15b3   :  { %v4806_v31 = vmul.f32 %v3811_v29, %v1833_v30 }
0x15b5   :  { %v1872_v38 = vpack.c.bf16 %v4806_v31, %v4804_v26 }
0x15b7   :  { %3366 = vmatmul.mubr.msk.bf16.vlgmr.msra.gmra.mrb[28].mxu1 %vm213_vm0, %v1872_v38 }
0x15b8   :  { %2022 = vmatpush1.bf16.msra.mxu1 %v4671_v33  ;;  %2053 = vmatprep.mubr.bf16.mxu1 %v4100_v0 }
0x15b9   :  { %2023 = vmatprep.subr.bf16.mxu1 %v4677_v34 }
0x15bc   :  { %2024 = vmatpush1.bf16.msra.mxu1 %v4714_v23 }
0x15bd   :  { %2025 = vmatprep.subr.bf16.mxu1 %v4723_v58 }
0x15c0   :  { %2026 = vmatpush1.bf16.msra.mxu1 %v4734_v60 }
0x15c1   :  { %2027 = vmatprep.subr.bf16.mxu1 %v4739_v8 }
0x15c4   :  { %2028 = vmatpush1.bf16.msra.mxu1 %v4747_v9 }
0x15c5   :  { %2166 = vmatprep.subr.bf16.mxu1 %v4662_v1 }
0x1611   :  { %v1576_v20 = vpop.f32.mrb[44].mxu0 }
0x1612   :  { %v1578_v37 = vpop.f32.mrb[45].mxu0  ;;  %v1577_v41 = vadd.f32 %v1576_v20, %v4778_v14 }
0x1613   :  { %v1580_v40 = vpop.f32.mrb[46].mxu0  ;;  %v1579_v43 = vadd.f32 %v1578_v37, %v4782_v28 }
0x1614   :  { %v1581_v19 = vadd.f32 %v1580_v40, %v4778_v14  ;;  %v1582_v22 = vpop.f32.mrb[47].mxu0 }
0x1615   :  { %v1583_v27 = vadd.f32 %v1582_v22, %v4782_v28 }
0x1616   :  { %v1647_v46 = vpack.c.bf16 %v1581_v19, %v1577_v41 }
0x1617   :  { %v1648_v32 = vpack.c.bf16 %v1583_v27, %v1579_v43 }
0x1618   :  { %v1868_v44 = vunpack.c.l.bf16 %v1647_v46  ;;  %v1870_v50 = vunpack.c.h.bf16 %v1647_v46 }
0x1619   :  { %v1869_v45 = vunpack.c.l.bf16 %v1648_v32  ;;  %v1871_v55 = vunpack.c.h.bf16 %v1648_v32 }
0x168a   :  { %v1910_v49 = vpop.f32.mrb[28].mxu1 }
0x168b   :  { %v1919_v47 = vadd.f32 %v1910_v49, %v1868_v44  ;;  %v1912_v48 = vpop.f32.mrb[29].mxu1 }
0x168c   :  { %v1920_v52 = vadd.f32 %v1912_v48, %v1869_v45  ;;  %v1914_v4 = vpop.f32.mrb[30].mxu1 }
0x168d   :  { %v1921_v25 = vadd.f32 %v1914_v4, %v1870_v50  ;;  %v1916_v6 = vpop.f32.mrb[31].mxu1  ;;  %v3367_v3 = vmul.f32 -1.442695, %v1919_v47 }
0x168e   :  { %3812 = vtanh.f32 %v1920_v52  ;;  %v1922_v59 = vadd.f32 %v1916_v6, %v1871_v55  ;;  %v3368_v19 = vmul.f32 -1.442695, %v1920_v52 }
0x168f   :  { %v3369_v36 = vmul.f32 -1.442695, %v1921_v25 }
0x1690   :  { %3814 = vtanh.f32 %v1922_v59 }
0x1691   :  { %3816 = vpow2.f32 %v3367_v3 }
0x1692   :  { %3818 = vpow2.f32 %v3369_v36 }
0x1698   :  { %v3813_v2 = vpop.eup %3812 }
0x1699   :  { %1953 = vrot.lane.b32.xlu0 %v3813_v2, %s4101_s2 }
0x169a   :  { %v3815_v54 = vpop.eup %3814 }
0x169b   :  { %1955 = vrot.lane.b32.xlu1 %v3815_v54, %s4101_s2  ;;  %v3817_v13 = vpop.eup %3816 }
0x169c   :  { %v1935_v7 = vadd.f32 1.0, %v3817_v13  ;;  %v3819_v10 = vpop.eup %3818 }
0x169d   :  { %v1937_v39 = vadd.f32 1.0, %v3819_v10 }
0x169e   :  { %3820 = vrcp.f32 %v1935_v7 }
0x169f   :  { %3822 = vrcp.f32 %v1937_v39 }
0x16a8   :  { %v3821_v62 = vpop.eup %3820 }
0x16a9   :  { %v3823_v63 = vpop.eup %3822  ;;  %v1949_v5 = vmul.f32 %v3821_v62, %v4794_v12 }
0x16aa   :  { %v1950_v30 = vmul.f32 %v3823_v63, %v4798_v17  ;;  %v3370_v17 = vmul.f32 -1.442695, %v1922_v59 }
0x170b   :  { %v1954_v11 = vpop.permute.xlu0 %1953 }
0x170c   :  { %v1959_v21 = vmul.f32 %v3821_v62, %v1954_v11 }
0x170d   :  { %v1956_v16 = vpop.permute.xlu1 %1955 }
0x170e   :  { %1963 = vrot.lane.b32.xlu0 %v1959_v21, %s4101_s2  ;;  %v1960_v18 = vmul.f32 %v3823_v63, %v1956_v16 }
0x1710   :  { %1965 = vrot.lane.b32.xlu1 %v1960_v18, %s4101_s2 }
0x1712   :  { %1166 = vrot.lane.b32.xlu0 %v4603_v56, %s4101_s2 }
0x1780   :  { %v1964_v24 = vpop.permute.xlu0 %1963 }
0x1781   :  { %v4831_v29 = vadd.f32 %v1964_v24, %v1949_v5 }
0x1782   :  { %v1966_v20 = vpop.permute.xlu1 %1965 }
0x1783   :  { %3824 = vtanh.f32 %v4831_v29  ;;  %v4836_v37 = vadd.f32 %v1966_v20, %v1950_v30 }
0x1784   :  { %v1167_v38 = vpop.permute.xlu0 %1166 }
0x1785   :  { %1169 = vst.msk [vmem:[#allocation3 + $0x10] sm:$0xff] %vm553_vm1, %v1167_v38  ;;  %3826 = vtanh.f32 %v4836_v37 }
0x1786   :  { %3828 = vpow2.f32 %v3368_v19 }
0x1787   :  { %3830 = vpow2.f32 %v3370_v17 }
0x178c   :  { %v1418_v40 = vld [vmem:[#allocation3 + $0x10] sm:$0xff] }
0x178d   :  { %v3825_v41 = vpop.eup %3824  ;;  %1585 = vmatmul.mubr.bf16.gmra.mrb[48].mxu0 %v1418_v40 }
0x178e   :  { %1975 = vrot.lane.b32.xlu1 %v3825_v41, %s4101_s2  ;;  %1594 = vmatprep.mubr.bf16.mxu0 %v4100_v0 }
0x178f   :  { %v3827_v12 = vpop.eup %3826 }
0x1790   :  { %1977 = vrot.lane.b32.xlu0 %v3827_v12, %s4101_s2  ;;  %v3829_v22 = vpop.eup %3828 }
0x1791   :  { %v3831_v43 = vpop.eup %3830  ;;  %v1936_v27 = vadd.f32 1.0, %v3829_v22 }
0x1792   :  { %v1938_v46 = vadd.f32 1.0, %v3831_v43 }
0x1793   :  { %3832 = vrcp.f32 %v1936_v27 }
0x1794   :  { %3834 = vrcp.f32 %v1938_v46 }
0x179d   :  { %v3833_v44 = vpop.eup %3832 }
0x179e   :  { %v3835_v49 = vpop.eup %3834 }
0x1800   :  { %v1976_v32 = vpop.permute.xlu1 %1975 }
0x1801   :  { %v4842_v47 = vmul.f32 %v3833_v44, %v1976_v32 }
0x1802   :  { %v1978_v45 = vpop.permute.xlu0 %1977 }
0x1803   :  { %v4844_v48 = vmul.f32 %v3835_v49, %v1978_v45 }
0x1805   :  { %v2017_v50 = vpack.c.bf16 %v4844_v48, %v4842_v47 }
0x1807   :  { %3371 = vmatmul.mubr.msk.bf16.vlgmr.msra.gmra.mrb[32].mxu1 %vm213_vm0, %v2017_v50 }
0x1808   :  { %2167 = vmatpush1.bf16.msra.mxu1 %v4671_v33  ;;  %2198 = vmatprep.mubr.bf16.mxu1 %v4100_v0 }
0x1809   :  { %2168 = vmatprep.subr.bf16.mxu1 %v4677_v34 }
0x180c   :  { %2169 = vmatpush1.bf16.msra.mxu1 %v4714_v23 }
0x180d   :  { %2170 = vmatprep.subr.bf16.mxu1 %v4723_v58 }
0x1810   :  { %2171 = vmatpush1.bf16.msra.mxu1 %v4734_v60 }
0x1811   :  { %2172 = vmatprep.subr.bf16.mxu1 %v4739_v8 }
0x1814   :  { %2173 = vmatpush1.bf16.msra.mxu1 %v4747_v9 }
0x1815   :  { %2311 = vmatprep.subr.bf16.mxu1 %v4662_v1 }
0x1860   :  { %v1586_v52 = vpop.f32.mrb[48].mxu0 }
0x1861   :  { %v1588_v4 = vpop.f32.mrb[49].mxu0  ;;  %v1587_v25 = vadd.f32 %v1586_v52, %v4778_v14 }
0x1862   :  { %v1590_v55 = vpop.f32.mrb[50].mxu0  ;;  %v1589_v2 = vadd.f32 %v1588_v4, %v4782_v28 }
0x1863   :  { %v1591_v6 = vadd.f32 %v1590_v55, %v4778_v14  ;;  %v1592_v59 = vpop.f32.mrb[51].mxu0 }
0x1864   :  { %v1593_v54 = vadd.f32 %v1592_v59, %v4782_v28 }
0x1865   :  { %v1649_v3 = vpack.c.bf16 %v1591_v6, %v1587_v25 }
0x1866   :  { %v1650_v36 = vpack.c.bf16 %v1593_v54, %v1589_v2 }
0x1867   :  { %v2013_v13 = vunpack.c.l.bf16 %v1649_v3  ;;  %v2015_v11 = vunpack.c.h.bf16 %v1649_v3 }
0x1868   :  { %v2014_v10 = vunpack.c.l.bf16 %v1650_v36  ;;  %v2016_v16 = vunpack.c.h.bf16 %v1650_v36 }
0x18da   :  { %v2055_v7 = vpop.f32.mrb[32].mxu1 }
0x18db   :  { %v2064_v39 = vadd.f32 %v2055_v7, %v2013_v13  ;;  %v2057_v62 = vpop.f32.mrb[33].mxu1 }
0x18dc   :  { %v2065_v21 = vadd.f32 %v2057_v62, %v2014_v10  ;;  %v2059_v63 = vpop.f32.mrb[34].mxu1 }
0x18dd   :  { %v2066_v18 = vadd.f32 %v2059_v63, %v2015_v11  ;;  %v2061_v5 = vpop.f32.mrb[35].mxu1  ;;  %v3372_v20 = vmul.f32 -1.442695, %v2064_v39 }
0x18de   :  { %3836 = vtanh.f32 %v2065_v21  ;;  %v2067_v24 = vadd.f32 %v2061_v5, %v2016_v16  ;;  %v3373_v2 = vmul.f32 -1.442695, %v2065_v21 }
0x18df   :  { %v3374_v40 = vmul.f32 -1.442695, %v2066_v18 }
0x18e0   :  { %3838 = vtanh.f32 %v2067_v24 }
0x18e1   :  { %3840 = vpow2.f32 %v3372_v20 }
0x18e2   :  { %3842 = vpow2.f32 %v3374_v40 }
0x18e8   :  { %v3837_v30 = vpop.eup %3836 }
0x18e9   :  { %2098 = vrot.lane.b32.xlu1 %v3837_v30, %s4101_s2 }
0x18ea   :  { %v3839_v38 = vpop.eup %3838 }
0x18eb   :  { %2100 = vrot.lane.b32.xlu0 %v3839_v38, %s4101_s2  ;;  %v3841_v41 = vpop.eup %3840 }
0x18ec   :  { %v2080_v12 = vadd.f32 1.0, %v3841_v41  ;;  %v3843_v19 = vpop.eup %3842 }
0x18ed   :  { %v2082_v17 = vadd.f32 1.0, %v3843_v19 }
0x18ee   :  { %3844 = vrcp.f32 %v2080_v12 }
0x18ef   :  { %3846 = vrcp.f32 %v2082_v17 }
0x18f8   :  { %v3845_v22 = vpop.eup %3844 }
0x18f9   :  { %v3847_v46 = vpop.eup %3846  ;;  %v2094_v49 = vmul.f32 %v3845_v22, %v4831_v29 }
0x18fa   :  { %v2095_v52 = vmul.f32 %v3847_v46, %v4836_v37  ;;  %v3375_v37 = vmul.f32 -1.442695, %v2067_v24 }
0x195b   :  { %v2099_v43 = vpop.permute.xlu1 %2098 }
0x195c   :  { %v2104_v27 = vmul.f32 %v3845_v22, %v2099_v43 }
0x195d   :  { %v2101_v32 = vpop.permute.xlu0 %2100 }
0x195e   :  { %2108 = vrot.lane.b32.xlu1 %v2104_v27, %s4101_s2  ;;  %v2105_v44 = vmul.f32 %v3847_v46, %v2101_v32 }
0x1960   :  { %2110 = vrot.lane.b32.xlu0 %v2105_v44, %s4101_s2 }
0x1962   :  { %1043 = vrot.lane.b32.xlu1 %v4559_v53, %s4101_s2 }
0x19d0   :  { %v2109_v45 = vpop.permute.xlu1 %2108 }
0x19d1   :  { %v4869_v50 = vadd.f32 %v2109_v45, %v2094_v49 }
0x19d2   :  { %v2111_v55 = vpop.permute.xlu0 %2110 }
0x19d3   :  { %3848 = vtanh.f32 %v4869_v50  ;;  %v4874_v25 = vadd.f32 %v2111_v55, %v2095_v52 }
0x19d4   :  { %v1044_v4 = vpop.permute.xlu1 %1043 }
0x19d5   :  { %1046 = vst.msk [vmem:[#allocation3 + $0x18] sm:$0xff] %vm553_vm1, %v1044_v4  ;;  %3850 = vtanh.f32 %v4874_v25 }
0x19d6   :  { %3852 = vpow2.f32 %v3373_v2 }
0x19d7   :  { %3854 = vpow2.f32 %v3375_v37 }
0x19dc   :  { %v1419_v6 = vld [vmem:[#allocation3 + $0x18] sm:$0xff] }
0x19dd   :  { %v3849_v59 = vpop.eup %3848  ;;  %1595 = vmatmul.mubr.bf16.gmra.mrb[52].mxu0 %v1419_v6 }
0x19de   :  { %2120 = vrot.lane.b32.xlu0 %v3849_v59, %s4101_s2  ;;  %1604 = vmatprep.mubr.bf16.mxu0 %v4100_v0 }
0x19df   :  { %v3851_v29 = vpop.eup %3850 }
0x19e0   :  { %2122 = vrot.lane.b32.xlu1 %v3851_v29, %s4101_s2  ;;  %v3853_v54 = vpop.eup %3852 }
0x19e1   :  { %v3855_v3 = vpop.eup %3854  ;;  %v2081_v36 = vadd.f32 1.0, %v3853_v54 }
0x19e2   :  { %v2083_v13 = vadd.f32 1.0, %v3855_v3 }
0x19e3   :  { %3856 = vrcp.f32 %v2081_v36 }
0x19e4   :  { %3858 = vrcp.f32 %v2083_v13 }
0x19ed   :  { %v3857_v10 = vpop.eup %3856 }
0x19ee   :  { %v3859_v39 = vpop.eup %3858 }
0x1a50   :  { %v2121_v7 = vpop.permute.xlu0 %2120 }
0x1a51   :  { %v4880_v11 = vmul.f32 %v3857_v10, %v2121_v7 }
0x1a52   :  { %v2123_v62 = vpop.permute.xlu1 %2122 }
0x1a53   :  { %v4882_v63 = vmul.f32 %v3859_v39, %v2123_v62 }
0x1a55   :  { %v2162_v21 = vpack.c.bf16 %v4882_v63, %v4880_v11 }
0x1a57   :  { %3376 = vmatmul.mubr.msk.bf16.vlgmr.msra.gmra.mrb[36].mxu1 %vm213_vm0, %v2162_v21 }
0x1a58   :  { %2312 = vmatpush1.bf16.msra.mxu1 %v4671_v33  ;;  %2343 = vmatprep.mubr.bf16.mxu1 %v4100_v0 }
0x1a59   :  { %2313 = vmatprep.subr.bf16.mxu1 %v4677_v34 }
0x1a5c   :  { %2314 = vmatpush1.bf16.msra.mxu1 %v4714_v23 }
0x1a5d   :  { %2315 = vmatprep.subr.bf16.mxu1 %v4723_v58 }
0x1a60   :  { %2316 = vmatpush1.bf16.msra.mxu1 %v4734_v60 }
0x1a61   :  { %2317 = vmatprep.subr.bf16.mxu1 %v4739_v8 }
0x1a64   :  { %2318 = vmatpush1.bf16.msra.mxu1 %v4747_v9 }
0x1a65   :  { %2601 = vmatprep.subr.bf16.mxu1 %v4662_v1 }
0x1ab0   :  { %v1596_v16 = vpop.f32.mrb[52].mxu0 }
0x1ab1   :  { %v1598_v18 = vpop.f32.mrb[53].mxu0  ;;  %v1597_v24 = vadd.f32 %v1596_v16, %v4778_v14 }
0x1ab2   :  { %v1600_v5 = vpop.f32.mrb[54].mxu0  ;;  %v1599_v20 = vadd.f32 %v1598_v18, %v4782_v28 }
0x1ab3   :  { %v1601_v30 = vadd.f32 %v1600_v5, %v4778_v14  ;;  %v1602_v38 = vpop.f32.mrb[55].mxu0 }
0x1ab4   :  { %v1603_v40 = vadd.f32 %v1602_v38, %v4782_v28 }
0x1ab5   :  { %v1651_v41 = vpack.c.bf16 %v1601_v30, %v1597_v24 }
0x1ab6   :  { %v1652_v12 = vpack.c.bf16 %v1603_v40, %v1599_v20 }
0x1ab7   :  { %v2158_v19 = vunpack.c.l.bf16 %v1651_v41  ;;  %v2160_v1 = vunpack.c.h.bf16 %v1651_v41 }
0x1ab8   :  { %v2159_v22 = vunpack.c.l.bf16 %v1652_v12  ;;  %v2161_v44 = vunpack.c.h.bf16 %v1652_v12 }
0x1b2a   :  { %v2200_v17 = vpop.f32.mrb[36].mxu1 }
0x1b2b   :  { %v2209_v43 = vadd.f32 %v2200_v17, %v2158_v19  ;;  %v2202_v27 = vpop.f32.mrb[37].mxu1 }
0x1b2c   :  { %v2210_v46 = vadd.f32 %v2202_v27, %v2159_v22  ;;  %v2204_v32 = vpop.f32.mrb[38].mxu1 }
0x1b2d   :  { %v2211_v49 = vadd.f32 %v2204_v32, %v2160_v1  ;;  %v2206_v45 = vpop.f32.mrb[39].mxu1  ;;  %v3377_v6 = vmul.f32 -1.442695, %v2209_v43 }
0x1b2e   :  { %3860 = vtanh.f32 %v2210_v46  ;;  %v2212_v52 = vadd.f32 %v2206_v45, %v2161_v44 }
0x1b2f   :  { %v3379_v59 = vmul.f32 -1.442695, %v2211_v49 }
0x1b30   :  { %3862 = vtanh.f32 %v2212_v52  ;;  %v3380_v20 = vmul.f32 -1.442695, %v2212_v52 }
0x1b31   :  { %3864 = vpow2.f32 %v3377_v6 }
0x1b32   :  { %3866 = vpow2.f32 %v3379_v59 }
0x1b38   :  { %v3861_v4 = vpop.eup %3860 }
0x1b39   :  { %2243 = vrot.lane.b32.xlu0 %v3861_v4, %s4101_s2 }
0x1b3a   :  { %v3863_v55 = vpop.eup %3862 }
0x1b3b   :  { %2245 = vrot.lane.b32.xlu1 %v3863_v55, %s4101_s2  ;;  %v3865_v29 = vpop.eup %3864 }
0x1b3c   :  { %v2225_v2 = vadd.f32 1.0, %v3865_v29  ;;  %v3867_v37 = vpop.eup %3866 }
0x1b3d   :  { %v2227_v54 = vadd.f32 1.0, %v3867_v37 }
0x1b3e   :  { %3868 = vrcp.f32 %v2225_v2 }
0x1b3f   :  { %3870 = vrcp.f32 %v2227_v54 }
0x1b48   :  { %v3869_v3 = vpop.eup %3868 }
0x1b49   :  { %v3871_v7 = vpop.eup %3870  ;;  %v2239_v62 = vmul.f32 %v3869_v3, %v4869_v50 }
0x1b4a   :  { %v2240_v18 = vmul.f32 %v3871_v7, %v4874_v25  ;;  %v3378_v25 = vmul.f32 -1.442695, %v2210_v46 }
0x1bab   :  { %v2244_v36 = vpop.permute.xlu0 %2243 }
0x1bac   :  { %v2249_v13 = vmul.f32 %v3869_v3, %v2244_v36 }
0x1bad   :  { %v2246_v10 = vpop.permute.xlu1 %2245 }
0x1bae   :  { %2253 = vrot.lane.b32.xlu0 %v2249_v13, %s4101_s2  ;;  %v2250_v39 = vmul.f32 %v3871_v7, %v2246_v10 }
0x1bb0   :  { %2255 = vrot.lane.b32.xlu1 %v2250_v39, %s4101_s2 }
0x1bb2   :  { %920 = vrot.lane.b32.xlu0 %v4527_v57, %s4101_s2 }
0x1c20   :  { %v2254_v21 = vpop.permute.xlu0 %2253 }
0x1c21   :  { %v4907_v16 = vadd.f32 %v2254_v21, %v2239_v62 }
0x1c22   :  { %v2256_v24 = vpop.permute.xlu1 %2255 }
0x1c23   :  { %3872 = vtanh.f32 %v4907_v16  ;;  %v4912_v30 = vadd.f32 %v2256_v24, %v2240_v18 }
0x1c24   :  { %v921_v5 = vpop.permute.xlu0 %920 }
0x1c25   :  { %923 = vst.msk [vmem:[#allocation3 + $0x20] sm:$0xff] %vm553_vm1, %v921_v5  ;;  %3874 = vtanh.f32 %v4912_v30 }
0x1c26   :  { %1041 = vst.msk [vmem:[#allocation3 + $0x20] sm:$0xff] %vm213_vm0, %v4559_v53  ;;  %3876 = vpow2.f32 %v3378_v25 }
0x1c27   :  { %3878 = vpow2.f32 %v3380_v20 }
0x1c2d   :  { %v3873_v57 = vpop.eup %3872  ;;  %v1420_v50 = vld [vmem:[#allocation3 + $0x20] sm:$0xff] }
0x1c2e   :  { %1605 = vmatmul.mubr.bf16.gmra.mrb[56].mxu0 %v1420_v50  ;;  %2265 = vrot.lane.b32.xlu1 %v3873_v57, %s4101_s2 }
0x1c2f   :  { %1614 = vmatprep.mubr.bf16.mxu0 %v4100_v0  ;;  %v3875_v38 = vpop.eup %3874 }
0x1c30   :  { %2267 = vrot.lane.b32.xlu0 %v3875_v38, %s4101_s2  ;;  %v3877_v40 = vpop.eup %3876 }
0x1c31   :  { %v3879_v41 = vpop.eup %3878  ;;  %v2226_v12 = vadd.f32 1.0, %v3877_v40 }
0x1c32   :  { %v2228_v53 = vadd.f32 1.0, %v3879_v41 }
0x1c33   :  { %3880 = vrcp.f32 %v2226_v12 }
0x1c34   :  { %3882 = vrcp.f32 %v2228_v53 }
0x1c3d   :  { %v3881_v17 = vpop.eup %3880 }
0x1c3e   :  { %v3883_v22 = vpop.eup %3882 }
0x1ca0   :  { %v2266_v19 = vpop.permute.xlu1 %2265 }
0x1ca1   :  { %v4920_v27 = vmul.f32 %v3881_v17, %v2266_v19 }
0x1ca2   :  { %v2268_v43 = vpop.permute.xlu0 %2267 }
0x1ca3   :  { %v4922_v1 = vmul.f32 %v3883_v22, %v2268_v43 }
0x1ca5   :  { %v2307_v46 = vpack.c.bf16 %v4922_v1, %v4920_v27 }
0x1ca7   :  { %3381 = vmatmul.mubr.msk.bf16.vlgmr.msra.gmra.mrb[40].mxu1 %vm213_vm0, %v2307_v46 }
0x1ca8   :  { %2602 = vmatpush1.bf16.msra.mxu1 %v4671_v33  ;;  %2633 = vmatprep.mubr.bf16.mxu1 %v4100_v0 }
0x1ca9   :  { %2603 = vmatprep.subr.bf16.mxu1 %v4677_v34 }
0x1cac   :  { %2604 = vmatpush1.bf16.msra.mxu1 %v4714_v23 }
0x1cad   :  { %2605 = vmatprep.subr.bf16.mxu1 %v4723_v58 }
0x1cb0   :  { %2606 = vmatpush1.bf16.msra.mxu1 %v4734_v60 }
0x1cb1   :  { %2607 = vmatprep.subr.bf16.mxu1 %v4739_v8 }
0x1cb4   :  { %2608 = vmatpush1.bf16.msra.mxu1 %v4747_v9 }
0x1d01   :  { %v1606_v32 = vpop.f32.mrb[56].mxu0 }
0x1d02   :  { %v1608_v44 = vpop.f32.mrb[57].mxu0  ;;  %v1607_v45 = vadd.f32 %v1606_v32, %v4778_v14 }
0x1d03   :  { %v1610_v49 = vpop.f32.mrb[58].mxu0  ;;  %v1609_v34 = vadd.f32 %v1608_v44, %v4782_v28 }
0x1d04   :  { %v1611_v33 = vadd.f32 %v1610_v49, %v4778_v14  ;;  %v1612_v52 = vpop.f32.mrb[59].mxu0 }
0x1d05   :  { %v1613_v4 = vadd.f32 %v1612_v52, %v4782_v28 }
0x1d06   :  { %v1653_v55 = vpack.c.bf16 %v1611_v33, %v1607_v45 }
0x1d07   :  { %v1654_v58 = vpack.c.bf16 %v1613_v4, %v1609_v34 }
0x1d08   :  { %v2303_v6 = vunpack.c.l.bf16 %v1653_v55  ;;  %v2305_v2 = vunpack.c.h.bf16 %v1653_v55 }
0x1d09   :  { %v2304_v59 = vunpack.c.l.bf16 %v1654_v58  ;;  %v2306_v3 = vunpack.c.h.bf16 %v1654_v58 }
0x1d7a   :  { %v2345_v60 = vpop.f32.mrb[40].mxu1 }
0x1d7b   :  { %v2354_v8 = vadd.f32 %v2345_v60, %v2303_v6  ;;  %v2347_v29 = vpop.f32.mrb[41].mxu1 }
0x1d7c   :  { %v2355_v37 = vadd.f32 %v2347_v29, %v2304_v59  ;;  %v2349_v54 = vpop.f32.mrb[42].mxu1  ;;  %v3995_v59 = vld [vmem:[%s5229_s6] ss:$8 sps:$4 sm:$0xff]   ;;  %v3997_v29 = vld [vmem:[%s5229_s6 + $0x24] ss:$8 sps:$4 sm:$0xff]  }
0x1d7d   :  { %v2356_v36 = vadd.f32 %v2349_v54, %v2305_v2  ;;  %v2351_v13 = vpop.f32.mrb[43].mxu1  ;;  %v3382_v62 = vmul.f32 -1.442695, %v2354_v8  ;;  %v3996_v8 = vld [vmem:[%s5229_s6 + $0x14] ss:$8 sps:$4 sm:$0xff]  }
0x1d7e   :  { %3884 = vtanh.f32 %v2355_v37  ;;  %v2357_v7 = vadd.f32 %v2351_v13, %v2306_v3  ;;  %v3998_v2 = vld [vmem:[%s5229_s6 + $0x20] ss:$8 sps:$4 sm:$0xff]  }
0x1d7f   :  { %v3384_v21 = vmul.f32 -1.442695, %v2356_v36 }
0x1d80   :  { %3886 = vtanh.f32 %v2357_v7 }
0x1d81   :  { %3888 = vpow2.f32 %v3382_v62 }
0x1d82   :  { %3890 = vpow2.f32 %v3384_v21 }
0x1d88   :  { %v3885_v10 = vpop.eup %3884 }
0x1d89   :  { %2388 = vrot.lane.b32.xlu1 %v3885_v10, %s4101_s2 }
0x1d8a   :  { %v3887_v39 = vpop.eup %3886 }
0x1d8b   :  { %2390 = vrot.lane.b32.xlu0 %v3887_v39, %s4101_s2  ;;  %v3889_v18 = vpop.eup %3888 }
0x1d8c   :  { %v2370_v5 = vadd.f32 1.0, %v3889_v18  ;;  %v3891_v24 = vpop.eup %3890 }
0x1d8d   :  { %v2372_v57 = vadd.f32 1.0, %v3891_v24 }
0x1d8e   :  { %3892 = vrcp.f32 %v2370_v5 }
0x1d8f   :  { %3894 = vrcp.f32 %v2372_v57 }
0x1d98   :  { %v3893_v50 = vpop.eup %3892 }
0x1d99   :  { %v3895_v20 = vpop.eup %3894  ;;  %v2384_v12 = vmul.f32 %v3893_v50, %v4907_v16 }
0x1d9a   :  { %v2385_v17 = vmul.f32 %v3895_v20, %v4912_v30 }
0x1dfb   :  { %v2389_v38 = vpop.permute.xlu1 %2388 }
0x1dfc   :  { %v2394_v25 = vmul.f32 %v3893_v50, %v2389_v38 }
0x1dfd   :  { %v2391_v40 = vpop.permute.xlu0 %2390 }
0x1dfe   :  { %2398 = vrot.lane.b32.xlu1 %v2394_v25, %s4101_s2  ;;  %v2395_v41 = vmul.f32 %v3895_v20, %v2391_v40 }
0x1e00   :  { %2400 = vrot.lane.b32.xlu0 %v2395_v41, %s4101_s2 }
0x1e02   :  { %797 = vrot.lane.b32.xlu1 %v4446_v61, %s4101_s2 }
0x1e04   :  { %674 = vrot.lane.b32.xlu0 %v4408_v51, %s4101_s2 }
0x1e06   :  { %550 = vrot.lane.b32.xlu1 %v4370_v42, %s4101_s2 }
0x1e70   :  { %v2399_v53 = vpop.permute.xlu1 %2398 }
0x1e71   :  { %v4950_v19 = vadd.f32 %v2399_v53, %v2384_v12 }
0x1e72   :  { %v2401_v43 = vpop.permute.xlu0 %2400 }
0x1e73   :  { %3896 = vtanh.f32 %v4950_v19  ;;  %v4955_v61 = vadd.f32 %v2401_v43, %v2385_v17 }
0x1e74   :  { %v798_v22 = vpop.permute.xlu1 %797 }
0x1e75   :  { %800 = vst.msk [vmem:[#allocation3 + $0x28] sm:$0xff] %vm553_vm1, %v798_v22  ;;  %3898 = vtanh.f32 %v4955_v61 }
0x1e76   :  { %1164 = vst.msk [vmem:[#allocation3 + $0x28] sm:$0xff] %vm213_vm0, %v4603_v56  ;;  %v675_v51 = vpop.permute.xlu0 %674 }
0x1e77   :  { %677 = vst.msk [vmem:[#allocation3 + $0x30] sm:$0xff] %vm553_vm1, %v675_v51 }
0x1e78   :  { %v551_v42 = vpop.permute.xlu1 %550  ;;  %1287 = vst.msk [vmem:[#allocation3 + $0x30] sm:$0xff] %vm213_vm0, %v4626_v35  ;;  %v3385_v35 = vmul.f32 -1.442695, %v2357_v7 }
0x1e79   :  { %554 = vst.msk [vmem:[#allocation3 + $0x38] sm:$0xff] %vm553_vm1, %v551_v42 }
0x1e7a   :  { %1410 = vst.msk [vmem:[#allocation3 + $0x38] sm:$0xff] %vm213_vm0, %v4752_v15  ;;  %v3383_v15 = vmul.f32 -1.442695, %v2355_v37  ;;  %v3999_v37 = vld [vmem:[%s5229_s6 + $0x34] ss:$8 sps:$4 sm:$0xff]  }
0x1e7c   :  { %3900 = vpow2.f32 %v3383_v15 }
0x1e7d   :  { %v3897_v16 = vpop.eup %3896  ;;  %v1421_v30 = vld [vmem:[#allocation3 + $0x28] sm:$0xff]  ;;  %3902 = vpow2.f32 %v3385_v35 }
0x1e7e   :  { %1615 = vmatmul.mubr.bf16.gmra.mrb[60].mxu0 %v1421_v30  ;;  %2410 = vrot.lane.b32.xlu0 %v3897_v16, %s4101_s2 }
0x1e7f   :  { %1624 = vmatprep.mubr.bf16.mxu0 %v4100_v0  ;;  %v3899_v56 = vpop.eup %3898  ;;  %v1422_v46 = vld [vmem:[#allocation3 + $0x30] sm:$0xff] }
0x1e80   :  { %2412 = vrot.lane.b32.xlu1 %v3899_v56, %s4101_s2 }
0x1e81   :  { %v1423_v32 = vld [vmem:[#allocation3 + $0x38] sm:$0xff] }
0x1e86   :  { %1625 = vmatmul.mubr.bf16.gmra.mrb[64].mxu0 %v1422_v46  ;;  %v3901_v44 = vpop.eup %3900 }
0x1e87   :  { %1634 = vmatprep.mubr.bf16.mxu0 %v4100_v0  ;;  %v3903_v49 = vpop.eup %3902  ;;  %v2371_v45 = vadd.f32 1.0, %v3901_v44 }
0x1e88   :  { %v2373_v33 = vadd.f32 1.0, %v3903_v49 }
0x1e89   :  { %3904 = vrcp.f32 %v2371_v45 }
0x1e8a   :  { %3906 = vrcp.f32 %v2373_v33 }
0x1e8e   :  { %1635 = vmatmul.mubr.bf16.gmra.mrb[68].mxu0 %v1423_v32 }
0x1e8f   :  { %2488 = vmatprep.mubr.bf16.mxu0 %v4100_v0 }
0x1e93   :  { %v3905_v34 = vpop.eup %3904 }
0x1e94   :  { %v3907_v4 = vpop.eup %3906 }
0x1ef0   :  { %v2411_v52 = vpop.permute.xlu0 %2410 }
0x1ef1   :  { %v4971_v58 = vmul.f32 %v3905_v34, %v2411_v52 }
0x1ef2   :  { %v2413_v55 = vpop.permute.xlu1 %2412 }
0x1ef3   :  { %v4973_v6 = vmul.f32 %v3907_v4, %v2413_v55 }
0x1ef5   :  { %v2452_v60 = vpack.c.bf16 %v4973_v6, %v4971_v58 }
0x1ef7   :  { %3386 = vmatmul.mubr.msk.bf16.vlgmr.msra.gmra.mrb[72].mxu0 %vm213_vm0, %v2452_v60 }
0x1ef8   :  { %2747 = vmatpush1.bf16.msra.mxu0 %v3995_v59  ;;  %2778 = vmatprep.mubr.bf16.mxu0 %v4100_v0 }
0x1ef9   :  { %2748 = vmatprep.subr.bf16.mxu0 %v3996_v8 }
0x1efc   :  { %2749 = vmatpush1.bf16.msra.mxu0 %v4714_v23 }
0x1efd   :  { %2750 = vmatprep.subr.bf16.mxu0 %v3997_v29 }
0x1f00   :  { %2751 = vmatpush1.bf16.msra.mxu0 %v3998_v2 }
0x1f01   :  { %2752 = vmatprep.subr.bf16.mxu0 %v3999_v37 }
0x1f04   :  { %2753 = vmatpush1.bf16.msra.mxu0 %v4747_v9 }
0x1f51   :  { %v1616_v54 = vpop.f32.mrb[60].mxu0 }
0x1f52   :  { %v1618_v3 = vpop.f32.mrb[61].mxu0  ;;  %v1617_v36 = vadd.f32 %v1616_v54, %v4778_v14 }
0x1f53   :  { %v1620_v23 = vpop.f32.mrb[62].mxu0  ;;  %v1619_v10 = vadd.f32 %v1618_v3, %v4782_v28 }
0x1f54   :  { %v1621_v13 = vadd.f32 %v1620_v23, %v4778_v14  ;;  %v1622_v7 = vpop.f32.mrb[63].mxu0 }
0x1f55   :  { %v1623_v39 = vadd.f32 %v1622_v7, %v4782_v28 }
0x1f56   :  { %v1655_v62 = vpack.c.bf16 %v1621_v13, %v1617_v36 }
0x1f57   :  { %v1656_v21 = vpack.c.bf16 %v1623_v39, %v1619_v10 }
0x1f58   :  { %v2448_v56 = vunpack.c.l.bf16 %v1655_v62  ;;  %v2450_v44 = vunpack.c.h.bf16 %v1655_v62 }
0x1f59   :  { %v1626_v18 = vpop.f32.mrb[64].mxu0  ;;  %v2449_v32 = vunpack.c.l.bf16 %v1656_v21  ;;  %v2451_v33 = vunpack.c.h.bf16 %v1656_v21 }
0x1f5a   :  { %v1628_v5 = vpop.f32.mrb[65].mxu0  ;;  %v1627_v57 = vadd.f32 %v1626_v18, %v4778_v14 }
0x1f5b   :  { %v1630_v24 = vpop.f32.mrb[66].mxu0  ;;  %v1629_v38 = vadd.f32 %v1628_v5, %v4782_v28 }
0x1f5c   :  { %v1631_v9 = vadd.f32 %v1630_v24, %v4778_v14  ;;  %v1632_v50 = vpop.f32.mrb[67].mxu0 }
0x1f5d   :  { %v1633_v25 = vadd.f32 %v1632_v50, %v4782_v28 }
0x1f5e   :  { %v5004_v20 = vpack.c.bf16 %v1631_v9, %v1627_v57 }
0x1f5f   :  { %v5006_v40 = vpack.c.bf16 %v1633_v25, %v1629_v38 }
0x1f61   :  { %v1636_v41 = vpop.f32.mrb[68].mxu0 }
0x1f62   :  { %v1638_v12 = vpop.f32.mrb[69].mxu0  ;;  %v1637_v17 = vadd.f32 %v1636_v41, %v4778_v14 }
0x1f63   :  { %v1640_v53 = vpop.f32.mrb[70].mxu0  ;;  %v1639_v42 = vadd.f32 %v1638_v12, %v4782_v28 }
0x1f64   :  { %v1641_v22 = vadd.f32 %v1640_v53, %v4778_v14  ;;  %v1642_v43 = vpop.f32.mrb[71].mxu0 }
0x1f65   :  { %v1643_v51 = vadd.f32 %v1642_v43, %v4782_v28 }
0x1f66   :  { %v5012_v16 = vpack.c.bf16 %v1641_v22, %v1637_v17 }
0x1f67   :  { %v5014_v30 = vpack.c.bf16 %v1643_v51, %v1639_v42  ;;  %v2593_v42 = vunpack.c.l.bf16 %v5004_v20 }
0x1fca   :  { %v2490_v46 = vpop.f32.mrb[72].mxu0 }
0x1fcb   :  { %v2499_v15 = vadd.f32 %v2490_v46, %v2448_v56  ;;  %v2492_v35 = vpop.f32.mrb[73].mxu0  ;;  %v2594_v56 = vunpack.c.l.bf16 %v5006_v40 }
0x1fcc   :  { %v2500_v49 = vadd.f32 %v2492_v35, %v2449_v32  ;;  %v2494_v45 = vpop.f32.mrb[74].mxu0 }
0x1fcd   :  { %v2501_v52 = vadd.f32 %v2494_v45, %v2450_v44  ;;  %v2496_v14 = vpop.f32.mrb[75].mxu0  ;;  %v3387_v55 = vmul.f32 -1.442695, %v2499_v15  ;;  %v2595_v15 = vunpack.c.h.bf16 %v5004_v20 }
0x1fce   :  { %3908 = vtanh.f32 %v2500_v49  ;;  %v2502_v34 = vadd.f32 %v2496_v14, %v2451_v33  ;;  %v3388_v57 = vmul.f32 -1.442695, %v2500_v49  ;;  %v2596_v49 = vunpack.c.h.bf16 %v5006_v40 }
0x1fcf   :  { %v3389_v60 = vmul.f32 -1.442695, %v2501_v52 }
0x1fd0   :  { %3910 = vtanh.f32 %v2502_v34 }
0x1fd1   :  { %3912 = vpow2.f32 %v3387_v55 }
0x1fd2   :  { %3914 = vpow2.f32 %v3389_v60 }
0x1fd8   :  { %v3909_v4 = vpop.eup %3908 }
0x1fd9   :  { %2533 = vrot.lane.b32.xlu0 %v3909_v4, %s4101_s2 }
0x1fda   :  { %v3911_v28 = vpop.eup %3910 }
0x1fdb   :  { %2535 = vrot.lane.b32.xlu1 %v3911_v28, %s4101_s2  ;;  %v3913_v59 = vpop.eup %3912 }
0x1fdc   :  { %v2515_v8 = vadd.f32 1.0, %v3913_v59  ;;  %v3915_v29 = vpop.eup %3914 }
0x1fdd   :  { %v2517_v2 = vadd.f32 1.0, %v3915_v29 }
0x1fde   :  { %3916 = vrcp.f32 %v2515_v8 }
0x1fdf   :  { %3918 = vrcp.f32 %v2517_v2 }
0x1fe8   :  { %v3917_v37 = vpop.eup %3916 }
0x1fe9   :  { %v3919_v23 = vpop.eup %3918  ;;  %v2529_v7 = vmul.f32 %v3917_v37, %v4950_v19  ;;  %v3390_v19 = vmul.f32 -1.442695, %v2502_v34 }
0x1fea   :  { %v2530_v62 = vmul.f32 %v3919_v23, %v4955_v61 }
0x204b   :  { %v2534_v54 = vpop.permute.xlu0 %2533 }
0x204c   :  { %v2539_v3 = vmul.f32 %v3917_v37, %v2534_v54 }
0x204d   :  { %v2536_v36 = vpop.permute.xlu1 %2535 }
0x204e   :  { %2543 = vrot.lane.b32.xlu0 %v2539_v3, %s4101_s2  ;;  %v2540_v13 = vmul.f32 %v3919_v23, %v2536_v36 }
0x2050   :  { %2545 = vrot.lane.b32.xlu1 %v2540_v13, %s4101_s2 }
0x20c0   :  { %v2544_v10 = vpop.permute.xlu0 %2543 }
0x20c1   :  { %v5021_v39 = vadd.f32 %v2544_v10, %v2529_v7 }
0x20c2   :  { %v2546_v21 = vpop.permute.xlu1 %2545 }
0x20c3   :  { %3920 = vtanh.f32 %v5021_v39  ;;  %v5025_v18 = vadd.f32 %v2546_v21, %v2530_v62 }
0x20c5   :  { %3922 = vtanh.f32 %v5025_v18 }
0x20c6   :  { %3924 = vpow2.f32 %v3388_v57 }
0x20c7   :  { %3926 = vpow2.f32 %v3390_v19 }
0x20cd   :  { %v3921_v5 = vpop.eup %3920 }
0x20ce   :  { %2555 = vrot.lane.b32.xlu0 %v3921_v5, %s4101_s2 }
0x20cf   :  { %v3923_v24 = vpop.eup %3922 }
0x20d0   :  { %2557 = vrot.lane.b32.xlu1 %v3923_v24, %s4101_s2  ;;  %v3925_v9 = vpop.eup %3924 }
0x20d1   :  { %v3927_v50 = vpop.eup %3926  ;;  %v2516_v38 = vadd.f32 1.0, %v3925_v9 }
0x20d2   :  { %v2518_v25 = vadd.f32 1.0, %v3927_v50 }
0x20d3   :  { %3928 = vrcp.f32 %v2516_v38 }
0x20d4   :  { %3930 = vrcp.f32 %v2518_v25 }
0x20dd   :  { %v3929_v41 = vpop.eup %3928 }
0x20de   :  { %v3931_v12 = vpop.eup %3930 }
0x2140   :  { %v2556_v61 = vpop.permute.xlu0 %2555 }
0x2141   :  { %v5030_v17 = vmul.f32 %v3929_v41, %v2556_v61 }
0x2142   :  { %v2558_v53 = vpop.permute.xlu1 %2557 }
0x2143   :  { %v5032_v22 = vmul.f32 %v3931_v12, %v2558_v53  ;;  %v2738_v53 = vunpack.c.l.bf16 %v5012_v16 }
0x2145   :  { %v2597_v43 = vpack.c.bf16 %v5032_v22, %v5030_v17 }
0x2147   :  { %3391 = vmatmul.mubr.msk.bf16.vlgmr.msra.gmra.mrb[44].mxu1 %vm213_vm0, %v2597_v43 }
0x221a   :  { %v2635_v51 = vpop.f32.mrb[44].mxu1 }
0x221b   :  { %v2644_v46 = vadd.f32 %v2635_v51, %v2593_v42  ;;  %v2637_v32 = vpop.f32.mrb[45].mxu1  ;;  %v2739_v42 = vunpack.c.l.bf16 %v5014_v30 }
0x221c   :  { %v2645_v35 = vadd.f32 %v2637_v32, %v2594_v56  ;;  %v2639_v44 = vpop.f32.mrb[46].mxu1 }
0x221d   :  { %v2646_v45 = vadd.f32 %v2639_v44, %v2595_v15  ;;  %v2641_v33 = vpop.f32.mrb[47].mxu1  ;;  %v3392_v4 = vmul.f32 -1.442695, %v2644_v46  ;;  %v2740_v46 = vunpack.c.h.bf16 %v5012_v16 }
0x221e   :  { %3932 = vtanh.f32 %v2645_v35  ;;  %v2647_v52 = vadd.f32 %v2641_v33, %v2596_v49  ;;  %v3393_v5 = vmul.f32 -1.442695, %v2645_v35  ;;  %v2741_v35 = vunpack.c.h.bf16 %v5014_v30 }
0x221f   :  { %v3394_v28 = vmul.f32 -1.442695, %v2646_v45  ;;  %v4102_v33 = vmov 1  }
0x2220   :  { %3934 = vtanh.f32 %v2647_v52  ;;  %3524 = vset.pattern.permute.xlu0 %v4102_v33  ;;  %3525 = vset.pattern.permute.xlu1 %v4102_v33 }
0x2221   :  { %3936 = vpow2.f32 %v3392_v4 }
0x2222   :  { %3938 = vpow2.f32 %v3394_v28 }
0x2228   :  { %v3933_v14 = vpop.eup %3932 }
0x2229   :  { %2678 = vrot.lane.b32.xlu0 %v3933_v14, %s4101_s2 }
0x222a   :  { %v3935_v34 = vpop.eup %3934 }
0x222b   :  { %2680 = vrot.lane.b32.xlu1 %v3935_v34, %s4101_s2  ;;  %v3937_v20 = vpop.eup %3936 }
0x222c   :  { %v2660_v55 = vadd.f32 1.0, %v3937_v20  ;;  %v3939_v60 = vpop.eup %3938 }
0x222d   :  { %v2662_v40 = vadd.f32 1.0, %v3939_v60 }
0x222e   :  { %3940 = vrcp.f32 %v2660_v55 }
0x222f   :  { %3942 = vrcp.f32 %v2662_v40 }
0x2238   :  { %v3941_v59 = vpop.eup %3940 }
0x2239   :  { %v3943_v2 = vpop.eup %3942  ;;  %v2674_v3 = vmul.f32 %v3941_v59, %v5021_v39  ;;  %v3395_v39 = vmul.f32 -1.442695, %v2647_v52 }
0x223a   :  { %v2675_v13 = vmul.f32 %v3943_v2, %v5025_v18 }
0x229b   :  { %v2679_v8 = vpop.permute.xlu0 %2678 }
0x229c   :  { %v2684_v29 = vmul.f32 %v3941_v59, %v2679_v8  ;;  %v1838_v59 = vld [vmem:[%s5224_s1] sm:$0xff] }
0x229d   :  { %v2681_v37 = vpop.permute.xlu1 %2680 }
0x229e   :  { %2688 = vrot.lane.b32.xlu0 %v2684_v29, %s4101_s2  ;;  %v2685_v54 = vmul.f32 %v3943_v2, %v2681_v37  ;;  %v1984_v37 = vld [vmem:[%s5224_s1 + $0x18] sm:$0xff] }
0x22a0   :  { %2690 = vrot.lane.b32.xlu1 %v2685_v54, %s4101_s2  ;;  %v1983_v54 = vld [vmem:[%s5224_s1 + $0x10] sm:$0xff] }
0x2310   :  { %v2689_v23 = vpop.permute.xlu0 %2688 }
0x2311   :  { %v5046_v36 = vadd.f32 %v2689_v23, %v2674_v3  ;;  %v2129_v3 = vld [vmem:[%s5224_s1 + $0x28] sm:$0xff] }
0x2312   :  { %v2691_v7 = vpop.permute.xlu1 %2690  ;;  %v1839_v23 = vld [vmem:[%s5224_s1 + $0x8] sm:$0xff] }
0x2313   :  { %3944 = vtanh.f32 %v5046_v36  ;;  %v5050_v10 = vadd.f32 %v2691_v7, %v2675_v13  ;;  %v2274_v13 = vld [vmem:[%s5224_s1 + $0x38] sm:$0xff]  ;;  %v2128_v7 = vld [vmem:[%s5224_s1 + $0x20] sm:$0xff] }
0x2315   :  { %3946 = vtanh.f32 %v5050_v10 }
0x2316   :  { %3948 = vpow2.f32 %v3393_v5  ;;  %v2564_v5 = vld [vmem:[%s5224_s1 + $0x58] sm:$0xff] }
0x2317   :  { %3950 = vpow2.f32 %v3395_v39  ;;  %v2418_v39 = vld [vmem:[%s5224_s1 + $0x40] sm:$0xff] }
0x231d   :  { %v3945_v62 = vpop.eup %3944 }
0x231e   :  { %2700 = vrot.lane.b32.xlu0 %v3945_v62, %s4101_s2  ;;  %v2419_v62 = vld [vmem:[%s5224_s1 + $0x48] sm:$0xff] }
0x231f   :  { %v3947_v21 = vpop.eup %3946 }
0x2320   :  { %2702 = vrot.lane.b32.xlu1 %v3947_v21, %s4101_s2  ;;  %v3949_v24 = vpop.eup %3948  ;;  %v2273_v21 = vld [vmem:[%s5224_s1 + $0x30] sm:$0xff] }
0x2321   :  { %v3951_v57 = vpop.eup %3950  ;;  %v2661_v19 = vadd.f32 1.0, %v3949_v24  ;;  %v2709_v24 = vld [vmem:[%s5224_s1 + $0x68] sm:$0xff] }
0x2322   :  { %v2663_v9 = vadd.f32 1.0, %v3951_v57  ;;  %v2563_v57 = vld [vmem:[%s5224_s1 + $0x50] sm:$0xff] }
0x2323   :  { %3952 = vrcp.f32 %v2661_v19  ;;  %v2854_v19 = vld [vmem:[%s5224_s1 + $0x78] sm:$0xff] }
0x2324   :  { %3954 = vrcp.f32 %v2663_v9  ;;  %v2708_v9 = vld [vmem:[%s5224_s1 + $0x60] sm:$0xff] }
0x232d   :  { %v3953_v50 = vpop.eup %3952 }
0x232e   :  { %v3955_v38 = vpop.eup %3954 }
0x2390   :  { %v2701_v18 = vpop.permute.xlu0 %2700 }
0x2391   :  { %v5055_v61 = vmul.f32 %v3953_v50, %v2701_v18  ;;  %v2853_v18 = vld [vmem:[%s5224_s1 + $0x70] sm:$0xff] }
0x2392   :  { %v2703_v25 = vpop.permute.xlu1 %2702 }
0x2393   :  { %v5057_v41 = vmul.f32 %v3955_v38, %v2703_v25 }
0x2395   :  { %v2742_v12 = vpack.c.bf16 %v5057_v41, %v5055_v61 }
0x2397   :  { %3396 = vmatmul.mubr.msk.bf16.vlgmr.msra.gmra.mrb[76].mxu0 %vm213_vm0, %v2742_v12 }
0x246a   :  { %v2780_v43 = vpop.f32.mrb[76].mxu0 }
0x246b   :  { %v2789_v51 = vadd.f32 %v2780_v43, %v2738_v53  ;;  %v2782_v56 = vpop.f32.mrb[77].mxu0 }
0x246c   :  { %v5065_v32 = vadd.f32 %v2782_v56, %v2739_v42  ;;  %v2784_v15 = vpop.f32.mrb[78].mxu0 }
0x246d   :  { %v2791_v44 = vadd.f32 %v2784_v15, %v2740_v46  ;;  %v2786_v49 = vpop.f32.mrb[79].mxu0  ;;  %v3397_v30 = vmul.f32 -1.442695, %v2789_v51  ;;  %v2892_v46 = vld [vmem:[%s5231_s8 + $0x38] sm:$0xff] }
0x246e   :  { %3956 = vtanh.f32 %v5065_v32  ;;  %v5069_v45 = vadd.f32 %v2786_v49, %v2741_v35 }
0x246f   :  { %v3399_v14 = vmul.f32 -1.442695, %v2791_v44 }
0x2470   :  { %3958 = vtanh.f32 %v5069_v45 }
0x2471   :  { %3960 = vpow2.f32 %v3397_v30 }
0x2472   :  { %3962 = vpow2.f32 %v3399_v14  ;;  %v3400_v14 = vmul.f32 -1.442695, %v5069_v45 }
0x2478   :  { %v3957_v52 = vpop.eup %3956 }
0x2479   :  { %2823 = vrot.lane.b32.xlu0 %v3957_v52, %s4101_s2 }
0x247a   :  { %v3959_v16 = vpop.eup %3958 }
0x247b   :  { %2825 = vrot.lane.b32.xlu1 %v3959_v16, %s4101_s2  ;;  %v3961_v34 = vpop.eup %3960  ;;  %v3398_v16 = vmul.f32 -1.442695, %v5065_v32 }
0x247c   :  { %v2805_v4 = vadd.f32 1.0, %v3961_v34  ;;  %v3963_v28 = vpop.eup %3962 }
0x247d   :  { %v2807_v20 = vadd.f32 1.0, %v3963_v28 }
0x247e   :  { %3964 = vrcp.f32 %v2805_v4 }
0x247f   :  { %3966 = vrcp.f32 %v2807_v20 }
0x2488   :  { %v3965_v55 = vpop.eup %3964 }
0x2489   :  { %v3967_v8 = vpop.eup %3966  ;;  %v2819_v50 = vmul.f32 %v3965_v55, %v5046_v36  ;;  %v2890_v36 = vld [vmem:[%s5231_s8 + $0x28] sm:$0xff] }
0x248a   :  { %v2820_v12 = vmul.f32 %v3967_v8, %v5050_v10  ;;  %v2891_v10 = vld [vmem:[%s5231_s8 + $0x30] sm:$0xff] }
0x248b   :  { %v3484_v15 = vpack.c.bf16 %v2892_v46, %v2891_v10 }
0x24eb   :  { %v2824_v60 = vpop.permute.xlu0 %2823 }
0x24ec   :  { %v2829_v40 = vmul.f32 %v3965_v55, %v2824_v60 }
0x24ed   :  { %v2826_v29 = vpop.permute.xlu1 %2825 }
0x24ee   :  { %2833 = vrot.lane.b32.xlu0 %v2829_v40, %s4101_s2  ;;  %v2830_v2 = vmul.f32 %v3967_v8, %v2826_v29 }
0x24f0   :  { %2835 = vrot.lane.b32.xlu1 %v2830_v2, %s4101_s2 }
0x24f2   :  { %1855 = vperm.xlu0 %3524, %v1838_v59  }
0x24f4   :  { %2000 = vperm.xlu1 %3525, %v1983_v54  }
0x24f6   :  { %2004 = vperm.xlu0 %3524, %v1984_v37  }
0x24f8   :  { %1859 = vperm.xlu1 %3525, %v1839_v23  }
0x24fa   :  { %2149 = vperm.xlu0 %3524, %v2129_v3  }
0x24fc   :  { %2145 = vperm.xlu1 %3525, %v2128_v7  }
0x24fe   :  { %2294 = vperm.xlu0 %3524, %v2274_v13  }
0x2500   :  { %2290 = vperm.xlu1 %3525, %v2273_v21  }
0x2502   :  { %2439 = vperm.xlu0 %3524, %v2419_v62  }
0x2504   :  { %2435 = vperm.xlu1 %3525, %v2418_v39  }
0x2506   :  { %2584 = vperm.xlu0 %3524, %v2564_v5  }
0x2508   :  { %2580 = vperm.xlu1 %3525, %v2563_v57  }
0x250a   :  { %2729 = vperm.xlu0 %3524, %v2709_v24  }
0x250c   :  { %2725 = vperm.xlu1 %3525, %v2708_v9  }
0x250e   :  { %2874 = vperm.xlu0 %3524, %v2854_v19  }
0x2510   :  { %2870 = vperm.xlu1 %3525, %v2853_v18  }
0x2512   :  { %3527 = vset.pattern.permute.xlu0 %v4100_v0 }
0x2514   :  { %3526 = vset.pattern.permute.xlu1 %v4100_v0  ;;  %v2889_v0 = vld [vmem:[%s5231_s8 + $0x20] sm:$0xff] }
0x2515   :  { %v3480_v56 = vpack.c.bf16 %v2890_v36, %v2889_v0 }
0x2517   :  { %3481 = vmatprep.subr.bf16.mxu1 %v3480_v56 }
0x2518   :  { %3483 = vmatpush3.bf16.msra.mxu1 %v3480_v56 }
0x2519   :  { %3485 = vmatprep.subr.bf16.mxu1 %v3484_v15 }
0x251c   :  { %3487 = vmatpush3.bf16.msra.mxu1 %v3484_v15 }
0x2560   :  { %v2834_v38 = vpop.permute.xlu0 %2833 }
0x2561   :  { %v2839_v25 = vadd.f32 %v2834_v38, %v2819_v50 }
0x2562   :  { %v2836_v53 = vpop.permute.xlu1 %2835 }
0x2563   :  { %3968 = vtanh.f32 %v2839_v25  ;;  %v2840_v43 = vadd.f32 %v2836_v53, %v2820_v12 }
0x2565   :  { %3970 = vtanh.f32 %v2840_v43 }
0x2566   :  { %3972 = vpow2.f32 %v3398_v16 }
0x2567   :  { %3974 = vpow2.f32 %v3400_v14 }
0x256d   :  { %v3969_v42 = vpop.eup %3968 }
0x256e   :  { %2845 = vrot.lane.b32.xlu1 %v3969_v42, %s4101_s2 }
0x256f   :  { %v3971_v51 = vpop.eup %3970 }
0x2570   :  { %2847 = vrot.lane.b32.xlu0 %v3971_v51, %s4101_s2  ;;  %v3973_v20 = vpop.eup %3972 }
0x2571   :  { %v1856_v44 = vpop.permute.xlu0 %1855  ;;  %v2806_v60 = vadd.f32 1.0, %v3973_v20 }
0x2572   :  { %1842 = vperm.xlu1 %3526, %v1838_v59   ;;  %v3975_v59 = vpop.eup %3974  ;;  %v1862_v2 = vmul.f32 %v1856_v44, %v4804_v26 }
0x2573   :  { %v2001_v35 = vpop.permute.xlu1 %2000  ;;  %3976 = vrcp.f32 %v2806_v60  ;;  %v2808_v29 = vadd.f32 1.0, %v3975_v59 }
0x2574   :  { %1987 = vperm.xlu0 %3527, %v1983_v54   ;;  %v2007_v8 = vmul.f32 %v2001_v35, %v4842_v47 }
0x2575   :  { %3978 = vrcp.f32 %v2808_v29 }
0x2576   :  { %1847 = vperm.xlu1 %3526, %v1839_v23  }
0x2577   :  { %v1860_v49 = vpop.permute.xlu1 %1859 }
0x2578   :  { %2132 = vperm.xlu0 %3527, %v2128_v7   ;;  %v1863_v45 = vmul.f32 %v1860_v49, %v4806_v31 }
0x257a   :  { %1992 = vperm.xlu1 %3526, %v1984_v37  }
0x257b   :  { %v2146_v52 = vpop.permute.xlu1 %2145 }
0x257c   :  { %2277 = vperm.xlu0 %3527, %v2273_v21   ;;  %v2152_v32 = vmul.f32 %v2146_v52, %v4880_v11 }
0x257d   :  { %v3977_v53 = vpop.eup %3976 }
0x257e   :  { %2137 = vperm.xlu1 %3526, %v2129_v3   ;;  %v2009_v3 = vadd.f32 %v2007_v8, %v1862_v2 }
0x257f   :  { %v2291_v34 = vpop.permute.xlu1 %2290 }
0x2580   :  { %2422 = vperm.xlu0 %3527, %v2418_v39   ;;  %v2297_v23 = vmul.f32 %v2291_v34, %v4920_v27  ;;  %v2154_v7 = vadd.f32 %v2152_v32, %v2009_v3 }
0x2582   :  { %2282 = vperm.xlu1 %3526, %v2274_v13  }
0x2583   :  { %v2436_v28 = vpop.permute.xlu1 %2435 }
0x2584   :  { %2567 = vperm.xlu0 %3527, %v2563_v57   ;;  %v2886_v57 = vld [vmem:[%s5231_s8 + $0x8] sm:$0xff] }
0x2586   :  { %2427 = vperm.xlu1 %3526, %v2419_v62   ;;  %v2442_v62 = vmul.f32 %v2436_v28, %v4971_v58 }
0x2587   :  { %v2581_v40 = vpop.permute.xlu1 %2580 }
0x2588   :  { %2712 = vperm.xlu0 %3527, %v2708_v9   ;;  %v2587_v9 = vmul.f32 %v2581_v40, %v5030_v17 }
0x258a   :  { %2572 = vperm.xlu1 %3526, %v2564_v5  }
0x258b   :  { %v2726_v54 = vpop.permute.xlu1 %2725 }
0x258c   :  { %2857 = vperm.xlu0 %3527, %v2853_v18   ;;  %v2732_v12 = vmul.f32 %v2726_v54, %v5055_v61 }
0x258e   :  { %2717 = vperm.xlu1 %3526, %v2709_v24   ;;  %v2885_v24 = vld [vmem:[%s5231_s8] sm:$0xff] }
0x258f   :  { %v2871_v39 = vpop.permute.xlu1 %2870  ;;  %v5162_v50 = vpack.c.bf16 %v2886_v57, %v2885_v24 }
0x2590   :  { %3528 = vset.pattern.permute.xlu0 %v4102_v33  ;;  %v2005_v33 = vpop.permute.xlu0 %2004 }
0x2591   :  { %v2008_v13 = vmul.f32 %v2005_v33, %v4844_v48  ;;  %3489 = vmatprep.subr.bf16.mxu1 %v5162_v50  ;;  %v3979_v33 = vpop.eup %3978 }
0x2592   :  { %2862 = vperm.xlu1 %3526, %v2854_v19   ;;  %v2299_v19 = vadd.f32 %v2297_v23, %v2154_v7 }
0x2593   :  { %v2010_v21 = vadd.f32 %v2008_v13, %v1863_v45 }
0x2594   :  { %v2150_v30 = vpop.permute.xlu0 %2149  ;;  %v2444_v25 = vadd.f32 %v2442_v62, %v2299_v19 }
0x2595   :  { %v2153_v5 = vmul.f32 %v2150_v30, %v4882_v63 }
0x2596   :  { %v2589_v0 = vadd.f32 %v2587_v9, %v2444_v25 }
0x2597   :  { %v2155_v43 = vadd.f32 %v2153_v5, %v2010_v21 }
0x2598   :  { %v2295_v4 = vpop.permute.xlu0 %2294  ;;  %v2734_v15 = vadd.f32 %v2732_v12, %v2589_v0 }
0x2599   :  { %v2298_v38 = vmul.f32 %v2295_v4, %v4922_v1 }
0x259b   :  { %v2300_v56 = vadd.f32 %v2298_v38, %v2155_v43 }
0x259c   :  { %v2440_v55 = vpop.permute.xlu0 %2439 }
0x259d   :  { %v2443_v42 = vmul.f32 %v2440_v55, %v4973_v6 }
0x259f   :  { %v2445_v44 = vadd.f32 %v2443_v42, %v2300_v56 }
0x25a0   :  { %v2585_v37 = vpop.permute.xlu0 %2584 }
0x25a1   :  { %v2588_v46 = vmul.f32 %v2585_v37, %v5032_v22 }
0x25a3   :  { %v2590_v30 = vadd.f32 %v2588_v46, %v2445_v44 }
0x25a4   :  { %v2730_v18 = vpop.permute.xlu0 %2729 }
0x25a5   :  { %v2733_v49 = vmul.f32 %v2730_v18, %v5057_v41 }
0x25a7   :  { %v2735_v4 = vadd.f32 %v2733_v49, %v2590_v30 }
0x25a8   :  { %v2875_v36 = vpop.permute.xlu0 %2874 }
0x25e0   :  { %v2846_v51 = vpop.permute.xlu1 %2845 }
0x25e1   :  { %v2851_v10 = vmul.f32 %v3977_v53, %v2846_v51 }
0x25e2   :  { %v2848_v16 = vpop.permute.xlu0 %2847 }
0x25e3   :  { %v2877_v35 = vmul.f32 %v2871_v39, %v2851_v10  ;;  %v2852_v14 = vmul.f32 %v3979_v33, %v2848_v16  ;;  %v3073_v16 = vld [vmem:[#allocation9 + $0x10] sm:$0xff] }
0x25e5   :  { %v2879_v52 = vadd.f32 %v2877_v35, %v2734_v15  ;;  %v2878_v28 = vmul.f32 %v2875_v36, %v2852_v14 }
0x25e7   :  { %v2883_v34 = vmul.f32 0.125, %v2879_v52  ;;  %v2880_v20 = vadd.f32 %v2878_v28, %v2735_v4  ;;  %v3071_v52 = vld [vmem:[#allocation9] sm:$0xff]  ;;  %v3405_v4 = vld [vmem:[#allocation8] ss:$0 sm:$0xff] }
0x25e9   :  { %2895 = vrot.lane.b32.xlu0 %v2883_v34, %s4103_s20  ;;  %v2884_v55 = vmul.f32 0.125, %v2880_v20 }
0x25eb   :  { %2897 = vrot.lane.b32.xlu1 %v2884_v55, %s4103_s20 }
0x25f1   :  { %v1843_v60 = vpop.permute.xlu1 %1842 }
0x25f2   :  { %v1850_v13 = vmul.f32 %v1843_v60, %v4804_v26 }
0x25f3   :  { %v1988_v40 = vpop.permute.xlu0 %1987 }
0x25f4   :  { %v1995_v23 = vmul.f32 %v1988_v40, %v4842_v47 }
0x25f5   :  { %v1848_v59 = vpop.permute.xlu1 %1847 }
0x25f6   :  { %v1997_v21 = vadd.f32 %v1995_v23, %v1850_v13  ;;  %v1851_v38 = vmul.f32 %v1848_v59, %v4806_v31  ;;  %v3165_v59 = vld [vmem:[%s5235_s12] sm:$0xff] }
0x25f7   :  { %v2133_v8 = vpop.permute.xlu0 %2132 }
0x25f8   :  { %v2140_v7 = vmul.f32 %v2133_v8, %v4880_v11  ;;  %v3166_v8 = vld [vmem:[%s5235_s12 + $0x8] sm:$0xff] }
0x25f9   :  { %v1993_v29 = vpop.permute.xlu1 %1992 }
0x25fa   :  { %v2142_v24 = vadd.f32 %v2140_v7, %v1997_v21  ;;  %v1996_v19 = vmul.f32 %v1993_v29, %v4844_v48  ;;  %v3167_v29 = vld [vmem:[%s5235_s12 + $0x10] sm:$0xff]  ;;  %v3409_v21 = vld [vmem:[%s5236_s13] ss:$0 sm:$0xff] }
0x25fb   :  { %v2278_v2 = vpop.permute.xlu0 %2277 }
0x25fc   :  { %v2285_v5 = vmul.f32 %v2278_v2, %v4920_v27  ;;  %v1998_v53 = vadd.f32 %v1996_v19, %v1851_v38  ;;  %v3504_v2 = vpack.c.bf16 %v3166_v8, %v3165_v59 }
0x25fd   :  { %v2138_v32 = vpop.permute.xlu1 %2137 }
0x25fe   :  { %v2287_v9 = vadd.f32 %v2285_v5, %v2142_v24  ;;  %v2141_v47 = vmul.f32 %v2138_v32, %v4882_v63  ;;  %v3168_v32 = vld [vmem:[%s5235_s12 + $0x18] sm:$0xff] }
0x25ff   :  { %v2423_v37 = vpop.permute.xlu0 %2422 }
0x2600   :  { %v2430_v57 = vmul.f32 %v2423_v37, %v4971_v58  ;;  %v2143_v58 = vadd.f32 %v2141_v47, %v1998_v53  ;;  %v3508_v37 = vpack.c.bf16 %v3168_v32, %v3167_v29 }
0x2601   :  { %v2283_v45 = vpop.permute.xlu1 %2282 }
0x2602   :  { %v2432_v25 = vadd.f32 %v2430_v57, %v2287_v9  ;;  %v2286_v27 = vmul.f32 %v2283_v45, %v4922_v1  ;;  %v2888_v1 = vld [vmem:[%s5231_s8 + $0x18] sm:$0xff]  ;;  %v3406_v45 = vld [vmem:[%s5234_s11] ss:$0 sm:$0xff] }
0x2603   :  { %v2568_v54 = vpop.permute.xlu0 %2567 }
0x2604   :  { %v2575_v18 = vmul.f32 %v2568_v54, %v5030_v17  ;;  %v2288_v17 = vadd.f32 %v2286_v27, %v2143_v58 }
0x2605   :  { %v2428_v3 = vpop.permute.xlu1 %2427 }
0x2606   :  { %v2577_v43 = vadd.f32 %v2575_v18, %v2432_v25  ;;  %v2431_v48 = vmul.f32 %v2428_v3, %v4973_v6 }
0x2607   :  { %v2713_v62 = vpop.permute.xlu0 %2712 }
0x2608   :  { %v2720_v11 = vmul.f32 %v2713_v62, %v5055_v61  ;;  %v2887_v61 = vld [vmem:[%s5231_s8 + $0x10] sm:$0xff] }
0x2609   :  { %v2573_v39 = vpop.permute.xlu1 %2572  ;;  %v3492_v15 = vpack.c.bf16 %v2888_v1, %v2887_v61 }
0x260a   :  { %v2722_v51 = vadd.f32 %v2720_v11, %v2577_v43  ;;  %v2576_v31 = vmul.f32 %v2573_v39, %v5032_v22 }
0x260b   :  { %v2858_v26 = vpop.permute.xlu0 %2857 }
0x260c   :  { %v2865_v42 = vmul.f32 %v2858_v26, %v2851_v10  ;;  %v2433_v10 = vadd.f32 %v2431_v48, %v2288_v17 }
0x260d   :  { %v2718_v12 = vpop.permute.xlu1 %2717 }
0x260e   :  { %v2867_v63 = vadd.f32 %v2865_v42, %v2722_v51  ;;  %v2721_v6 = vmul.f32 %v2718_v12, %v5057_v41  ;;  %v2578_v56 = vadd.f32 %v2576_v31, %v2433_v10  ;;  %v3072_v41 = vld [vmem:[#allocation9 + $0x8] sm:$0xff] }
0x260f   :  { %v3496_v30 = vpack.c.bf16 %v3072_v41, %v3071_v52 }
0x2610   :  { %v2881_v22 = vmul.f32 0.125, %v2867_v63  ;;  %v2723_v44 = vadd.f32 %v2721_v6, %v2578_v56 }
0x2611   :  { %v2863_v36 = vpop.permute.xlu1 %2862  ;;  %3497 = vmatprep.subr.bf16.mxu0 %v3496_v30 }
0x2612   :  { %v2866_v46 = vmul.f32 %v2863_v36, %v2852_v14  ;;  %v3074_v14 = vld [vmem:[#allocation9 + $0x18] sm:$0xff]  ;;  %3499 = vmatpush3.bf16.msra.mxu0 %v3496_v30 }
0x2613   :  { %v3500_v34 = vpack.c.bf16 %v3074_v14, %v3073_v16 }
0x2614   :  { %v2868_v49 = vadd.f32 %v2866_v46, %v2723_v44 }
0x2615   :  { %3501 = vmatprep.subr.bf16.mxu0 %v3500_v34 }
0x2616   :  { %v2882_v33 = vmul.f32 0.125, %v2868_v49  ;;  %3503 = vmatpush3.bf16.msra.mxu0 %v3500_v34 }
0x265b   :  { %v2896_v0 = vpop.permute.xlu0 %2895 }
0x265c   :  { %3444 = vmatprep.mubr.msk.f32.mxu1 %vm2899_vm2, %v2896_v0 }
0x265d   :  { %v2898_v35 = vpop.permute.xlu1 %2897 }
0x265e   :  { %3445 = vmatmul.mubr.msk.f32.vlgmr.msra.gmra.mrb[48].mxu1 %vm2899_vm2, %v2898_v35 }
0x265f   :  { %3491 = vmatpush3.bf16.msra.mxu1 %v5162_v50  ;;  %3455 = vmatprep.mubr.msk.f32.mxu1 %vm2899_vm2, %v2881_v22 }
0x2660   :  { %3493 = vmatprep.subr.bf16.mxu1 %v3492_v15 }
0x2663   :  { %3495 = vmatpush3.bf16.msra.mxu1 %v3492_v15 }
0x2664   :  { %3505 = vmatprep.subr.bf16.mxu1 %v3504_v2 }
0x2666   :  { %3456 = vmatmul.mubr.msk.f32.vlgmr.msra.gmra.mrb[48].mxu1 %vm2899_vm2, %v2882_v33 }
0x2667   :  { %3507 = vmatpush3.bf16.msra.mxu1 %v3504_v2 }
0x2668   :  { %3509 = vmatprep.subr.bf16.mxu1 %v3508_v37 }
0x266b   :  { %3511 = vmatpush3.bf16.msra.mxu1 %v3508_v37 }
0x2739   :  { %v3457_v50 = vpop.f32.mrb[48].mxu1 }
0x273a   :  { %v3068_v28 = vadd.f32 %v3457_v50, %v3405_v4  ;;  %v3051_v20 = vpop.f32.mrb[49].mxu1 }
0x273b   :  { %v3067_v55 = vadd.f32 %v3405_v4, %v3051_v20 }
0x273d   :  { %3980 = vtanh.f32 %v3067_v55 }
0x273e   :  { %3982 = vtanh.f32 %v3068_v28 }
0x2747   :  { %v3981_v60 = vpop.eup %3980 }
0x2748   :  { %v3983_v40 = vpop.eup %3982  ;;  %3466 = vmatprep.mubr.msk.f32.mxu0 %vm2899_vm2, %v3981_v60 }
0x2749   :  { %3467 = vmatmul.mubr.msk.f32.vlgmr.msra.gmra.mrb[80].mxu0 %vm2899_vm2, %v3983_v40 }
0x281c   :  { %v3468_v54 = vpop.f32.mrb[80].mxu0 }
0x281d   :  { %v3160_v3 = vadd.f32 %v3468_v54, %v3406_v45  ;;  %v3154_v23 = vpop.f32.mrb[81].mxu0 }
0x281e   :  { %v3155_v13 = vadd.f32 %v3406_v45, %v3154_v23 }
0x2820   :  { %3984 = vtanh.f32 %v3155_v13 }
0x2821   :  { %3986 = vtanh.f32 %v3160_v3 }
0x282a   :  { %v3985_v7 = vpop.eup %3984 }
0x282b   :  { %v3987_v62 = vpop.eup %3986  ;;  %3477 = vmatprep.mubr.msk.f32.mxu1 %vm2899_vm2, %v3985_v7 }
0x282c   :  { %3478 = vmatmul.mubr.msk.f32.vlgmr.msra.gmra.mrb[50].mxu1 %vm2899_vm2, %v3987_v62 }
0x28ff   :  { %v3479_v5 = vpop.f32.mrb[50].mxu1 }
0x2900   :  { %v3254_v39 = vadd.f32 %v3479_v5, %v3409_v21  ;;  %v3248_v24 = vpop.f32.mrb[51].mxu1 }
0x2901   :  { %v3249_v57 = vadd.f32 %v3409_v21, %v3248_v24 }
0x2902   :  { %3259 = vst.msk [vmem:[%s5237_s14 + $0x8] sm:$0xff] %vm3257_vm3, %v3254_v39 }
0x2903   :  { %3258 = vst.msk [vmem:[%s5237_s14] sm:$0xff] %vm3257_vm3, %v3249_v57 }
0x2904   :  { %3264 = vsyncpa [#allocation5], 1 }
0x2905   :  { %3265 = vsyncpa [#allocation7], 1 }
0x2906   :  { %3266 = vsyncpa [#allocation10], 1 }

</bundles_post_ra>
